<compile_context>
chip_gen: v6e
topology: v6e:2x2x1
jax: 0.10.0
libtpu: 0.0.40
codegen_flags: <defaults>
</compile_context>

<pallas_src>
import functools

import numpy as np

import jax
import jax.numpy as jnp
from jax.experimental import pallas as pl
from jax.experimental.pallas import tpu as pltpu

EPS = 1e-5     # nn.GroupNorm default eps
SLOPE = 0.01   # nn.LeakyReLU default negative_slope


# ----------------------------- fused Pallas kernel -----------------------------
def _encoder_kernel(x_ref, rsel_ref, mix_ref, hsel_ref, wsel_ref,
                    a1_ref, p1_ref, a2_ref, p2_ref, o_ref,
                    *, NB, D, H, W, Cout):
    DH = D * H
    mix = mix_ref[...]                                   # (Cout*W, Cout*W)

    def conv_gn_act(v, a_ref_, p_ref_):
        # conv: per-tap accumulation.  rsel[t] @ v gathers the (kd,kh)-shifted rows
        # (with the D/H replication clamp folded in); a_ref_[t] folds the 3 kw taps
        # plus the W replication clamp.  No wide im2col lane-concat is built.
        acc = jnp.dot(jnp.dot(rsel_ref[0], v, preferred_element_type=jnp.float32),
                      a_ref_[0], preferred_element_type=jnp.float32)
        for t in range(1, 9):
            g = jnp.dot(rsel_ref[t], v, preferred_element_type=jnp.float32)
            acc = acc + jnp.dot(g, a_ref_[t], preferred_element_type=jnp.float32)
        acc = acc + p_ref_[0:1, :]                       # conv bias

        # GroupNorm (per sample): sublane sums + one group-averaging matmul.
        ys = []
        for n in range(NB):                              # static, NB <= 2
            a = acc[n * DH:(n + 1) * DH]
            s = jnp.concatenate([jnp.sum(a, axis=0, keepdims=True),
                                 jnp.sum(a * a, axis=0, keepdims=True)], axis=0)
            m = jnp.dot(s, mix, preferred_element_type=jnp.float32)  # (2, Cout*W)
            mean = m[0:1, :]
            var = m[1:2, :] - mean * mean
            ys.append((a - mean) * jax.lax.rsqrt(var + EPS))
        y = ys[0] if NB == 1 else jnp.concatenate(ys, axis=0)
        y = y * p_ref_[1:2, :] + p_ref_[2:3, :]          # GN affine
        return jnp.where(y >= 0.0, y, SLOPE * y)         # LeakyReLU

    y1 = conv_gn_act(x_ref[...], a1_ref, p1_ref)         # (NB*DH, Cout*W)
    y2 = conv_gn_act(y1, a2_ref, p2_ref)                 # (NB*DH, Cout*W)

    # MaxPool3d((1,2,2)) via 0/1 selection matmuls: rows (h-pool), lanes (w-pool).
    mh = jnp.maximum(
        jnp.dot(hsel_ref[0], y2, preferred_element_type=jnp.float32),
        jnp.dot(hsel_ref[1], y2, preferred_element_type=jnp.float32))
    mw = jnp.maximum(
        jnp.dot(mh, wsel_ref[0], preferred_element_type=jnp.float32),
        jnp.dot(mh, wsel_ref[1], preferred_element_type=jnp.float32))

    o_ref[...] = mw                                      # lane-dense (NB*D*Hh, Cout*Wh)


# ----------------------------- host-side parameter prep -----------------------------
def prepare_params(w1, b1, g1, be1, w2, b2, g2, be2, *, D, H, W, G, nb=1):
    """Fold conv weights / build selection matrices once (host side)."""
    Cout, Cin = w1.shape[0], w1.shape[1]
    assert Cout % G == 0 and H % 2 == 0 and W % 2 == 0
    Hh, Wh = H // 2, W // 2
    DH = D * H

    def block_diag(m, n):
        R, C = m.shape
        out = np.zeros((n * R, n * C), np.float32)
        for i in range(n):
            out[i * R:(i + 1) * R, i * C:(i + 1) * C] = m
        return out

    def fold_taps(w):
        # w: (co, ci, 3, 3, 3) torch layout -> (9, ci*W, co*W); per (kd,kh) the 3
        # kw taps are summed with the W replication-pad clamp folded in.
        co, ci = w.shape[0], w.shape[1]
        wn = np.asarray(w, np.float32)
        sel = np.zeros((3, W, W), np.float32)             # sel[kw, w_in, w_out]
        for kw in range(3):
            for wo in range(W):
                sel[kw, min(max(wo + kw - 1, 0), W - 1), wo] = 1.0
        a = np.einsum('oiabc,cvw->abivow', wn, sel)       # (3,3,ci,W,co,W)
        return jnp.asarray(a.reshape(9, ci * W, co * W))

    def row_select_single():
        # r[t, d*H+h, src]=1, src = clamped (d+kd-1, h+kh-1) row (D/H replication pad)
        r = np.zeros((9, DH, DH), np.float32)
        for kd in range(3):
            for kh in range(3):
                t = kd * 3 + kh
                for d in range(D):
                    for h in range(H):
                        src = (min(max(d + kd - 1, 0), D - 1) * H
                               + min(max(h + kh - 1, 0), H - 1))
                        r[t, d * H + h, src] = 1.0
        return r

    def group_mix():
        cnt = float(D * H * W * (Cout // G))
        gid = (np.arange(Cout * W) // W) // (Cout // G)
        return (gid[:, None] == gid[None, :]).astype(np.float32) / cnt

    def hpool_single():
        s = np.zeros((2, D * Hh, DH), np.float32)
        for d in range(D):
            for hh in range(Hh):
                s[0, d * Hh + hh, d * H + 2 * hh] = 1.0
                s[1, d * Hh + hh, d * H + 2 * hh + 1] = 1.0
        return s

    def wpool_sel():
        s = np.zeros((2, Cout * W, Cout * Wh), np.float32)
        for c in range(Cout):
            for wh in range(Wh):
                s[0, c * W + 2 * wh, c * Wh + wh] = 1.0
                s[1, c * W + 2 * wh + 1, c * Wh + wh] = 1.0
        return jnp.asarray(s)

    def lane_params(b, g, be):
        rep = lambda v: np.repeat(np.asarray(v, np.float32).reshape(-1), W)
        return jnp.asarray(np.stack([rep(b), rep(g), rep(be)], axis=0))  # (3, Cout*W)

    r1 = row_select_single()
    rsel = jnp.asarray(np.stack([block_diag(r1[t], nb) for t in range(9)], axis=0))
    h1 = hpool_single()
    hsel = jnp.asarray(np.stack([block_diag(h1[i], nb) for i in range(2)], axis=0))

    return dict(a1=fold_taps(w1), a2=fold_taps(w2),
                p1=lane_params(b1, g1, be1), p2=lane_params(b2, g2, be2),
                rsel=rsel, mix=jnp.asarray(group_mix()),
                hsel=hsel, wsel=wpool_sel())


def fold_batch_default():
    # v7x has 2 TensorCores per chip: keep one sample per core (grid=(N,)).
    # Single-TC chips (v5e/v6e/...): fold the whole batch into one block
    # (grid=(1,)) to avoid serial grid-step overhead and double the MXU M dim.
    try:
        kind = jax.devices()[0].device_kind.lower()
    except Exception:
        return True
    return not ("v7" in kind or "7x" in kind or "tpu7" in kind)


# ----------------------------- wrapper -----------------------------
def encoder_forward(x, params, *, Cout, nb):
    """x: (N, Cin, D, H, W) NCDHW float32 -> (N, Cout, D, H//2, W//2)."""
    N, Cin, D, H, W = x.shape
    assert H % 2 == 0 and W % 2 == 0 and N % nb == 0
    Hh, Wh = H // 2, W // 2
    DH = D * H
    CW = Cout * W

    # one-time layout plumbing in XLA: rows = (n, d, h), lanes = (ci, w)
    x2d = x.transpose(0, 2, 3, 1, 4).reshape(N * DH, Cin * W)

    kernel = functools.partial(_encoder_kernel, NB=nb, D=D, H=H, W=W, Cout=Cout)
    out = pl.pallas_call(
        kernel,
        out_shape=jax.ShapeDtypeStruct((N * D * Hh, Cout * Wh), jnp.float32),
        grid=(N // nb,),
        in_specs=[
            pl.BlockSpec((nb * DH, Cin * W), lambda n: (n, 0)),
            pl.BlockSpec((9, nb * DH, nb * DH), lambda n: (0, 0, 0)),
            pl.BlockSpec((CW, CW), lambda n: (0, 0)),
            pl.BlockSpec((2, nb * D * Hh, nb * DH), lambda n: (0, 0, 0)),
            pl.BlockSpec((2, CW, Cout * Wh), lambda n: (0, 0, 0)),
            pl.BlockSpec((9, Cin * W, CW), lambda n: (0, 0, 0)),
            pl.BlockSpec((3, CW), lambda n: (0, 0)),
            pl.BlockSpec((9, CW, CW), lambda n: (0, 0, 0)),
            pl.BlockSpec((3, CW), lambda n: (0, 0)),
        ],
        out_specs=pl.BlockSpec((nb * D * Hh, Cout * Wh), lambda n: (n, 0)),
        compiler_params=pltpu.CompilerParams(
            dimension_semantics=("parallel",)),
    )(x2d, params["rsel"], params["mix"], params["hsel"], params["wsel"],
      params["a1"], params["p1"], params["a2"], params["p2"])

    # lane-dense kernel output -> NCDHW; one tiny XLA reshape/transpose
    return out.reshape(N, D, Hh, Cout, Wh).transpose(0, 3, 1, 2, 4)


# ----------------------------- pure-JAX reference -----------------------------
def _ref_block(x, w, b, gamma, beta, G):
    xp = jnp.pad(x, ((0, 0), (0, 0), (1, 1), (1, 1), (1, 1)), mode="edge")
    y = jax.lax.conv_general_dilated(
        xp, w, window_strides=(1, 1, 1), padding="VALID",
        dimension_numbers=("NCDHW", "OIDHW", "NCDHW"),
        precision=jax.lax.Precision.HIGHEST)
    y = y + b.reshape(1, -1, 1, 1, 1)
    N, C, D, H, W = y.shape
    yg = y.reshape(N, G, C // G, D, H, W)
    mean = yg.mean(axis=(2, 3, 4, 5), keepdims=True)
    var = ((yg - mean) ** 2).mean(axis=(2, 3, 4, 5), keepdims=True)
    yn = ((yg - mean) * jax.lax.rsqrt(var + EPS)).reshape(N, C, D, H, W)
    yn = yn * gamma.reshape(1, -1, 1, 1, 1) + beta.reshape(1, -1, 1, 1, 1)
    return jnp.where(yn >= 0, yn, SLOPE * yn)


def ref_forward(x, w1, b1, g1, be1, w2, b2, g2, be2, G):
    y = _ref_block(x, w1, b1, g1, be1, G)
    y = _ref_block(y, w2, b2, g2, be2, G)
    N, C, D, H, W = y.shape
    return y.reshape(N, C, D, H // 2, 2, W // 2, 2).max(axis=(4, 6))


if __name__ == "__main__":
    N, Cin, D, H, W = 2, 4, 4, 8, 8          # input NCDHW = (2, 4, 4, 8, 8)
    Cout, G = 8, 4                           # encoder(in_channel=4, out_channel=8, num_groups=4)

    key = jax.random.PRNGKey(0)
    ks = jax.random.split(key, 8)
    x = jax.random.normal(ks[0], (N, Cin, D, H, W), jnp.float32)

    # Conv3d weights in the PyTorch (out, in, kD, kH, kW) layout.
    w1 = 0.2 * jax.random.normal(ks[1], (Cout, Cin, 3, 3, 3), jnp.float32)
    b1 = 0.1 * jax.random.normal(ks[2], (Cout,), jnp.float32)
    w2 = 0.2 * jax.random.normal(ks[3], (Cout, Cout, 3, 3, 3), jnp.float32)
    b2 = 0.1 * jax.random.normal(ks[4], (Cout,), jnp.float32)
    g1 = 1.0 + 0.05 * jax.random.normal(ks[5], (Cout,), jnp.float32)
    be1 = 0.05 * jax.random.normal(ks[6], (Cout,), jnp.float32)
    g2 = jnp.ones((Cout,), jnp.float32)      # GroupNorm default affine init
    be2 = jnp.zeros((Cout,), jnp.float32)

    NB = N if fold_batch_default() else 1    # fold batch on single-TC chips
    params = prepare_params(w1, b1, g1, be1, w2, b2, g2, be2,
                            D=D, H=H, W=W, G=G, nb=NB)

    out = jax.block_until_ready(encoder_forward(x, params, Cout=Cout, nb=NB))
    assert out.shape == (N, Cout, D, H // 2, W // 2), out.shape

    ref = ref_forward(x, w1, b1, g1, be1, w2, b2, g2, be2, G)
    err = float(jnp.max(jnp.abs(out - ref)))
    assert err < 2e-3, f"max abs err too large: {err}"

    print("KERNEL_OK")
</pallas_src>

<mosaic_0001>
module attributes {stable_mosaic.version = 11 : i64} {
  func.func @_encoder_kernel(%arg0: i32, %arg1: memref<64x32xf32, #tpu.memory_space<vmem>>, %arg2: memref<9x64x64xf32, #tpu.memory_space<vmem>>, %arg3: memref<64x64xf32, #tpu.memory_space<vmem>>, %arg4: memref<2x32x64xf32, #tpu.memory_space<vmem>>, %arg5: memref<2x64x32xf32, #tpu.memory_space<vmem>>, %arg6: memref<9x32x64xf32, #tpu.memory_space<vmem>>, %arg7: memref<3x64xf32, #tpu.memory_space<vmem>>, %arg8: memref<9x64x64xf32, #tpu.memory_space<vmem>>, %arg9: memref<3x64xf32, #tpu.memory_space<vmem>>, %arg10: memref<32x32xf32, #tpu.memory_space<vmem>>) attributes {dimension_semantics = [#tpu.dimension_semantics<parallel>], iteration_bounds = array<i64: 1>, scalar_prefetch = 0 : i64, scratch_operands = 0 : i64, tpu.core_type = #tpu.core_type<tc>, window_params = [{transform_indices = @transform_0, window_bounds = array<i64: 64, 32>}, {pipeline_mode = #tpu.pipeline_mode<synchronous>, transform_indices = @transform_1, window_bounds = array<i64: 9, 64, 64>}, {pipeline_mode = #tpu.pipeline_mode<synchronous>, transform_indices = @transform_2, window_bounds = array<i64: 64, 64>}, {pipeline_mode = #tpu.pipeline_mode<synchronous>, transform_indices = @transform_3, window_bounds = array<i64: 2, 32, 64>}, {pipeline_mode = #tpu.pipeline_mode<synchronous>, transform_indices = @transform_4, window_bounds = array<i64: 2, 64, 32>}, {pipeline_mode = #tpu.pipeline_mode<synchronous>, transform_indices = @transform_5, window_bounds = array<i64: 9, 32, 64>}, {pipeline_mode = #tpu.pipeline_mode<synchronous>, transform_indices = @transform_6, window_bounds = array<i64: 3, 64>}, {pipeline_mode = #tpu.pipeline_mode<synchronous>, transform_indices = @transform_7, window_bounds = array<i64: 9, 64, 64>}, {pipeline_mode = #tpu.pipeline_mode<synchronous>, transform_indices = @transform_8, window_bounds = array<i64: 3, 64>}, {transform_indices = @transform_9, window_bounds = array<i64: 32, 32>}]} {
    %c0 = arith.constant 0 : index
    %c0_0 = arith.constant 0 : index
    %0 = vector.load %arg3[%c0, %c0_0] : memref<64x64xf32, #tpu.memory_space<vmem>>, vector<64x64xf32>
    %c0_1 = arith.constant 0 : index
    %c0_2 = arith.constant 0 : index
    %1 = vector.load %arg1[%c0_1, %c0_2] : memref<64x32xf32, #tpu.memory_space<vmem>>, vector<64x32xf32>
    %c0_3 = arith.constant 0 : index
    %c0_4 = arith.constant 0 : index
    %c0_5 = arith.constant 0 : index
    %2 = vector.load %arg2[%c0_3, %c0_4, %c0_5] : memref<9x64x64xf32, #tpu.memory_space<vmem>>, vector<1x64x64xf32>
    %3 = vector.shape_cast %2 : vector<1x64x64xf32> to vector<64x64xf32>
    %cst = arith.constant dense<0.000000e+00> : vector<64x32xf32>
    %4 = tpu.matmul %3, %1, %cst {dimension_numbers = #tpu.dot_dimension_numbers<[1], [0], [0], [1], [0, 0, 1, 1], [], []>} : vector<64x64xf32>, vector<64x32xf32>, vector<64x32xf32> -> vector<64x32xf32>
    %c0_6 = arith.constant 0 : index
    %c0_7 = arith.constant 0 : index
    %c0_8 = arith.constant 0 : index
    %5 = vector.load %arg6[%c0_6, %c0_7, %c0_8] : memref<9x32x64xf32, #tpu.memory_space<vmem>>, vector<1x32x64xf32>
    %6 = vector.shape_cast %5 : vector<1x32x64xf32> to vector<32x64xf32>
    %cst_9 = arith.constant dense<0.000000e+00> : vector<64x64xf32>
    %7 = tpu.matmul %4, %6, %cst_9 {dimension_numbers = #tpu.dot_dimension_numbers<[1], [0], [0], [1], [0, 0, 1, 1], [], []>} : vector<64x32xf32>, vector<32x64xf32>, vector<64x64xf32> -> vector<64x64xf32>
    %c1 = arith.constant 1 : index
    %c0_10 = arith.constant 0 : index
    %c0_11 = arith.constant 0 : index
    %8 = vector.load %arg2[%c1, %c0_10, %c0_11] : memref<9x64x64xf32, #tpu.memory_space<vmem>>, vector<1x64x64xf32>
    %9 = vector.shape_cast %8 : vector<1x64x64xf32> to vector<64x64xf32>
    %cst_12 = arith.constant dense<0.000000e+00> : vector<64x32xf32>
    %10 = tpu.matmul %9, %1, %cst_12 {dimension_numbers = #tpu.dot_dimension_numbers<[1], [0], [0], [1], [0, 0, 1, 1], [], []>} : vector<64x64xf32>, vector<64x32xf32>, vector<64x32xf32> -> vector<64x32xf32>
    %c1_13 = arith.constant 1 : index
    %c0_14 = arith.constant 0 : index
    %c0_15 = arith.constant 0 : index
    %11 = vector.load %arg6[%c1_13, %c0_14, %c0_15] : memref<9x32x64xf32, #tpu.memory_space<vmem>>, vector<1x32x64xf32>
    %12 = vector.shape_cast %11 : vector<1x32x64xf32> to vector<32x64xf32>
    %cst_16 = arith.constant dense<0.000000e+00> : vector<64x64xf32>
    %13 = tpu.matmul %10, %12, %cst_16 {dimension_numbers = #tpu.dot_dimension_numbers<[1], [0], [0], [1], [0, 0, 1, 1], [], []>} : vector<64x32xf32>, vector<32x64xf32>, vector<64x64xf32> -> vector<64x64xf32>
    %14 = arith.addf %7, %13 : vector<64x64xf32>
    %c2 = arith.constant 2 : index
    %c0_17 = arith.constant 0 : index
    %c0_18 = arith.constant 0 : index
    %15 = vector.load %arg2[%c2, %c0_17, %c0_18] : memref<9x64x64xf32, #tpu.memory_space<vmem>>, vector<1x64x64xf32>
    %16 = vector.shape_cast %15 : vector<1x64x64xf32> to vector<64x64xf32>
    %cst_19 = arith.constant dense<0.000000e+00> : vector<64x32xf32>
    %17 = tpu.matmul %16, %1, %cst_19 {dimension_numbers = #tpu.dot_dimension_numbers<[1], [0], [0], [1], [0, 0, 1, 1], [], []>} : vector<64x64xf32>, vector<64x32xf32>, vector<64x32xf32> -> vector<64x32xf32>
    %c2_20 = arith.constant 2 : index
    %c0_21 = arith.constant 0 : index
    %c0_22 = arith.constant 0 : index
    %18 = vector.load %arg6[%c2_20, %c0_21, %c0_22] : memref<9x32x64xf32, #tpu.memory_space<vmem>>, vector<1x32x64xf32>
    %19 = vector.shape_cast %18 : vector<1x32x64xf32> to vector<32x64xf32>
    %cst_23 = arith.constant dense<0.000000e+00> : vector<64x64xf32>
    %20 = tpu.matmul %17, %19, %cst_23 {dimension_numbers = #tpu.dot_dimension_numbers<[1], [0], [0], [1], [0, 0, 1, 1], [], []>} : vector<64x32xf32>, vector<32x64xf32>, vector<64x64xf32> -> vector<64x64xf32>
    %21 = arith.addf %14, %20 : vector<64x64xf32>
    %c3 = arith.constant 3 : index
    %c0_24 = arith.constant 0 : index
    %c0_25 = arith.constant 0 : index
    %22 = vector.load %arg2[%c3, %c0_24, %c0_25] : memref<9x64x64xf32, #tpu.memory_space<vmem>>, vector<1x64x64xf32>
    %23 = vector.shape_cast %22 : vector<1x64x64xf32> to vector<64x64xf32>
    %cst_26 = arith.constant dense<0.000000e+00> : vector<64x32xf32>
    %24 = tpu.matmul %23, %1, %cst_26 {dimension_numbers = #tpu.dot_dimension_numbers<[1], [0], [0], [1], [0, 0, 1, 1], [], []>} : vector<64x64xf32>, vector<64x32xf32>, vector<64x32xf32> -> vector<64x32xf32>
    %c3_27 = arith.constant 3 : index
    %c0_28 = arith.constant 0 : index
    %c0_29 = arith.constant 0 : index
    %25 = vector.load %arg6[%c3_27, %c0_28, %c0_29] : memref<9x32x64xf32, #tpu.memory_space<vmem>>, vector<1x32x64xf32>
    %26 = vector.shape_cast %25 : vector<1x32x64xf32> to vector<32x64xf32>
    %cst_30 = arith.constant dense<0.000000e+00> : vector<64x64xf32>
    %27 = tpu.matmul %24, %26, %cst_30 {dimension_numbers = #tpu.dot_dimension_numbers<[1], [0], [0], [1], [0, 0, 1, 1], [], []>} : vector<64x32xf32>, vector<32x64xf32>, vector<64x64xf32> -> vector<64x64xf32>
    %28 = arith.addf %21, %27 : vector<64x64xf32>
    %c4 = arith.constant 4 : index
    %c0_31 = arith.constant 0 : index
    %c0_32 = arith.constant 0 : index
    %29 = vector.load %arg2[%c4, %c0_31, %c0_32] : memref<9x64x64xf32, #tpu.memory_space<vmem>>, vector<1x64x64xf32>
    %30 = vector.shape_cast %29 : vector<1x64x64xf32> to vector<64x64xf32>
    %cst_33 = arith.constant dense<0.000000e+00> : vector<64x32xf32>
    %31 = tpu.matmul %30, %1, %cst_33 {dimension_numbers = #tpu.dot_dimension_numbers<[1], [0], [0], [1], [0, 0, 1, 1], [], []>} : vector<64x64xf32>, vector<64x32xf32>, vector<64x32xf32> -> vector<64x32xf32>
    %c4_34 = arith.constant 4 : index
    %c0_35 = arith.constant 0 : index
    %c0_36 = arith.constant 0 : index
    %32 = vector.load %arg6[%c4_34, %c0_35, %c0_36] : memref<9x32x64xf32, #tpu.memory_space<vmem>>, vector<1x32x64xf32>
    %33 = vector.shape_cast %32 : vector<1x32x64xf32> to vector<32x64xf32>
    %cst_37 = arith.constant dense<0.000000e+00> : vector<64x64xf32>
    %34 = tpu.matmul %31, %33, %cst_37 {dimension_numbers = #tpu.dot_dimension_numbers<[1], [0], [0], [1], [0, 0, 1, 1], [], []>} : vector<64x32xf32>, vector<32x64xf32>, vector<64x64xf32> -> vector<64x64xf32>
    %35 = arith.addf %28, %34 : vector<64x64xf32>
    %c5 = arith.constant 5 : index
    %c0_38 = arith.constant 0 : index
    %c0_39 = arith.constant 0 : index
    %36 = vector.load %arg2[%c5, %c0_38, %c0_39] : memref<9x64x64xf32, #tpu.memory_space<vmem>>, vector<1x64x64xf32>
    %37 = vector.shape_cast %36 : vector<1x64x64xf32> to vector<64x64xf32>
    %cst_40 = arith.constant dense<0.000000e+00> : vector<64x32xf32>
    %38 = tpu.matmul %37, %1, %cst_40 {dimension_numbers = #tpu.dot_dimension_numbers<[1], [0], [0], [1], [0, 0, 1, 1], [], []>} : vector<64x64xf32>, vector<64x32xf32>, vector<64x32xf32> -> vector<64x32xf32>
    %c5_41 = arith.constant 5 : index
    %c0_42 = arith.constant 0 : index
    %c0_43 = arith.constant 0 : index
    %39 = vector.load %arg6[%c5_41, %c0_42, %c0_43] : memref<9x32x64xf32, #tpu.memory_space<vmem>>, vector<1x32x64xf32>
    %40 = vector.shape_cast %39 : vector<1x32x64xf32> to vector<32x64xf32>
    %cst_44 = arith.constant dense<0.000000e+00> : vector<64x64xf32>
    %41 = tpu.matmul %38, %40, %cst_44 {dimension_numbers = #tpu.dot_dimension_numbers<[1], [0], [0], [1], [0, 0, 1, 1], [], []>} : vector<64x32xf32>, vector<32x64xf32>, vector<64x64xf32> -> vector<64x64xf32>
    %42 = arith.addf %35, %41 : vector<64x64xf32>
    %c6 = arith.constant 6 : index
    %c0_45 = arith.constant 0 : index
    %c0_46 = arith.constant 0 : index
    %43 = vector.load %arg2[%c6, %c0_45, %c0_46] : memref<9x64x64xf32, #tpu.memory_space<vmem>>, vector<1x64x64xf32>
    %44 = vector.shape_cast %43 : vector<1x64x64xf32> to vector<64x64xf32>
    %cst_47 = arith.constant dense<0.000000e+00> : vector<64x32xf32>
    %45 = tpu.matmul %44, %1, %cst_47 {dimension_numbers = #tpu.dot_dimension_numbers<[1], [0], [0], [1], [0, 0, 1, 1], [], []>} : vector<64x64xf32>, vector<64x32xf32>, vector<64x32xf32> -> vector<64x32xf32>
    %c6_48 = arith.constant 6 : index
    %c0_49 = arith.constant 0 : index
    %c0_50 = arith.constant 0 : index
    %46 = vector.load %arg6[%c6_48, %c0_49, %c0_50] : memref<9x32x64xf32, #tpu.memory_space<vmem>>, vector<1x32x64xf32>
    %47 = vector.shape_cast %46 : vector<1x32x64xf32> to vector<32x64xf32>
    %cst_51 = arith.constant dense<0.000000e+00> : vector<64x64xf32>
    %48 = tpu.matmul %45, %47, %cst_51 {dimension_numbers = #tpu.dot_dimension_numbers<[1], [0], [0], [1], [0, 0, 1, 1], [], []>} : vector<64x32xf32>, vector<32x64xf32>, vector<64x64xf32> -> vector<64x64xf32>
    %49 = arith.addf %42, %48 : vector<64x64xf32>
    %c7 = arith.constant 7 : index
    %c0_52 = arith.constant 0 : index
    %c0_53 = arith.constant 0 : index
    %50 = vector.load %arg2[%c7, %c0_52, %c0_53] : memref<9x64x64xf32, #tpu.memory_space<vmem>>, vector<1x64x64xf32>
    %51 = vector.shape_cast %50 : vector<1x64x64xf32> to vector<64x64xf32>
    %cst_54 = arith.constant dense<0.000000e+00> : vector<64x32xf32>
    %52 = tpu.matmul %51, %1, %cst_54 {dimension_numbers = #tpu.dot_dimension_numbers<[1], [0], [0], [1], [0, 0, 1, 1], [], []>} : vector<64x64xf32>, vector<64x32xf32>, vector<64x32xf32> -> vector<64x32xf32>
    %c7_55 = arith.constant 7 : index
    %c0_56 = arith.constant 0 : index
    %c0_57 = arith.constant 0 : index
    %53 = vector.load %arg6[%c7_55, %c0_56, %c0_57] : memref<9x32x64xf32, #tpu.memory_space<vmem>>, vector<1x32x64xf32>
    %54 = vector.shape_cast %53 : vector<1x32x64xf32> to vector<32x64xf32>
    %cst_58 = arith.constant dense<0.000000e+00> : vector<64x64xf32>
    %55 = tpu.matmul %52, %54, %cst_58 {dimension_numbers = #tpu.dot_dimension_numbers<[1], [0], [0], [1], [0, 0, 1, 1], [], []>} : vector<64x32xf32>, vector<32x64xf32>, vector<64x64xf32> -> vector<64x64xf32>
    %56 = arith.addf %49, %55 : vector<64x64xf32>
    %c8 = arith.constant 8 : index
    %c0_59 = arith.constant 0 : index
    %c0_60 = arith.constant 0 : index
    %57 = vector.load %arg2[%c8, %c0_59, %c0_60] : memref<9x64x64xf32, #tpu.memory_space<vmem>>, vector<1x64x64xf32>
    %58 = vector.shape_cast %57 : vector<1x64x64xf32> to vector<64x64xf32>
    %cst_61 = arith.constant dense<0.000000e+00> : vector<64x32xf32>
    %59 = tpu.matmul %58, %1, %cst_61 {dimension_numbers = #tpu.dot_dimension_numbers<[1], [0], [0], [1], [0, 0, 1, 1], [], []>} : vector<64x64xf32>, vector<64x32xf32>, vector<64x32xf32> -> vector<64x32xf32>
    %c8_62 = arith.constant 8 : index
    %c0_63 = arith.constant 0 : index
    %c0_64 = arith.constant 0 : index
    %60 = vector.load %arg6[%c8_62, %c0_63, %c0_64] : memref<9x32x64xf32, #tpu.memory_space<vmem>>, vector<1x32x64xf32>
    %61 = vector.shape_cast %60 : vector<1x32x64xf32> to vector<32x64xf32>
    %cst_65 = arith.constant dense<0.000000e+00> : vector<64x64xf32>
    %62 = tpu.matmul %59, %61, %cst_65 {dimension_numbers = #tpu.dot_dimension_numbers<[1], [0], [0], [1], [0, 0, 1, 1], [], []>} : vector<64x32xf32>, vector<32x64xf32>, vector<64x64xf32> -> vector<64x64xf32>
    %63 = arith.addf %56, %62 : vector<64x64xf32>
    %c0_66 = arith.constant 0 : index
    %c0_67 = arith.constant 0 : index
    %64 = vector.load %arg7[%c0_66, %c0_67] : memref<3x64xf32, #tpu.memory_space<vmem>>, vector<1x64xf32>
    %65 = vector.broadcast %64 : vector<1x64xf32> to vector<64x64xf32>
    %66 = arith.addf %63, %65 : vector<64x64xf32>
    %67 = vector.extract_strided_slice %66 {offsets = [0, 0], sizes = [32, 64], strides = [1, 1]} : vector<64x64xf32> to vector<32x64xf32>
    %cst_68 = arith.constant dense<0.000000e+00> : vector<64xf32>
    %68 = vector.multi_reduction <add>, %67, %cst_68 [0] : vector<32x64xf32> to vector<64xf32>
    %69 = vector.shape_cast %68 : vector<64xf32> to vector<1x64xf32>
    %70 = arith.mulf %67, %67 : vector<32x64xf32>
    %cst_69 = arith.constant dense<0.000000e+00> : vector<64xf32>
    %71 = vector.multi_reduction <add>, %70, %cst_69 [0] : vector<32x64xf32> to vector<64xf32>
    %72 = vector.shape_cast %71 : vector<64xf32> to vector<1x64xf32>
    %73 = tpu.concatenate %69, %72 in 0 : vector<1x64xf32>, vector<1x64xf32> -> vector<2x64xf32>
    %cst_70 = arith.constant dense<0.000000e+00> : vector<2x64xf32>
    %74 = tpu.matmul %73, %0, %cst_70 {dimension_numbers = #tpu.dot_dimension_numbers<[1], [0], [0], [1], [0, 0, 1, 1], [], []>} : vector<2x64xf32>, vector<64x64xf32>, vector<2x64xf32> -> vector<2x64xf32>
    %75 = vector.extract_strided_slice %74 {offsets = [0, 0], sizes = [1, 64], strides = [1, 1]} : vector<2x64xf32> to vector<1x64xf32>
    %76 = vector.extract_strided_slice %74 {offsets = [1, 0], sizes = [1, 64], strides = [1, 1]} : vector<2x64xf32> to vector<1x64xf32>
    %77 = arith.mulf %75, %75 : vector<1x64xf32>
    %78 = arith.subf %76, %77 : vector<1x64xf32>
    %79 = vector.broadcast %75 : vector<1x64xf32> to vector<32x64xf32>
    %80 = arith.subf %67, %79 : vector<32x64xf32>
    %cst_71 = arith.constant 9.99999974E-6 : f32
    %81 = vector.broadcast %cst_71 : f32 to vector<1x64xf32>
    %82 = arith.addf %78, %81 : vector<1x64xf32>
    %83 = math.rsqrt %82 : vector<1x64xf32>
    %84 = vector.broadcast %83 : vector<1x64xf32> to vector<32x64xf32>
    %85 = arith.mulf %80, %84 : vector<32x64xf32>
    %86 = vector.extract_strided_slice %66 {offsets = [32, 0], sizes = [32, 64], strides = [1, 1]} : vector<64x64xf32> to vector<32x64xf32>
    %cst_72 = arith.constant dense<0.000000e+00> : vector<64xf32>
    %87 = vector.multi_reduction <add>, %86, %cst_72 [0] : vector<32x64xf32> to vector<64xf32>
    %88 = vector.shape_cast %87 : vector<64xf32> to vector<1x64xf32>
    %89 = arith.mulf %86, %86 : vector<32x64xf32>
    %cst_73 = arith.constant dense<0.000000e+00> : vector<64xf32>
    %90 = vector.multi_reduction <add>, %89, %cst_73 [0] : vector<32x64xf32> to vector<64xf32>
    %91 = vector.shape_cast %90 : vector<64xf32> to vector<1x64xf32>
    %92 = tpu.concatenate %88, %91 in 0 : vector<1x64xf32>, vector<1x64xf32> -> vector<2x64xf32>
    %cst_74 = arith.constant dense<0.000000e+00> : vector<2x64xf32>
    %93 = tpu.matmul %92, %0, %cst_74 {dimension_numbers = #tpu.dot_dimension_numbers<[1], [0], [0], [1], [0, 0, 1, 1], [], []>} : vector<2x64xf32>, vector<64x64xf32>, vector<2x64xf32> -> vector<2x64xf32>
    %94 = vector.extract_strided_slice %93 {offsets = [0, 0], sizes = [1, 64], strides = [1, 1]} : vector<2x64xf32> to vector<1x64xf32>
    %95 = vector.extract_strided_slice %93 {offsets = [1, 0], sizes = [1, 64], strides = [1, 1]} : vector<2x64xf32> to vector<1x64xf32>
    %96 = arith.mulf %94, %94 : vector<1x64xf32>
    %97 = arith.subf %95, %96 : vector<1x64xf32>
    %98 = vector.broadcast %94 : vector<1x64xf32> to vector<32x64xf32>
    %99 = arith.subf %86, %98 : vector<32x64xf32>
    %cst_75 = arith.constant 9.99999974E-6 : f32
    %100 = vector.broadcast %cst_75 : f32 to vector<1x64xf32>
    %101 = arith.addf %97, %100 : vector<1x64xf32>
    %102 = math.rsqrt %101 : vector<1x64xf32>
    %103 = vector.broadcast %102 : vector<1x64xf32> to vector<32x64xf32>
    %104 = arith.mulf %99, %103 : vector<32x64xf32>
    %105 = tpu.concatenate %85, %104 in 0 : vector<32x64xf32>, vector<32x64xf32> -> vector<64x64xf32>
    %c1_76 = arith.constant 1 : index
    %c0_77 = arith.constant 0 : index
    %106 = vector.load %arg7[%c1_76, %c0_77] : memref<3x64xf32, #tpu.memory_space<vmem>>, vector<1x64xf32>
    %107 = vector.broadcast %106 : vector<1x64xf32> to vector<64x64xf32>
    %108 = arith.mulf %105, %107 : vector<64x64xf32>
    %c2_78 = arith.constant 2 : index
    %c0_79 = arith.constant 0 : index
    %109 = vector.load %arg7[%c2_78, %c0_79] : memref<3x64xf32, #tpu.memory_space<vmem>>, vector<1x64xf32>
    %110 = vector.broadcast %109 : vector<1x64xf32> to vector<64x64xf32>
    %111 = arith.addf %108, %110 : vector<64x64xf32>
    %cst_80 = arith.constant 0.000000e+00 : f32
    %112 = vector.broadcast %cst_80 : f32 to vector<64x64xf32>
    %113 = arith.cmpf oge, %111, %112 : vector<64x64xf32>
    %cst_81 = arith.constant 0.00999999977 : f32
    %114 = vector.broadcast %cst_81 : f32 to vector<64x64xf32>
    %115 = arith.mulf %114, %111 : vector<64x64xf32>
    %116 = arith.select %113, %111, %115 : vector<64x64xi1>, vector<64x64xf32>
    %c0_82 = arith.constant 0 : index
    %c0_83 = arith.constant 0 : index
    %c0_84 = arith.constant 0 : index
    %117 = vector.load %arg2[%c0_82, %c0_83, %c0_84] : memref<9x64x64xf32, #tpu.memory_space<vmem>>, vector<1x64x64xf32>
    %118 = vector.shape_cast %117 : vector<1x64x64xf32> to vector<64x64xf32>
    %cst_85 = arith.constant dense<0.000000e+00> : vector<64x64xf32>
    %119 = tpu.matmul %118, %116, %cst_85 {dimension_numbers = #tpu.dot_dimension_numbers<[1], [0], [0], [1], [0, 0, 1, 1], [], []>} : vector<64x64xf32>, vector<64x64xf32>, vector<64x64xf32> -> vector<64x64xf32>
    %c0_86 = arith.constant 0 : index
    %c0_87 = arith.constant 0 : index
    %c0_88 = arith.constant 0 : index
    %120 = vector.load %arg8[%c0_86, %c0_87, %c0_88] : memref<9x64x64xf32, #tpu.memory_space<vmem>>, vector<1x64x64xf32>
    %121 = vector.shape_cast %120 : vector<1x64x64xf32> to vector<64x64xf32>
    %cst_89 = arith.constant dense<0.000000e+00> : vector<64x64xf32>
    %122 = tpu.matmul %119, %121, %cst_89 {dimension_numbers = #tpu.dot_dimension_numbers<[1], [0], [0], [1], [0, 0, 1, 1], [], []>} : vector<64x64xf32>, vector<64x64xf32>, vector<64x64xf32> -> vector<64x64xf32>
    %c1_90 = arith.constant 1 : index
    %c0_91 = arith.constant 0 : index
    %c0_92 = arith.constant 0 : index
    %123 = vector.load %arg2[%c1_90, %c0_91, %c0_92] : memref<9x64x64xf32, #tpu.memory_space<vmem>>, vector<1x64x64xf32>
    %124 = vector.shape_cast %123 : vector<1x64x64xf32> to vector<64x64xf32>
    %cst_93 = arith.constant dense<0.000000e+00> : vector<64x64xf32>
    %125 = tpu.matmul %124, %116, %cst_93 {dimension_numbers = #tpu.dot_dimension_numbers<[1], [0], [0], [1], [0, 0, 1, 1], [], []>} : vector<64x64xf32>, vector<64x64xf32>, vector<64x64xf32> -> vector<64x64xf32>
    %c1_94 = arith.constant 1 : index
    %c0_95 = arith.constant 0 : index
    %c0_96 = arith.constant 0 : index
    %126 = vector.load %arg8[%c1_94, %c0_95, %c0_96] : memref<9x64x64xf32, #tpu.memory_space<vmem>>, vector<1x64x64xf32>
    %127 = vector.shape_cast %126 : vector<1x64x64xf32> to vector<64x64xf32>
    %cst_97 = arith.constant dense<0.000000e+00> : vector<64x64xf32>
    %128 = tpu.matmul %125, %127, %cst_97 {dimension_numbers = #tpu.dot_dimension_numbers<[1], [0], [0], [1], [0, 0, 1, 1], [], []>} : vector<64x64xf32>, vector<64x64xf32>, vector<64x64xf32> -> vector<64x64xf32>
    %129 = arith.addf %122, %128 : vector<64x64xf32>
    %c2_98 = arith.constant 2 : index
    %c0_99 = arith.constant 0 : index
    %c0_100 = arith.constant 0 : index
    %130 = vector.load %arg2[%c2_98, %c0_99, %c0_100] : memref<9x64x64xf32, #tpu.memory_space<vmem>>, vector<1x64x64xf32>
    %131 = vector.shape_cast %130 : vector<1x64x64xf32> to vector<64x64xf32>
    %cst_101 = arith.constant dense<0.000000e+00> : vector<64x64xf32>
    %132 = tpu.matmul %131, %116, %cst_101 {dimension_numbers = #tpu.dot_dimension_numbers<[1], [0], [0], [1], [0, 0, 1, 1], [], []>} : vector<64x64xf32>, vector<64x64xf32>, vector<64x64xf32> -> vector<64x64xf32>
    %c2_102 = arith.constant 2 : index
    %c0_103 = arith.constant 0 : index
    %c0_104 = arith.constant 0 : index
    %133 = vector.load %arg8[%c2_102, %c0_103, %c0_104] : memref<9x64x64xf32, #tpu.memory_space<vmem>>, vector<1x64x64xf32>
    %134 = vector.shape_cast %133 : vector<1x64x64xf32> to vector<64x64xf32>
    %cst_105 = arith.constant dense<0.000000e+00> : vector<64x64xf32>
    %135 = tpu.matmul %132, %134, %cst_105 {dimension_numbers = #tpu.dot_dimension_numbers<[1], [0], [0], [1], [0, 0, 1, 1], [], []>} : vector<64x64xf32>, vector<64x64xf32>, vector<64x64xf32> -> vector<64x64xf32>
    %136 = arith.addf %129, %135 : vector<64x64xf32>
    %c3_106 = arith.constant 3 : index
    %c0_107 = arith.constant 0 : index
    %c0_108 = arith.constant 0 : index
    %137 = vector.load %arg2[%c3_106, %c0_107, %c0_108] : memref<9x64x64xf32, #tpu.memory_space<vmem>>, vector<1x64x64xf32>
    %138 = vector.shape_cast %137 : vector<1x64x64xf32> to vector<64x64xf32>
    %cst_109 = arith.constant dense<0.000000e+00> : vector<64x64xf32>
    %139 = tpu.matmul %138, %116, %cst_109 {dimension_numbers = #tpu.dot_dimension_numbers<[1], [0], [0], [1], [0, 0, 1, 1], [], []>} : vector<64x64xf32>, vector<64x64xf32>, vector<64x64xf32> -> vector<64x64xf32>
    %c3_110 = arith.constant 3 : index
    %c0_111 = arith.constant 0 : index
    %c0_112 = arith.constant 0 : index
    %140 = vector.load %arg8[%c3_110, %c0_111, %c0_112] : memref<9x64x64xf32, #tpu.memory_space<vmem>>, vector<1x64x64xf32>
    %141 = vector.shape_cast %140 : vector<1x64x64xf32> to vector<64x64xf32>
    %cst_113 = arith.constant dense<0.000000e+00> : vector<64x64xf32>
    %142 = tpu.matmul %139, %141, %cst_113 {dimension_numbers = #tpu.dot_dimension_numbers<[1], [0], [0], [1], [0, 0, 1, 1], [], []>} : vector<64x64xf32>, vector<64x64xf32>, vector<64x64xf32> -> vector<64x64xf32>
    %143 = arith.addf %136, %142 : vector<64x64xf32>
    %c4_114 = arith.constant 4 : index
    %c0_115 = arith.constant 0 : index
    %c0_116 = arith.constant 0 : index
    %144 = vector.load %arg2[%c4_114, %c0_115, %c0_116] : memref<9x64x64xf32, #tpu.memory_space<vmem>>, vector<1x64x64xf32>
    %145 = vector.shape_cast %144 : vector<1x64x64xf32> to vector<64x64xf32>
    %cst_117 = arith.constant dense<0.000000e+00> : vector<64x64xf32>
    %146 = tpu.matmul %145, %116, %cst_117 {dimension_numbers = #tpu.dot_dimension_numbers<[1], [0], [0], [1], [0, 0, 1, 1], [], []>} : vector<64x64xf32>, vector<64x64xf32>, vector<64x64xf32> -> vector<64x64xf32>
    %c4_118 = arith.constant 4 : index
    %c0_119 = arith.constant 0 : index
    %c0_120 = arith.constant 0 : index
    %147 = vector.load %arg8[%c4_118, %c0_119, %c0_120] : memref<9x64x64xf32, #tpu.memory_space<vmem>>, vector<1x64x64xf32>
    %148 = vector.shape_cast %147 : vector<1x64x64xf32> to vector<64x64xf32>
    %cst_121 = arith.constant dense<0.000000e+00> : vector<64x64xf32>
    %149 = tpu.matmul %146, %148, %cst_121 {dimension_numbers = #tpu.dot_dimension_numbers<[1], [0], [0], [1], [0, 0, 1, 1], [], []>} : vector<64x64xf32>, vector<64x64xf32>, vector<64x64xf32> -> vector<64x64xf32>
    %150 = arith.addf %143, %149 : vector<64x64xf32>
    %c5_122 = arith.constant 5 : index
    %c0_123 = arith.constant 0 : index
    %c0_124 = arith.constant 0 : index
    %151 = vector.load %arg2[%c5_122, %c0_123, %c0_124] : memref<9x64x64xf32, #tpu.memory_space<vmem>>, vector<1x64x64xf32>
    %152 = vector.shape_cast %151 : vector<1x64x64xf32> to vector<64x64xf32>
    %cst_125 = arith.constant dense<0.000000e+00> : vector<64x64xf32>
    %153 = tpu.matmul %152, %116, %cst_125 {dimension_numbers = #tpu.dot_dimension_numbers<[1], [0], [0], [1], [0, 0, 1, 1], [], []>} : vector<64x64xf32>, vector<64x64xf32>, vector<64x64xf32> -> vector<64x64xf32>
    %c5_126 = arith.constant 5 : index
    %c0_127 = arith.constant 0 : index
    %c0_128 = arith.constant 0 : index
    %154 = vector.load %arg8[%c5_126, %c0_127, %c0_128] : memref<9x64x64xf32, #tpu.memory_space<vmem>>, vector<1x64x64xf32>
    %155 = vector.shape_cast %154 : vector<1x64x64xf32> to vector<64x64xf32>
    %cst_129 = arith.constant dense<0.000000e+00> : vector<64x64xf32>
    %156 = tpu.matmul %153, %155, %cst_129 {dimension_numbers = #tpu.dot_dimension_numbers<[1], [0], [0], [1], [0, 0, 1, 1], [], []>} : vector<64x64xf32>, vector<64x64xf32>, vector<64x64xf32> -> vector<64x64xf32>
    %157 = arith.addf %150, %156 : vector<64x64xf32>
    %c6_130 = arith.constant 6 : index
    %c0_131 = arith.constant 0 : index
    %c0_132 = arith.constant 0 : index
    %158 = vector.load %arg2[%c6_130, %c0_131, %c0_132] : memref<9x64x64xf32, #tpu.memory_space<vmem>>, vector<1x64x64xf32>
    %159 = vector.shape_cast %158 : vector<1x64x64xf32> to vector<64x64xf32>
    %cst_133 = arith.constant dense<0.000000e+00> : vector<64x64xf32>
    %160 = tpu.matmul %159, %116, %cst_133 {dimension_numbers = #tpu.dot_dimension_numbers<[1], [0], [0], [1], [0, 0, 1, 1], [], []>} : vector<64x64xf32>, vector<64x64xf32>, vector<64x64xf32> -> vector<64x64xf32>
    %c6_134 = arith.constant 6 : index
    %c0_135 = arith.constant 0 : index
    %c0_136 = arith.constant 0 : index
    %161 = vector.load %arg8[%c6_134, %c0_135, %c0_136] : memref<9x64x64xf32, #tpu.memory_space<vmem>>, vector<1x64x64xf32>
    %162 = vector.shape_cast %161 : vector<1x64x64xf32> to vector<64x64xf32>
    %cst_137 = arith.constant dense<0.000000e+00> : vector<64x64xf32>
    %163 = tpu.matmul %160, %162, %cst_137 {dimension_numbers = #tpu.dot_dimension_numbers<[1], [0], [0], [1], [0, 0, 1, 1], [], []>} : vector<64x64xf32>, vector<64x64xf32>, vector<64x64xf32> -> vector<64x64xf32>
    %164 = arith.addf %157, %163 : vector<64x64xf32>
    %c7_138 = arith.constant 7 : index
    %c0_139 = arith.constant 0 : index
    %c0_140 = arith.constant 0 : index
    %165 = vector.load %arg2[%c7_138, %c0_139, %c0_140] : memref<9x64x64xf32, #tpu.memory_space<vmem>>, vector<1x64x64xf32>
    %166 = vector.shape_cast %165 : vector<1x64x64xf32> to vector<64x64xf32>
    %cst_141 = arith.constant dense<0.000000e+00> : vector<64x64xf32>
    %167 = tpu.matmul %166, %116, %cst_141 {dimension_numbers = #tpu.dot_dimension_numbers<[1], [0], [0], [1], [0, 0, 1, 1], [], []>} : vector<64x64xf32>, vector<64x64xf32>, vector<64x64xf32> -> vector<64x64xf32>
    %c7_142 = arith.constant 7 : index
    %c0_143 = arith.constant 0 : index
    %c0_144 = arith.constant 0 : index
    %168 = vector.load %arg8[%c7_142, %c0_143, %c0_144] : memref<9x64x64xf32, #tpu.memory_space<vmem>>, vector<1x64x64xf32>
    %169 = vector.shape_cast %168 : vector<1x64x64xf32> to vector<64x64xf32>
    %cst_145 = arith.constant dense<0.000000e+00> : vector<64x64xf32>
    %170 = tpu.matmul %167, %169, %cst_145 {dimension_numbers = #tpu.dot_dimension_numbers<[1], [0], [0], [1], [0, 0, 1, 1], [], []>} : vector<64x64xf32>, vector<64x64xf32>, vector<64x64xf32> -> vector<64x64xf32>
    %171 = arith.addf %164, %170 : vector<64x64xf32>
    %c8_146 = arith.constant 8 : index
    %c0_147 = arith.constant 0 : index
    %c0_148 = arith.constant 0 : index
    %172 = vector.load %arg2[%c8_146, %c0_147, %c0_148] : memref<9x64x64xf32, #tpu.memory_space<vmem>>, vector<1x64x64xf32>
    %173 = vector.shape_cast %172 : vector<1x64x64xf32> to vector<64x64xf32>
    %cst_149 = arith.constant dense<0.000000e+00> : vector<64x64xf32>
    %174 = tpu.matmul %173, %116, %cst_149 {dimension_numbers = #tpu.dot_dimension_numbers<[1], [0], [0], [1], [0, 0, 1, 1], [], []>} : vector<64x64xf32>, vector<64x64xf32>, vector<64x64xf32> -> vector<64x64xf32>
    %c8_150 = arith.constant 8 : index
    %c0_151 = arith.constant 0 : index
    %c0_152 = arith.constant 0 : index
    %175 = vector.load %arg8[%c8_150, %c0_151, %c0_152] : memref<9x64x64xf32, #tpu.memory_space<vmem>>, vector<1x64x64xf32>
    %176 = vector.shape_cast %175 : vector<1x64x64xf32> to vector<64x64xf32>
    %cst_153 = arith.constant dense<0.000000e+00> : vector<64x64xf32>
    %177 = tpu.matmul %174, %176, %cst_153 {dimension_numbers = #tpu.dot_dimension_numbers<[1], [0], [0], [1], [0, 0, 1, 1], [], []>} : vector<64x64xf32>, vector<64x64xf32>, vector<64x64xf32> -> vector<64x64xf32>
    %178 = arith.addf %171, %177 : vector<64x64xf32>
    %c0_154 = arith.constant 0 : index
    %c0_155 = arith.constant 0 : index
    %179 = vector.load %arg9[%c0_154, %c0_155] : memref<3x64xf32, #tpu.memory_space<vmem>>, vector<1x64xf32>
    %180 = vector.broadcast %179 : vector<1x64xf32> to vector<64x64xf32>
    %181 = arith.addf %178, %180 : vector<64x64xf32>
    %182 = vector.extract_strided_slice %181 {offsets = [0, 0], sizes = [32, 64], strides = [1, 1]} : vector<64x64xf32> to vector<32x64xf32>
    %cst_156 = arith.constant dense<0.000000e+00> : vector<64xf32>
    %183 = vector.multi_reduction <add>, %182, %cst_156 [0] : vector<32x64xf32> to vector<64xf32>
    %184 = vector.shape_cast %183 : vector<64xf32> to vector<1x64xf32>
    %185 = arith.mulf %182, %182 : vector<32x64xf32>
    %cst_157 = arith.constant dense<0.000000e+00> : vector<64xf32>
    %186 = vector.multi_reduction <add>, %185, %cst_157 [0] : vector<32x64xf32> to vector<64xf32>
    %187 = vector.shape_cast %186 : vector<64xf32> to vector<1x64xf32>
    %188 = tpu.concatenate %184, %187 in 0 : vector<1x64xf32>, vector<1x64xf32> -> vector<2x64xf32>
    %cst_158 = arith.constant dense<0.000000e+00> : vector<2x64xf32>
    %189 = tpu.matmul %188, %0, %cst_158 {dimension_numbers = #tpu.dot_dimension_numbers<[1], [0], [0], [1], [0, 0, 1, 1], [], []>} : vector<2x64xf32>, vector<64x64xf32>, vector<2x64xf32> -> vector<2x64xf32>
    %190 = vector.extract_strided_slice %189 {offsets = [0, 0], sizes = [1, 64], strides = [1, 1]} : vector<2x64xf32> to vector<1x64xf32>
    %191 = vector.extract_strided_slice %189 {offsets = [1, 0], sizes = [1, 64], strides = [1, 1]} : vector<2x64xf32> to vector<1x64xf32>
    %192 = arith.mulf %190, %190 : vector<1x64xf32>
    %193 = arith.subf %191, %192 : vector<1x64xf32>
    %194 = vector.broadcast %190 : vector<1x64xf32> to vector<32x64xf32>
    %195 = arith.subf %182, %194 : vector<32x64xf32>
    %cst_159 = arith.constant 9.99999974E-6 : f32
    %196 = vector.broadcast %cst_159 : f32 to vector<1x64xf32>
    %197 = arith.addf %193, %196 : vector<1x64xf32>
    %198 = math.rsqrt %197 : vector<1x64xf32>
    %199 = vector.broadcast %198 : vector<1x64xf32> to vector<32x64xf32>
    %200 = arith.mulf %195, %199 : vector<32x64xf32>
    %201 = vector.extract_strided_slice %181 {offsets = [32, 0], sizes = [32, 64], strides = [1, 1]} : vector<64x64xf32> to vector<32x64xf32>
    %cst_160 = arith.constant dense<0.000000e+00> : vector<64xf32>
    %202 = vector.multi_reduction <add>, %201, %cst_160 [0] : vector<32x64xf32> to vector<64xf32>
    %203 = vector.shape_cast %202 : vector<64xf32> to vector<1x64xf32>
    %204 = arith.mulf %201, %201 : vector<32x64xf32>
    %cst_161 = arith.constant dense<0.000000e+00> : vector<64xf32>
    %205 = vector.multi_reduction <add>, %204, %cst_161 [0] : vector<32x64xf32> to vector<64xf32>
    %206 = vector.shape_cast %205 : vector<64xf32> to vector<1x64xf32>
    %207 = tpu.concatenate %203, %206 in 0 : vector<1x64xf32>, vector<1x64xf32> -> vector<2x64xf32>
    %cst_162 = arith.constant dense<0.000000e+00> : vector<2x64xf32>
    %208 = tpu.matmul %207, %0, %cst_162 {dimension_numbers = #tpu.dot_dimension_numbers<[1], [0], [0], [1], [0, 0, 1, 1], [], []>} : vector<2x64xf32>, vector<64x64xf32>, vector<2x64xf32> -> vector<2x64xf32>
    %209 = vector.extract_strided_slice %208 {offsets = [0, 0], sizes = [1, 64], strides = [1, 1]} : vector<2x64xf32> to vector<1x64xf32>
    %210 = vector.extract_strided_slice %208 {offsets = [1, 0], sizes = [1, 64], strides = [1, 1]} : vector<2x64xf32> to vector<1x64xf32>
    %211 = arith.mulf %209, %209 : vector<1x64xf32>
    %212 = arith.subf %210, %211 : vector<1x64xf32>
    %213 = vector.broadcast %209 : vector<1x64xf32> to vector<32x64xf32>
    %214 = arith.subf %201, %213 : vector<32x64xf32>
    %cst_163 = arith.constant 9.99999974E-6 : f32
    %215 = vector.broadcast %cst_163 : f32 to vector<1x64xf32>
    %216 = arith.addf %212, %215 : vector<1x64xf32>
    %217 = math.rsqrt %216 : vector<1x64xf32>
    %218 = vector.broadcast %217 : vector<1x64xf32> to vector<32x64xf32>
    %219 = arith.mulf %214, %218 : vector<32x64xf32>
    %220 = tpu.concatenate %200, %219 in 0 : vector<32x64xf32>, vector<32x64xf32> -> vector<64x64xf32>
    %c1_164 = arith.constant 1 : index
    %c0_165 = arith.constant 0 : index
    %221 = vector.load %arg9[%c1_164, %c0_165] : memref<3x64xf32, #tpu.memory_space<vmem>>, vector<1x64xf32>
    %222 = vector.broadcast %221 : vector<1x64xf32> to vector<64x64xf32>
    %223 = arith.mulf %220, %222 : vector<64x64xf32>
    %c2_166 = arith.constant 2 : index
    %c0_167 = arith.constant 0 : index
    %224 = vector.load %arg9[%c2_166, %c0_167] : memref<3x64xf32, #tpu.memory_space<vmem>>, vector<1x64xf32>
    %225 = vector.broadcast %224 : vector<1x64xf32> to vector<64x64xf32>
    %226 = arith.addf %223, %225 : vector<64x64xf32>
    %cst_168 = arith.constant 0.000000e+00 : f32
    %227 = vector.broadcast %cst_168 : f32 to vector<64x64xf32>
    %228 = arith.cmpf oge, %226, %227 : vector<64x64xf32>
    %cst_169 = arith.constant 0.00999999977 : f32
    %229 = vector.broadcast %cst_169 : f32 to vector<64x64xf32>
    %230 = arith.mulf %229, %226 : vector<64x64xf32>
    %231 = arith.select %228, %226, %230 : vector<64x64xi1>, vector<64x64xf32>
    %c0_170 = arith.constant 0 : index
    %c0_171 = arith.constant 0 : index
    %c0_172 = arith.constant 0 : index
    %232 = vector.load %arg4[%c0_170, %c0_171, %c0_172] : memref<2x32x64xf32, #tpu.memory_space<vmem>>, vector<1x32x64xf32>
    %233 = vector.shape_cast %232 : vector<1x32x64xf32> to vector<32x64xf32>
    %cst_173 = arith.constant dense<0.000000e+00> : vector<32x64xf32>
    %234 = tpu.matmul %233, %231, %cst_173 {dimension_numbers = #tpu.dot_dimension_numbers<[1], [0], [0], [1], [0, 0, 1, 1], [], []>} : vector<32x64xf32>, vector<64x64xf32>, vector<32x64xf32> -> vector<32x64xf32>
    %c1_174 = arith.constant 1 : index
    %c0_175 = arith.constant 0 : index
    %c0_176 = arith.constant 0 : index
    %235 = vector.load %arg4[%c1_174, %c0_175, %c0_176] : memref<2x32x64xf32, #tpu.memory_space<vmem>>, vector<1x32x64xf32>
    %236 = vector.shape_cast %235 : vector<1x32x64xf32> to vector<32x64xf32>
    %cst_177 = arith.constant dense<0.000000e+00> : vector<32x64xf32>
    %237 = tpu.matmul %236, %231, %cst_177 {dimension_numbers = #tpu.dot_dimension_numbers<[1], [0], [0], [1], [0, 0, 1, 1], [], []>} : vector<32x64xf32>, vector<64x64xf32>, vector<32x64xf32> -> vector<32x64xf32>
    %238 = arith.maximumf %234, %237 : vector<32x64xf32>
    %c0_178 = arith.constant 0 : index
    %c0_179 = arith.constant 0 : index
    %c0_180 = arith.constant 0 : index
    %239 = vector.load %arg5[%c0_178, %c0_179, %c0_180] : memref<2x64x32xf32, #tpu.memory_space<vmem>>, vector<1x64x32xf32>
    %240 = vector.shape_cast %239 : vector<1x64x32xf32> to vector<64x32xf32>
    %cst_181 = arith.constant dense<0.000000e+00> : vector<32x32xf32>
    %241 = tpu.matmul %238, %240, %cst_181 {dimension_numbers = #tpu.dot_dimension_numbers<[1], [0], [0], [1], [0, 0, 1, 1], [], []>} : vector<32x64xf32>, vector<64x32xf32>, vector<32x32xf32> -> vector<32x32xf32>
    %c1_182 = arith.constant 1 : index
    %c0_183 = arith.constant 0 : index
    %c0_184 = arith.constant 0 : index
    %242 = vector.load %arg5[%c1_182, %c0_183, %c0_184] : memref<2x64x32xf32, #tpu.memory_space<vmem>>, vector<1x64x32xf32>
    %243 = vector.shape_cast %242 : vector<1x64x32xf32> to vector<64x32xf32>
    %cst_185 = arith.constant dense<0.000000e+00> : vector<32x32xf32>
    %244 = tpu.matmul %238, %243, %cst_185 {dimension_numbers = #tpu.dot_dimension_numbers<[1], [0], [0], [1], [0, 0, 1, 1], [], []>} : vector<32x64xf32>, vector<64x32xf32>, vector<32x32xf32> -> vector<32x32xf32>
    %245 = arith.maximumf %241, %244 : vector<32x32xf32>
    %c0_186 = arith.constant 0 : index
    %c0_187 = arith.constant 0 : index
    %246 = vector.load %arg10[%c0_186, %c0_187] : memref<32x32xf32, #tpu.memory_space<vmem>>, vector<32x32xf32>
    tpu.vector_store %arg10[%c0_186, %c0_187], %245 {strides = array<i32>} : memref<32x32xf32, #tpu.memory_space<vmem>>, vector<32x32xf32>,
    return
  }
  func.func @transform_0(%arg0: i32) -> (i32, i32) {
    %c0_i32 = arith.constant 0 : i32
    %c0_i32_0 = arith.constant 0 : i32
    return %arg0, %c0_i32 : i32, i32
  }
  func.func @transform_1(%arg0: i32) -> (i32, i32, i32) {
    %c0_i32 = arith.constant 0 : i32
    %c0_i32_0 = arith.constant 0 : i32
    %c0_i32_1 = arith.constant 0 : i32
    %c0_i32_2 = arith.constant 0 : i32
    return %c0_i32, %c0_i32_0, %c0_i32_1 : i32, i32, i32
  }
  func.func @transform_2(%arg0: i32) -> (i32, i32) {
    %c0_i32 = arith.constant 0 : i32
    %c0_i32_0 = arith.constant 0 : i32
    %c0_i32_1 = arith.constant 0 : i32
    return %c0_i32, %c0_i32_0 : i32, i32
  }
  func.func @transform_3(%arg0: i32) -> (i32, i32, i32) {
    %c0_i32 = arith.constant 0 : i32
    %c0_i32_0 = arith.constant 0 : i32
    %c0_i32_1 = arith.constant 0 : i32
    %c0_i32_2 = arith.constant 0 : i32
    return %c0_i32, %c0_i32_0, %c0_i32_1 : i32, i32, i32
  }
  func.func @transform_4(%arg0: i32) -> (i32, i32, i32) {
    %c0_i32 = arith.constant 0 : i32
    %c0_i32_0 = arith.constant 0 : i32
    %c0_i32_1 = arith.constant 0 : i32
    %c0_i32_2 = arith.constant 0 : i32
    return %c0_i32, %c0_i32_0, %c0_i32_1 : i32, i32, i32
  }
  func.func @transform_5(%arg0: i32) -> (i32, i32, i32) {
    %c0_i32 = arith.constant 0 : i32
    %c0_i32_0 = arith.constant 0 : i32
    %c0_i32_1 = arith.constant 0 : i32
    %c0_i32_2 = arith.constant 0 : i32
    return %c0_i32, %c0_i32_0, %c0_i32_1 : i32, i32, i32
  }
  func.func @transform_6(%arg0: i32) -> (i32, i32) {
    %c0_i32 = arith.constant 0 : i32
    %c0_i32_0 = arith.constant 0 : i32
    %c0_i32_1 = arith.constant 0 : i32
    return %c0_i32, %c0_i32_0 : i32, i32
  }
  func.func @transform_7(%arg0: i32) -> (i32, i32, i32) {
    %c0_i32 = arith.constant 0 : i32
    %c0_i32_0 = arith.constant 0 : i32
    %c0_i32_1 = arith.constant 0 : i32
    %c0_i32_2 = arith.constant 0 : i32
    return %c0_i32, %c0_i32_0, %c0_i32_1 : i32, i32, i32
  }
  func.func @transform_8(%arg0: i32) -> (i32, i32) {
    %c0_i32 = arith.constant 0 : i32
    %c0_i32_0 = arith.constant 0 : i32
    %c0_i32_1 = arith.constant 0 : i32
    return %c0_i32, %c0_i32_0 : i32, i32
  }
  func.func @transform_9(%arg0: i32) -> (i32, i32) {
    %c0_i32 = arith.constant 0 : i32
    %c0_i32_0 = arith.constant 0 : i32
    return %arg0, %c0_i32 : i32, i32
  }
}

</mosaic_0001>

<bundles_post_ra>
// kernel: tpu_custom_call.1
= control target key start
LH: loop header
LB: loop body
LE: loop exit
PB: predicated region body
PF: predicated region fallthrough
CT: control target
= control target key end

     0   :  { %14 = vsyncpa [#allocation3], 0  ;;  %s9448_s0 = inlined_call_operand.vmem [shape: f32[64,32], index: 0, kind: input, shape index: {}]   ;;  %s9449_s1 = inlined_call_operand.hbm [shape: f32[9,64,64], index: 1, kind: input, shape index: {}]   ;;  %s9450_s2 = inlined_call_operand.hbm [shape: f32[64,64], index: 2, kind: input, shape index: {}]   ;;  %s9451_s3 = inlined_call_operand.hbm [shape: f32[2,32,64], index: 3, kind: input, shape index: {}]   ;;  %s9452_s4 = inlined_call_operand.vmem [shape: f32[2,64,32], index: 4, kind: input, shape index: {}]   ;;  %s9453_s5 = inlined_call_operand.vmem [shape: f32[9,32,64], index: 5, kind: input, shape index: {}]   ;;  %s9454_s6 = inlined_call_operand.vmem [shape: f32[3,64], index: 6, kind: input, shape index: {}]   ;;  %s9455_s7 = inlined_call_operand.hbm [shape: f32[9,64,64], index: 7, kind: input, shape index: {}]   ;;  %s9456_s8 = inlined_call_operand.vmem [shape: f32[3,64], index: 8, kind: input, shape index: {}]   ;;  %s9457_s9 = inlined_call_operand.hbm [shape: f32[32,32], index: 9, kind: output, shape index: {}]  }
   0x1   :  { %15 = vsyncpa [#allocation6], 0 }
   0x2   :  { %16 = vsyncpa [#allocation9], 0 }
   0x3   :  { %17 = vsyncpa [#allocation4], 0  ;;  %s8201_s30 = smov [#allocation5]   ;;  %s8202_s11 = smov [#allocation2]  }
   0x4   :  { %s37_s10 = sshll.u32 %s8201_s30, 4  ;;  %s25_s12 = sshll.u32 %s8202_s11, 4  ;;  %s38_s10 = int_to_ptr.vmem [resolvable:$true] %s37_s10  ;;  %s26_s12 = int_to_ptr.vmem [resolvable:$true] %s25_s12 }
   0x5   :  { %s8101_s13 = scalar_lea.vmem %s38_s10, 1024  ;;  %p8106_p1 = scmp.lt.s32.totalorder %s38_s10, %s38_s10 }
   0x6   :  { %p8102_p0 = scmp.ne.s32.totalorder %s38_s10, %s8101_s13  ;;  %p8107_p2 = scmp.lt.s32.totalorder %s8101_s13, %s8101_s13 }
   0x8   :  { %p8108_p3 = por %p8107_p2, %p8106_p1 }
   0xa   :  { %p8109_p4 = pnand %p8108_p3, %p8102_p0 }
   0xc   :  { %8112 = shalt.err (!%p8109_p4)
}
   0xd   :  { %s8203_s14 = smov 128   ;;  %s8204_s15 = smov 8  }
   0xe   :  { %43 = dma.hbm_to_vmem [thread:$0]  %s9450_s2, 1024, %s38_s10, [#allocation6], %s8203_s14, %s8203_s14, %s8204_s15  }
   0xf   :  { %s8121_s18 = scalar_lea.vmem %s26_s12, 9216  ;;  %p8126_p6 = scmp.lt.s32.totalorder %s26_s12, %s26_s12 }
  0x10   :  { %p8122_p5 = scmp.ne.s32.totalorder %s26_s12, %s8121_s18  ;;  %p8127_p7 = scmp.lt.s32.totalorder %s8121_s18, %s8121_s18 }
  0x12   :  { %p8128_p8 = por %p8127_p7, %p8126_p6 }
  0x14   :  { %p8129_p9 = pnand %p8128_p8, %p8122_p5 }
  0x16   :  { %8132 = shalt.err (!%p8129_p9)
}
  0x17   :  { %31 = dma.hbm_to_vmem [thread:$0]  %s9449_s1, 9216, %s26_s12, [#allocation3], %s8203_s14, %s8203_s14, %s8204_s15  }
  0x18   :  { %s8205_s21 = smov [#allocation7]   ;;  %s8206_s23 = smov [#allocation8]  }
  0x19   :  { %s49_s22 = sshll.u32 %s8205_s21, 4  ;;  %s67_s24 = sshll.u32 %s8206_s23, 4  ;;  %s50_s22 = int_to_ptr.vmem [resolvable:$true] %s49_s22  ;;  %s68_s24 = int_to_ptr.vmem [resolvable:$true] %s67_s24 }
  0x1a   :  { %s8141_s2 = scalar_lea.vmem %s50_s22, 1024  ;;  %p8146_p11 = scmp.lt.s32.totalorder %s50_s22, %s50_s22 }
  0x1b   :  { %p8142_p10 = scmp.ne.s32.totalorder %s50_s22, %s8141_s2  ;;  %p8147_p12 = scmp.lt.s32.totalorder %s8141_s2, %s8141_s2 }
  0x1d   :  { %p8148_p13 = por %p8147_p12, %p8146_p11 }
  0x1f   :  { %p8149_p0 = pnand %p8148_p13, %p8142_p10 }
  0x21   :  { %8152 = shalt.err (!%p8149_p0)
}
  0x22   :  { %55 = dma.hbm_to_vmem [thread:$0]  %s9451_s3, 1024, %s50_s22, [#allocation6], %s8203_s14, %s8203_s14, %s8204_s15  }
  0x23   :  { %s8161_s1 = scalar_lea.vmem %s68_s24, 9216  ;;  %p8166_p2 = scmp.lt.s32.totalorder %s68_s24, %s68_s24 }
  0x24   :  { %p8162_p1 = scmp.ne.s32.totalorder %s68_s24, %s8161_s1  ;;  %p8167_p3 = scmp.lt.s32.totalorder %s8161_s1, %s8161_s1 }
  0x26   :  { %p8168_p4 = por %p8167_p3, %p8166_p2 }
  0x28   :  { %p8169_p5 = pnand %p8168_p4, %p8162_p1 }
  0x2a   :  { %8172 = shalt.err (!%p8169_p5)
}
  0x2b   :  { %73 = dma.hbm_to_vmem [thread:$0]  %s9455_s7, 9216, %s68_s24, [#allocation9], %s8203_s14, %s8203_s14, %s8204_s15  }
  0x2c   :  { %8193 = dma.done.wait [#allocation3], 9216  }
  0x2d   :  { %8194 = vsyncadd [#allocation3], 4294958080 }
  0x2e   :  { %8195 = dma.done.wait [#allocation6], 2048  }
  0x2f   :  { %8196 = vsyncadd [#allocation6], 4294965248 }
  0x30   :  { %8197 = dma.done.wait [#allocation9], 9216  }
  0x31   :  { %8198 = vsyncadd [#allocation9], 4294958080  ;;  %v8287_v0 = vld [vmem:[%s9448_s0 + $0x38] sm:$0xff]  ;;  %v8292_v1 = vld [vmem:[%s9448_s0 + $0x30] sm:$0xff]  ;;  %vm112_vm0 = vcmask 523264   ;;  %vm389_vm1 = vcmask 261120  }
  0x32   :  { %6896 = vmatprep.subr.mxu0 %v8287_v0  ;;  %6924 = vmatprep.subr.mxu1 %v8287_v0  ;;  %v8301_v2 = vld [vmem:[%s9448_s0 + $0x28] sm:$0xff]  ;;  %v8310_v3 = vld [vmem:[%s9448_s0 + $0x20] sm:$0xff]  ;;  %v8319_v4 = vld [vmem:[%s9448_s0 + $0x18] sm:$0xff]  ;;  %vm8208_vm2 = vmmov 0   ;;  %vm2651_vm3 = vcmask 1040384  }
  0x33   :  { %6897 = vmatpush3.msra.mxu0 %v8287_v0  ;;  %6925 = vmatpush3.msra.mxu1 %v8287_v0  ;;  %v8328_v5 = vld [vmem:[%s9448_s0 + $0x10] sm:$0xff]  ;;  %v8337_v6 = vld [vmem:[%s9448_s0 + $0x8] sm:$0xff]  ;;  %v8346_v7 = vld [vmem:[%s9448_s0] sm:$0xff] }
  0x34   :  { %6898 = vmatprep.subr.mxu0 %v8292_v1  ;;  %6926 = vmatprep.subr.mxu1 %v8292_v1  ;;  %v104_v8 = vld [vmem:[#allocation2] sm:$0xff]  ;;  %v105_v10 = vld [vmem:[#allocation2 + $0x8] sm:$0xff]  ;;  %v106_v12 = vld [vmem:[#allocation2 + $0x10] sm:$0xff] }
  0x35   :  { %6899 = vmatpush3.msra.mxu0 %v8292_v1  ;;  %6927 = vmatpush3.msra.mxu1 %v8292_v1  ;;  %v247_v9 = vld [vmem:[#allocation2 + $0x40] sm:$0xff]  ;;  %v248_v11 = vld [vmem:[#allocation2 + $0x48] sm:$0xff]  ;;  %v249_v13 = vld [vmem:[#allocation2 + $0x50] sm:$0xff] }
  0x36   :  { %6900 = vmatprep.subr.mxu0 %v8301_v2  ;;  %6928 = vmatprep.subr.mxu1 %v8301_v2  ;;  %v5937_v14 = vld [vmem:[%s9453_s5 + $0x38] sm:$0xff]  ;;  %v108_v18 = vld [vmem:[#allocation2 + $0x20] sm:$0xff]  ;;  %v5936_v20 = vld [vmem:[%s9453_s5 + $0x30] sm:$0xff] }
  0x37   :  { %6901 = vmatpush3.msra.mxu0 %v8301_v2  ;;  %6929 = vmatpush3.msra.mxu1 %v8301_v2  ;;  %v245_v15 = vld [vmem:[%s9453_s5 + $0x18] sm:$0xff]  ;;  %v251_v19 = vld [vmem:[#allocation2 + $0x60] sm:$0xff]  ;;  %v244_v21 = vld [vmem:[%s9453_s5 + $0x10] sm:$0xff] }
  0x38   :  { %6902 = vmatprep.subr.mxu0 %v8310_v3  ;;  %6930 = vmatprep.subr.mxu1 %v8310_v3  ;;  %v107_v16 = vld [vmem:[#allocation2 + $0x18] sm:$0xff]  ;;  %v109_v22 = vld [vmem:[#allocation2 + $0x28] sm:$0xff]  ;;  %v110_v24 = vld [vmem:[#allocation2 + $0x30] sm:$0xff] }
  0x39   :  { %6903 = vmatpush3.msra.mxu0 %v8310_v3  ;;  %6931 = vmatpush3.msra.mxu1 %v8310_v3  ;;  %v250_v17 = vld [vmem:[#allocation2 + $0x58] sm:$0xff]  ;;  %v252_v23 = vld [vmem:[#allocation2 + $0x68] sm:$0xff]  ;;  %v253_v25 = vld [vmem:[#allocation2 + $0x70] sm:$0xff] }
  0x3a   :  { %6904 = vmatprep.subr.mxu0 %v8319_v4  ;;  %6932 = vmatprep.subr.mxu1 %v8319_v4  ;;  %v5935_v26 = vld [vmem:[%s9453_s5 + $0x28] sm:$0xff]  ;;  %v111_v27 = vld [vmem:[#allocation2 + $0x38] sm:$0xff]  ;;  %v5934_v29 = vld [vmem:[%s9453_s5 + $0x20] sm:$0xff] }
  0x3b   :  { %6905 = vmatpush3.msra.mxu0 %v8319_v4  ;;  %6933 = vmatpush3.msra.mxu1 %v8319_v4  ;;  %v254_v28 = vld [vmem:[#allocation2 + $0x78] sm:$0xff]  ;;  %v243_v30 = vld [vmem:[%s9453_s5 + $0x8] sm:$0xff]  ;;  %v242_v31 = vld [vmem:[%s9453_s5] sm:$0xff] }
  0x3c   :  { %6906 = vmatprep.subr.mxu0 %v8328_v5  ;;  %6934 = vmatprep.subr.mxu1 %v8328_v5  ;;  %v649_v48 = vld [vmem:[#allocation2 + $0x80] sm:$0xff]  ;;  %v650_v49 = vld [vmem:[#allocation2 + $0x88] sm:$0xff]  ;;  %v651_v50 = vld [vmem:[#allocation2 + $0x90] sm:$0xff] }
  0x3d   :  { %6907 = vmatpush3.msra.mxu0 %v8328_v5  ;;  %6935 = vmatpush3.msra.mxu1 %v8328_v5  ;;  %v652_v51 = vld [vmem:[#allocation2 + $0x98] sm:$0xff]  ;;  %v653_v52 = vld [vmem:[#allocation2 + $0xa0] sm:$0xff]  ;;  %v654_v53 = vld [vmem:[#allocation2 + $0xa8] sm:$0xff] }
  0x3e   :  { %6908 = vmatprep.subr.mxu0 %v8337_v6  ;;  %6936 = vmatprep.subr.mxu1 %v8337_v6  ;;  %v655_v54 = vld [vmem:[#allocation2 + $0xb0] sm:$0xff]  ;;  %v656_v55 = vld [vmem:[#allocation2 + $0xb8] sm:$0xff]  ;;  %v929_v56 = vld [vmem:[#allocation2 + $0xc0] sm:$0xff] }
  0x3f   :  { %6909 = vmatpush3.msra.mxu0 %v8337_v6  ;;  %6937 = vmatpush3.msra.mxu1 %v8337_v6  ;;  %v930_v57 = vld [vmem:[#allocation2 + $0xc8] sm:$0xff]  ;;  %v931_v58 = vld [vmem:[#allocation2 + $0xd0] sm:$0xff]  ;;  %v932_v59 = vld [vmem:[#allocation2 + $0xd8] sm:$0xff] }
  0x40   :  { %6910 = vmatprep.subr.mxu0 %v8346_v7  ;;  %6938 = vmatprep.subr.mxu1 %v8346_v7  ;;  %v933_v60 = vld [vmem:[#allocation2 + $0xe0] sm:$0xff]  ;;  %v934_v61 = vld [vmem:[#allocation2 + $0xe8] sm:$0xff]  ;;  %v935_v62 = vld [vmem:[#allocation2 + $0xf0] sm:$0xff] }
  0x41   :  { %6911 = vmatpush3.msra.mxu0 %v8346_v7  ;;  %6912 = vmatprep.mubr.msk.f32.mxu0 %vm112_vm0, %v104_v8  ;;  %v936_v63 = vld [vmem:[#allocation2 + $0xf8] sm:$0xff]  ;;  %v1209_v8 = vld [vmem:[#allocation2 + $0x100] sm:$0xff] }
  0x42   :  { %6939 = vmatpush3.msra.mxu1 %v8346_v7  ;;  %6940 = vmatprep.mubr.msk.f32.mxu1 %vm112_vm0, %v247_v9  ;;  %v1210_v9 = vld [vmem:[#allocation2 + $0x108] sm:$0xff] }
  0x43   :  { %6913 = vmatmul.mubr.msk.f32.vlgmr.msra.gmra.mxu0 %vm112_vm0, %v105_v10  ;;  %6941 = vmatmul.mubr.msk.f32.vlgmr.msra.gmra.mxu1 %vm112_vm0, %v248_v11  ;;  %v1211_v10 = vld [vmem:[#allocation2 + $0x110] sm:$0xff]  ;;  %v1212_v11 = vld [vmem:[#allocation2 + $0x118] sm:$0xff] }
  0x44   :  { %6915 = vmatprep.mubr.msk.f32.mxu0 %vm112_vm0, %v106_v12  ;;  %6943 = vmatprep.mubr.msk.f32.mxu1 %vm112_vm0, %v249_v13  ;;  %v1213_v12 = vld [vmem:[#allocation2 + $0x120] sm:$0xff]  ;;  %v1214_v13 = vld [vmem:[#allocation2 + $0x128] sm:$0xff] }
  0x45   :  { %6952 = vmatprep.subr.mxu0 %v5937_v14  ;;  %6972 = vmatprep.subr.mxu1 %v245_v15 }
  0x46   :  { %6953 = vmatpush3.msra.mxu0 %v5937_v14  ;;  %6973 = vmatpush3.msra.mxu1 %v245_v15  ;;  %v1215_v14 = vld [vmem:[#allocation2 + $0x130] sm:$0xff]  ;;  %v1216_v15 = vld [vmem:[#allocation2 + $0x138] sm:$0xff] }
  0x47   :  { %6916 = vmatmul.mubr.msk.f32.gmra.mxu0 %vm112_vm0, %v107_v16  ;;  %6944 = vmatmul.mubr.msk.f32.gmra.mxu1 %vm112_vm0, %v250_v17  ;;  %v1489_v16 = vld [vmem:[#allocation2 + $0x140] sm:$0xff]  ;;  %v1490_v17 = vld [vmem:[#allocation2 + $0x148] sm:$0xff] }
  0x48   :  { %6918 = vmatprep.mubr.msk.f32.mxu0 %vm112_vm0, %v108_v18  ;;  %6946 = vmatprep.mubr.msk.f32.mxu1 %vm112_vm0, %v251_v19  ;;  %v1491_v18 = vld [vmem:[#allocation2 + $0x150] sm:$0xff]  ;;  %v1492_v19 = vld [vmem:[#allocation2 + $0x158] sm:$0xff] }
  0x49   :  { %6954 = vmatprep.subr.mxu0 %v5936_v20  ;;  %6974 = vmatprep.subr.mxu1 %v244_v21 }
  0x4a   :  { %6955 = vmatpush3.msra.mxu0 %v5936_v20  ;;  %6975 = vmatpush3.msra.mxu1 %v244_v21  ;;  %v1493_v20 = vld [vmem:[#allocation2 + $0x160] sm:$0xff]  ;;  %v5965_v21 = vld [vmem:[%s9453_s5 + $0x58] sm:$0xff] }
  0x4b   :  { %6919 = vmatmul.mubr.msk.f32.gmra.mxu0 %vm112_vm0, %v109_v22  ;;  %6947 = vmatmul.mubr.msk.f32.gmra.mxu1 %vm112_vm0, %v252_v23  ;;  %v1494_v22 = vld [vmem:[#allocation2 + $0x168] sm:$0xff]  ;;  %v1495_v23 = vld [vmem:[#allocation2 + $0x170] sm:$0xff] }
  0x4c   :  { %6921 = vmatprep.mubr.msk.f32.mxu0 %vm112_vm0, %v110_v24  ;;  %6949 = vmatprep.mubr.msk.f32.mxu1 %vm112_vm0, %v253_v25  ;;  %v5964_v24 = vld [vmem:[%s9453_s5 + $0x50] sm:$0xff]  ;;  %v1496_v25 = vld [vmem:[#allocation2 + $0x178] sm:$0xff] }
  0x4d   :  { %6956 = vmatprep.subr.mxu0 %v5935_v26  ;;  %6976 = vmatprep.subr.mxu1 %v243_v30 }
  0x4e   :  { %6957 = vmatpush3.msra.mxu0 %v5935_v26  ;;  %6977 = vmatpush3.msra.mxu1 %v243_v30  ;;  %v1769_v26 = vld [vmem:[#allocation2 + $0x180] sm:$0xff] }
  0x4f   :  { %6922 = vmatmul.mubr.msk.f32.gmra.mxu0 %vm112_vm0, %v111_v27  ;;  %6950 = vmatmul.mubr.msk.f32.gmra.mxu1 %vm112_vm0, %v254_v28  ;;  %v5963_v27 = vld [vmem:[%s9453_s5 + $0x48] sm:$0xff]  ;;  %v5962_v30 = vld [vmem:[%s9453_s5 + $0x40] sm:$0xff] }
  0x50   :  { %6958 = vmatprep.subr.mxu0 %v5934_v29  ;;  %6978 = vmatprep.subr.mxu1 %v242_v31  ;;  %v1770_v28 = vld [vmem:[#allocation2 + $0x188] sm:$0xff] }
  0x51   :  { %6959 = vmatpush3.msra.mxu0 %v5934_v29  ;;  %6979 = vmatpush3.msra.mxu1 %v242_v31  ;;  %v1771_v29 = vld [vmem:[#allocation2 + $0x190] sm:$0xff]  ;;  %v1772_v31 = vld [vmem:[#allocation2 + $0x198] sm:$0xff] }
  0x52   :  { %6992 = vmatprep.subr.mxu0 %v8287_v0  ;;  %7020 = vmatprep.subr.mxu1 %v5965_v21 }
 0x103   :  { %v6914_v32 = vpop.f32.mrf.mxu0  ;;  %v6942_v33 = vpop.f32.mrf.mxu1 }
 0x105   :  { %v203_v34 = vpop.f32.mrf.mxu0  ;;  %v345_v35 = vpop.f32.mrf.mxu1 }
 0x106   :  { %6960 = vmatprep.mubr.msk.f32.mxu0 %vm389_vm1, %v345_v35  ;;  %6980 = vmatprep.mubr.msk.f32.mxu1 %vm389_vm1, %v203_v34  ;;  %v1774_v34 = vld [vmem:[#allocation2 + $0x1a8] sm:$0xff]  ;;  %v1775_v35 = vld [vmem:[#allocation2 + $0x1b0] sm:$0xff] }
 0x107   :  { %v6917_v36 = vpop.f32.mrf.mxu0  ;;  %v6945_v37 = vpop.f32.mrf.mxu1  ;;  %6961 = vmatmul.mubr.msk.f32.vlgmr.msra.gmra.mxu0 %vm389_vm1, %v6942_v33  ;;  %6981 = vmatmul.mubr.msk.f32.vlgmr.msra.gmra.mxu1 %vm389_vm1, %v6914_v32  ;;  %v1773_v32 = vld [vmem:[#allocation2 + $0x1a0] sm:$0xff]  ;;  %v8546_v33 = vld [vmem:[%s9453_s5 + $0x78] sm:$0xff] }
 0x108   :  { %6993 = vmatpush3.msra.mxu0 %v8287_v0  ;;  %7021 = vmatpush3.msra.mxu1 %v5965_v21 }
 0x109   :  { %6994 = vmatprep.subr.mxu0 %v8292_v1  ;;  %v213_v38 = vpop.f32.mrf.mxu0  ;;  %v355_v39 = vpop.f32.mrf.mxu1  ;;  %7022 = vmatprep.subr.mxu1 %v5964_v24 }
 0x10a   :  { %6995 = vmatpush3.msra.mxu0 %v8292_v1  ;;  %6963 = vmatprep.mubr.msk.f32.mxu0 %vm389_vm1, %v355_v39  ;;  %v2051_v39 = vld [vmem:[#allocation2 + $0x1d0] sm:$0xff] }
 0x10b   :  { %6983 = vmatprep.mubr.msk.f32.mxu1 %vm389_vm1, %v213_v38  ;;  %6996 = vmatprep.subr.mxu0 %v8301_v2  ;;  %v6920_v40 = vpop.f32.mrf.mxu0  ;;  %v6948_v41 = vpop.f32.mrf.mxu1  ;;  %v2050_v38 = vld [vmem:[#allocation2 + $0x1c8] sm:$0xff] }
 0x10c   :  { %6964 = vmatmul.mubr.msk.f32.gmra.mxu0 %vm389_vm1, %v6945_v37  ;;  %6984 = vmatmul.mubr.msk.f32.gmra.mxu1 %vm389_vm1, %v6917_v36  ;;  %v1776_v36 = vld [vmem:[#allocation2 + $0x1b8] sm:$0xff]  ;;  %v2049_v37 = vld [vmem:[#allocation2 + $0x1c0] sm:$0xff] }
 0x10d   :  { %6997 = vmatpush3.msra.mxu0 %v8301_v2  ;;  %v223_v42 = vpop.f32.mrf.mxu0  ;;  %v365_v43 = vpop.f32.mrf.mxu1  ;;  %7023 = vmatpush3.msra.mxu1 %v5964_v24  ;;  %v6003_v24 = vld [vmem:[%s9453_s5 + $0x88] sm:$0xff] }
 0x10e   :  { %6998 = vmatprep.subr.mxu0 %v8310_v3  ;;  %6966 = vmatprep.mubr.msk.f32.mxu0 %vm389_vm1, %v365_v43  ;;  %v2332_v43 = vld [vmem:[#allocation2 + $0x218] sm:$0xff] }
 0x10f   :  { %6999 = vmatpush3.msra.mxu0 %v8310_v3  ;;  %6986 = vmatprep.mubr.msk.f32.mxu1 %vm389_vm1, %v223_v42  ;;  %v6923_v44 = vpop.f32.mrf.mxu0  ;;  %v6951_v45 = vpop.f32.mrf.mxu1  ;;  %v2054_v42 = vld [vmem:[#allocation2 + $0x1e8] sm:$0xff] }
 0x110   :  { %7000 = vmatprep.subr.mxu0 %v8319_v4  ;;  %6967 = vmatmul.mubr.msk.f32.gmra.mxu0 %vm389_vm1, %v6948_v41  ;;  %v2053_v41 = vld [vmem:[#allocation2 + $0x1e0] sm:$0xff] }
 0x111   :  { %6987 = vmatmul.mubr.msk.f32.gmra.mxu1 %vm389_vm1, %v6920_v40  ;;  %7001 = vmatpush3.msra.mxu0 %v8319_v4  ;;  %v233_v46 = vpop.f32.mrf.mxu0  ;;  %v375_v47 = vpop.f32.mrf.mxu1  ;;  %v2052_v40 = vld [vmem:[#allocation2 + $0x1d8] sm:$0xff] }
 0x112   :  { %7002 = vmatprep.subr.mxu0 %v8328_v5  ;;  %6969 = vmatprep.mubr.msk.f32.mxu0 %vm389_vm1, %v375_v47 }
 0x113   :  { %7003 = vmatpush3.msra.mxu0 %v8328_v5  ;;  %6989 = vmatprep.mubr.msk.f32.mxu1 %vm389_vm1, %v233_v46 }
 0x114   :  { %7004 = vmatprep.subr.mxu0 %v8337_v6  ;;  %6970 = vmatmul.mubr.msk.f32.gmra.mxu0 %vm389_vm1, %v6951_v45  ;;  %v2336_v45 = vld [vmem:[#allocation2 + $0x238] sm:$0xff] }
 0x115   :  { %6990 = vmatmul.mubr.msk.f32.gmra.mxu1 %vm389_vm1, %v6923_v44  ;;  %7005 = vmatpush3.msra.mxu0 %v8337_v6  ;;  %v2334_v44 = vld [vmem:[#allocation2 + $0x228] sm:$0xff] }
 0x116   :  { %7006 = vmatprep.subr.mxu0 %v8346_v7  ;;  %7008 = vmatprep.mubr.msk.f32.mxu0 %vm112_vm0, %v649_v48 }
 0x117   :  { %7007 = vmatpush3.msra.mxu0 %v8346_v7  ;;  %7024 = vmatprep.subr.mxu1 %v5963_v27 }
 0x118   :  { %7040 = vmatprep.subr.mxu0 %v8287_v0  ;;  %7009 = vmatmul.mubr.msk.f32.vlgmr.msra.gmra.mxu0 %vm112_vm0, %v650_v49 }
 0x119   :  { %7041 = vmatpush3.msra.mxu0 %v8287_v0  ;;  %7011 = vmatprep.mubr.msk.f32.mxu0 %vm112_vm0, %v651_v50 }
 0x11a   :  { %7042 = vmatprep.subr.mxu0 %v8292_v1  ;;  %7025 = vmatpush3.msra.mxu1 %v5963_v27 }
 0x11b   :  { %7043 = vmatpush3.msra.mxu0 %v8292_v1  ;;  %7026 = vmatprep.subr.mxu1 %v5962_v30 }
 0x11c   :  { %7044 = vmatprep.subr.mxu0 %v8301_v2  ;;  %7012 = vmatmul.mubr.msk.f32.gmra.mxu0 %vm112_vm0, %v652_v51 }
 0x11d   :  { %7045 = vmatpush3.msra.mxu0 %v8301_v2  ;;  %7014 = vmatprep.mubr.msk.f32.mxu0 %vm112_vm0, %v653_v52 }
 0x11e   :  { %7046 = vmatprep.subr.mxu0 %v8310_v3  ;;  %7027 = vmatpush3.msra.mxu1 %v5962_v30 }
 0x11f   :  { %7047 = vmatpush3.msra.mxu0 %v8310_v3  ;;  %7068 = vmatprep.subr.mxu1 %v8546_v33 }
 0x120   :  { %7048 = vmatprep.subr.mxu0 %v8319_v4  ;;  %7015 = vmatmul.mubr.msk.f32.gmra.mxu0 %vm112_vm0, %v654_v53 }
 0x121   :  { %7049 = vmatpush3.msra.mxu0 %v8319_v4  ;;  %7017 = vmatprep.mubr.msk.f32.mxu0 %vm112_vm0, %v655_v54 }
 0x122   :  { %7050 = vmatprep.subr.mxu0 %v8328_v5 }
 0x123   :  { %7051 = vmatpush3.msra.mxu0 %v8328_v5 }
 0x124   :  { %7052 = vmatprep.subr.mxu0 %v8337_v6  ;;  %7018 = vmatmul.mubr.msk.f32.gmra.mxu0 %vm112_vm0, %v656_v55 }
 0x125   :  { %7053 = vmatpush3.msra.mxu0 %v8337_v6  ;;  %7056 = vmatprep.mubr.msk.f32.mxu0 %vm112_vm0, %v929_v56 }
 0x126   :  { %7054 = vmatprep.subr.mxu0 %v8346_v7 }
 0x127   :  { %7055 = vmatpush3.msra.mxu0 %v8346_v7 }
 0x128   :  { %7088 = vmatprep.subr.mxu0 %v8287_v0  ;;  %7057 = vmatmul.mubr.msk.f32.vlgmr.msra.gmra.mxu0 %vm112_vm0, %v930_v57 }
 0x129   :  { %7089 = vmatpush3.msra.mxu0 %v8287_v0  ;;  %7059 = vmatprep.mubr.msk.f32.mxu0 %vm112_vm0, %v931_v58 }
 0x12a   :  { %7090 = vmatprep.subr.mxu0 %v8292_v1 }
 0x12b   :  { %7091 = vmatpush3.msra.mxu0 %v8292_v1 }
 0x12c   :  { %7092 = vmatprep.subr.mxu0 %v8301_v2  ;;  %7060 = vmatmul.mubr.msk.f32.gmra.mxu0 %vm112_vm0, %v932_v59 }
 0x12d   :  { %7093 = vmatpush3.msra.mxu0 %v8301_v2  ;;  %7062 = vmatprep.mubr.msk.f32.mxu0 %vm112_vm0, %v933_v60 }
 0x12e   :  { %7094 = vmatprep.subr.mxu0 %v8310_v3 }
 0x12f   :  { %7095 = vmatpush3.msra.mxu0 %v8310_v3 }
 0x130   :  { %7096 = vmatprep.subr.mxu0 %v8319_v4  ;;  %7063 = vmatmul.mubr.msk.f32.gmra.mxu0 %vm112_vm0, %v934_v61 }
 0x131   :  { %7097 = vmatpush3.msra.mxu0 %v8319_v4  ;;  %7065 = vmatprep.mubr.msk.f32.mxu0 %vm112_vm0, %v935_v62 }
 0x132   :  { %7098 = vmatprep.subr.mxu0 %v8328_v5 }
 0x133   :  { %7099 = vmatpush3.msra.mxu0 %v8328_v5 }
 0x134   :  { %7100 = vmatprep.subr.mxu0 %v8337_v6  ;;  %7066 = vmatmul.mubr.msk.f32.gmra.mxu0 %vm112_vm0, %v936_v63 }
 0x135   :  { %7101 = vmatpush3.msra.mxu0 %v8337_v6  ;;  %7104 = vmatprep.mubr.msk.f32.mxu0 %vm112_vm0, %v1209_v8 }
 0x136   :  { %7102 = vmatprep.subr.mxu0 %v8346_v7 }
 0x137   :  { %7103 = vmatpush3.msra.mxu0 %v8346_v7 }
 0x138   :  { %7136 = vmatprep.subr.mxu0 %v8287_v0  ;;  %7105 = vmatmul.mubr.msk.f32.vlgmr.msra.gmra.mxu0 %vm112_vm0, %v1210_v9 }
 0x139   :  { %7137 = vmatpush3.msra.mxu0 %v8287_v0  ;;  %7107 = vmatprep.mubr.msk.f32.mxu0 %vm112_vm0, %v1211_v10  ;;  %v5984_v10 = vld [vmem:[%s9453_s5 + $0x70] sm:$0xff] }
 0x13a   :  { %7138 = vmatprep.subr.mxu0 %v8292_v1 }
 0x13b   :  { %7139 = vmatpush3.msra.mxu0 %v8292_v1 }
 0x13c   :  { %7140 = vmatprep.subr.mxu0 %v8301_v2  ;;  %7108 = vmatmul.mubr.msk.f32.gmra.mxu0 %vm112_vm0, %v1212_v11 }
 0x13d   :  { %7141 = vmatpush3.msra.mxu0 %v8301_v2  ;;  %7110 = vmatprep.mubr.msk.f32.mxu0 %vm112_vm0, %v1213_v12  ;;  %v5983_v12 = vld [vmem:[%s9453_s5 + $0x68] sm:$0xff] }
 0x13e   :  { %7142 = vmatprep.subr.mxu0 %v8310_v3 }
 0x13f   :  { %7143 = vmatpush3.msra.mxu0 %v8310_v3 }
 0x140   :  { %7144 = vmatprep.subr.mxu0 %v8319_v4  ;;  %7111 = vmatmul.mubr.msk.f32.gmra.mxu0 %vm112_vm0, %v1214_v13 }
 0x141   :  { %7145 = vmatpush3.msra.mxu0 %v8319_v4  ;;  %7113 = vmatprep.mubr.msk.f32.mxu0 %vm112_vm0, %v1215_v14  ;;  %v5982_v14 = vld [vmem:[%s9453_s5 + $0x60] sm:$0xff] }
 0x142   :  { %7146 = vmatprep.subr.mxu0 %v8328_v5 }
 0x143   :  { %7147 = vmatpush3.msra.mxu0 %v8328_v5 }
 0x144   :  { %7148 = vmatprep.subr.mxu0 %v8337_v6  ;;  %7114 = vmatmul.mubr.msk.f32.gmra.mxu0 %vm112_vm0, %v1216_v15 }
 0x145   :  { %7149 = vmatpush3.msra.mxu0 %v8337_v6  ;;  %7152 = vmatprep.mubr.msk.f32.mxu0 %vm112_vm0, %v1489_v16  ;;  %v6005_v16 = vld [vmem:[%s9453_s5 + $0x98] sm:$0xff] }
 0x146   :  { %7150 = vmatprep.subr.mxu0 %v8346_v7 }
 0x147   :  { %7151 = vmatpush3.msra.mxu0 %v8346_v7 }
 0x148   :  { %7184 = vmatprep.subr.mxu0 %v8287_v0  ;;  %7153 = vmatmul.mubr.msk.f32.vlgmr.msra.gmra.mxu0 %vm112_vm0, %v1490_v17 }
 0x149   :  { %7185 = vmatpush3.msra.mxu0 %v8287_v0  ;;  %7155 = vmatprep.mubr.msk.f32.mxu0 %vm112_vm0, %v1491_v18 }
 0x14a   :  { %7186 = vmatprep.subr.mxu0 %v8292_v1 }
 0x14b   :  { %7187 = vmatpush3.msra.mxu0 %v8292_v1 }
 0x14c   :  { %7188 = vmatprep.subr.mxu0 %v8301_v2  ;;  %7156 = vmatmul.mubr.msk.f32.gmra.mxu0 %vm112_vm0, %v1492_v19 }
 0x14d   :  { %7189 = vmatpush3.msra.mxu0 %v8301_v2  ;;  %7158 = vmatprep.mubr.msk.f32.mxu0 %vm112_vm0, %v1493_v20 }
 0x14e   :  { %7190 = vmatprep.subr.mxu0 %v8310_v3 }
 0x14f   :  { %7191 = vmatpush3.msra.mxu0 %v8310_v3 }
 0x150   :  { %7192 = vmatprep.subr.mxu0 %v8319_v4  ;;  %7159 = vmatmul.mubr.msk.f32.gmra.mxu0 %vm112_vm0, %v1494_v22  ;;  %v6004_v22 = vld [vmem:[%s9453_s5 + $0x90] sm:$0xff] }
 0x151   :  { %7193 = vmatpush3.msra.mxu0 %v8319_v4  ;;  %7161 = vmatprep.mubr.msk.f32.mxu0 %vm112_vm0, %v1495_v23 }
 0x152   :  { %7194 = vmatprep.subr.mxu0 %v8328_v5 }
 0x153   :  { %7195 = vmatpush3.msra.mxu0 %v8328_v5 }
 0x154   :  { %7196 = vmatprep.subr.mxu0 %v8337_v6  ;;  %7162 = vmatmul.mubr.msk.f32.gmra.mxu0 %vm112_vm0, %v1496_v25 }
 0x155   :  { %7197 = vmatpush3.msra.mxu0 %v8337_v6  ;;  %7200 = vmatprep.mubr.msk.f32.mxu0 %vm112_vm0, %v1769_v26  ;;  %v6002_v26 = vld [vmem:[%s9453_s5 + $0x80] sm:$0xff] }
 0x156   :  { %7198 = vmatprep.subr.mxu0 %v8346_v7 }
 0x157   :  { %7199 = vmatpush3.msra.mxu0 %v8346_v7 }
 0x158   :  { %7232 = vmatprep.subr.mxu0 %v8287_v0  ;;  %7201 = vmatmul.mubr.msk.f32.vlgmr.msra.gmra.mxu0 %vm112_vm0, %v1770_v28  ;;  %v6025_v28 = vld [vmem:[%s9453_s5 + $0xb8] sm:$0xff] }
 0x159   :  { %7233 = vmatpush3.msra.mxu0 %v8287_v0  ;;  %7203 = vmatprep.mubr.msk.f32.mxu0 %vm112_vm0, %v1771_v29 }
 0x15a   :  { %7234 = vmatprep.subr.mxu0 %v8292_v1 }
 0x15b   :  { %7235 = vmatpush3.msra.mxu0 %v8292_v1 }
 0x15c   :  { %7236 = vmatprep.subr.mxu0 %v8301_v2  ;;  %7204 = vmatmul.mubr.msk.f32.gmra.mxu0 %vm112_vm0, %v1772_v31 }
 0x15d   :  { %7237 = vmatpush3.msra.mxu0 %v8301_v2  ;;  %7206 = vmatprep.mubr.msk.f32.mxu0 %vm112_vm0, %v1773_v32 }
 0x15e   :  { %7238 = vmatprep.subr.mxu0 %v8310_v3 }
 0x15f   :  { %7239 = vmatpush3.msra.mxu0 %v8310_v3 }
 0x160   :  { %7240 = vmatprep.subr.mxu0 %v8319_v4  ;;  %7207 = vmatmul.mubr.msk.f32.gmra.mxu0 %vm112_vm0, %v1774_v34  ;;  %v6024_v34 = vld [vmem:[%s9453_s5 + $0xb0] sm:$0xff] }
 0x161   :  { %7241 = vmatpush3.msra.mxu0 %v8319_v4  ;;  %7209 = vmatprep.mubr.msk.f32.mxu0 %vm112_vm0, %v1775_v35 }
 0x162   :  { %7242 = vmatprep.subr.mxu0 %v8328_v5 }
 0x163   :  { %7243 = vmatpush3.msra.mxu0 %v8328_v5 }
 0x164   :  { %7244 = vmatprep.subr.mxu0 %v8337_v6  ;;  %7210 = vmatmul.mubr.msk.f32.gmra.mxu0 %vm112_vm0, %v1776_v36  ;;  %v6023_v36 = vld [vmem:[%s9453_s5 + $0xa8] sm:$0xff] }
 0x165   :  { %7245 = vmatpush3.msra.mxu0 %v8337_v6  ;;  %7248 = vmatprep.mubr.msk.f32.mxu0 %vm112_vm0, %v2049_v37 }
 0x166   :  { %7246 = vmatprep.subr.mxu0 %v8346_v7 }
 0x167   :  { %7247 = vmatpush3.msra.mxu0 %v8346_v7 }
 0x168   :  { %7280 = vmatprep.subr.mxu0 %v8287_v0  ;;  %7249 = vmatmul.mubr.msk.f32.vlgmr.msra.gmra.mxu0 %vm112_vm0, %v2050_v38  ;;  %v6022_v38 = vld [vmem:[%s9453_s5 + $0xa0] sm:$0xff] }
 0x169   :  { %7281 = vmatpush3.msra.mxu0 %v8287_v0  ;;  %7251 = vmatprep.mubr.msk.f32.mxu0 %vm112_vm0, %v2051_v39  ;;  %v2055_v0 = vld [vmem:[#allocation2 + $0x1f0] sm:$0xff] }
 0x16a   :  { %7282 = vmatprep.subr.mxu0 %v8292_v1 }
 0x16b   :  { %7283 = vmatpush3.msra.mxu0 %v8292_v1  ;;  %v2056_v1 = vld [vmem:[#allocation2 + $0x1f8] sm:$0xff] }
 0x16c   :  { %7284 = vmatprep.subr.mxu0 %v8301_v2  ;;  %7252 = vmatmul.mubr.msk.f32.gmra.mxu0 %vm112_vm0, %v2052_v40  ;;  %v6045_v40 = vld [vmem:[%s9453_s5 + $0xd8] sm:$0xff] }
 0x16d   :  { %7285 = vmatpush3.msra.mxu0 %v8301_v2  ;;  %7254 = vmatprep.mubr.msk.f32.mxu0 %vm112_vm0, %v2053_v41  ;;  %v2329_v2 = vld [vmem:[#allocation2 + $0x200] sm:$0xff] }
 0x16e   :  { %7286 = vmatprep.subr.mxu0 %v8310_v3 }
 0x16f   :  { %7287 = vmatpush3.msra.mxu0 %v8310_v3  ;;  %v2330_v3 = vld [vmem:[#allocation2 + $0x208] sm:$0xff] }
 0x170   :  { %7288 = vmatprep.subr.mxu0 %v8319_v4  ;;  %7255 = vmatmul.mubr.msk.f32.gmra.mxu0 %vm112_vm0, %v2054_v42 }
 0x171   :  { %7289 = vmatpush3.msra.mxu0 %v8319_v4  ;;  %7257 = vmatprep.mubr.msk.f32.mxu0 %vm112_vm0, %v2055_v0  ;;  %v2331_v4 = vld [vmem:[#allocation2 + $0x210] sm:$0xff] }
 0x172   :  { %7290 = vmatprep.subr.mxu0 %v8328_v5 }
 0x173   :  { %7291 = vmatpush3.msra.mxu0 %v8328_v5  ;;  %v2333_v5 = vld [vmem:[#allocation2 + $0x220] sm:$0xff] }
 0x174   :  { %7292 = vmatprep.subr.mxu0 %v8337_v6  ;;  %7258 = vmatmul.mubr.msk.f32.gmra.mxu0 %vm112_vm0, %v2056_v1 }
 0x175   :  { %7293 = vmatpush3.msra.mxu0 %v8337_v6  ;;  %7296 = vmatprep.mubr.msk.f32.mxu0 %vm112_vm0, %v2329_v2  ;;  %v2335_v6 = vld [vmem:[#allocation2 + $0x230] sm:$0xff] }
 0x176   :  { %7294 = vmatprep.subr.mxu0 %v8346_v7 }
 0x177   :  { %7295 = vmatpush3.msra.mxu0 %v8346_v7 }
 0x178   :  { %7297 = vmatmul.mubr.msk.f32.vlgmr.msra.gmra.mxu0 %vm112_vm0, %v2330_v3  ;;  %v6044_v3 = vld [vmem:[%s9453_s5 + $0xd0] sm:$0xff] }
 0x179   :  { %7299 = vmatprep.mubr.msk.f32.mxu0 %vm112_vm0, %v2331_v4 }
 0x17c   :  { %7300 = vmatmul.mubr.msk.f32.gmra.mxu0 %vm112_vm0, %v2332_v43  ;;  %v6043_v43 = vld [vmem:[%s9453_s5 + $0xc8] sm:$0xff] }
 0x17d   :  { %7302 = vmatprep.mubr.msk.f32.mxu0 %vm112_vm0, %v2333_v5 }
 0x180   :  { %7303 = vmatmul.mubr.msk.f32.gmra.mxu0 %vm112_vm0, %v2334_v44  ;;  %v6042_v44 = vld [vmem:[%s9453_s5 + $0xc0] sm:$0xff] }
 0x181   :  { %7305 = vmatprep.mubr.msk.f32.mxu0 %vm112_vm0, %v2335_v6 }
 0x184   :  { %7306 = vmatmul.mubr.msk.f32.gmra.mxu0 %vm112_vm0, %v2336_v45  ;;  %v6065_v45 = vld [vmem:[%s9453_s5 + $0xf8] sm:$0xff] }
 0x1c7   :  { %v6962_v7 = vpop.f32.mrf.mxu0  ;;  %v6982_v46 = vpop.f32.mrf.mxu1 }
 0x1c8   :  { %v8598_v47 = vadd.f32 %v6982_v46, %v6962_v7 }
 0x1c9   :  { %v8600_v48 = vpop.f32.mrf.mxu0  ;;  %v8602_v49 = vpop.f32.mrf.mxu1 }
 0x1cc   :  { %v6965_v50 = vpop.f32.mrf.mxu0  ;;  %v6985_v51 = vpop.f32.mrf.mxu1 }
 0x1cd   :  { %v8604_v52 = vadd.f32 %v6985_v51, %v6965_v50 }
 0x1ce   :  { %v8606_v53 = vpop.f32.mrf.mxu0  ;;  %v8608_v54 = vpop.f32.mrf.mxu1 }
 0x1d0   :  { %v6968_v55 = vpop.f32.mrf.mxu0 }
 0x1d1   :  { %v6988_v56 = vpop.f32.mrf.mxu1 }
 0x1d2   :  { %v8610_v57 = vadd.f32 %v6988_v56, %v6968_v55  ;;  %v8612_v58 = vpop.f32.mrf.mxu0  ;;  %v6064_v56 = vld [vmem:[%s9453_s5 + $0xf0] sm:$0xff] }
 0x1d3   :  { %v8614_v59 = vpop.f32.mrf.mxu1 }
 0x1d4   :  { %v6971_v60 = vpop.f32.mrf.mxu0 }
 0x1d5   :  { %v6991_v61 = vpop.f32.mrf.mxu1 }
 0x1d6   :  { %v8616_v62 = vadd.f32 %v6991_v61, %v6971_v60  ;;  %v8618_v63 = vpop.f32.mrf.mxu0  ;;  %v6063_v61 = vld [vmem:[%s9453_s5 + $0xe8] sm:$0xff] }
 0x1d8   :  { %v7010_v8 = vpop.f32.mrf.mxu0 }
 0x1da   :  { %v747_v9 = vpop.f32.mrf.mxu0 }
 0x1db   :  { %7028 = vmatprep.mubr.msk.f32.mxu1 %vm389_vm1, %v747_v9  ;;  %v6062_v9 = vld [vmem:[%s9453_s5 + $0xe0] sm:$0xff] }
 0x1dc   :  { %v7013_v11 = vpop.f32.mrf.mxu0  ;;  %7029 = vmatmul.mubr.msk.f32.vlgmr.msra.gmra.mxu1 %vm389_vm1, %v7010_v8 }
 0x1dd   :  { %7069 = vmatpush3.msra.mxu1 %v8546_v33 }
 0x1de   :  { %v757_v13 = vpop.f32.mrf.mxu0  ;;  %7070 = vmatprep.subr.mxu1 %v5984_v10 }
 0x1df   :  { %7031 = vmatprep.mubr.msk.f32.mxu1 %vm389_vm1, %v757_v13  ;;  %7071 = vmatpush3.msra.mxu1 %v5984_v10 }
 0x1e0   :  { %v7016_v15 = vpop.f32.mrf.mxu0  ;;  %7032 = vmatmul.mubr.msk.f32.gmra.mxu1 %vm389_vm1, %v7013_v11  ;;  %7072 = vmatprep.subr.mxu1 %v5983_v12  ;;  %v6085_v11 = vld [vmem:[%s9453_s5 + $0x118] sm:$0xff] }
 0x1e1   :  { %7073 = vmatpush3.msra.mxu1 %v5983_v12 }
 0x1e2   :  { %v767_v17 = vpop.f32.mrf.mxu0  ;;  %7074 = vmatprep.subr.mxu1 %v5982_v14 }
 0x1e3   :  { %7034 = vmatprep.mubr.msk.f32.mxu1 %vm389_vm1, %v767_v17  ;;  %7075 = vmatpush3.msra.mxu1 %v5982_v14  ;;  %v6084_v17 = vld [vmem:[%s9453_s5 + $0x110] sm:$0xff] }
 0x1e4   :  { %v7019_v18 = vpop.f32.mrf.mxu0  ;;  %7035 = vmatmul.mubr.msk.f32.gmra.mxu1 %vm389_vm1, %v7016_v15  ;;  %7116 = vmatprep.subr.mxu1 %v6005_v16 }
 0x1e6   :  { %v777_v19 = vpop.f32.mrf.mxu0 }
 0x1e7   :  { %7037 = vmatprep.mubr.msk.f32.mxu1 %vm389_vm1, %v777_v19  ;;  %v6083_v19 = vld [vmem:[%s9453_s5 + $0x108] sm:$0xff] }
 0x1e8   :  { %7038 = vmatmul.mubr.msk.f32.gmra.mxu1 %vm389_vm1, %v7019_v18  ;;  %v7058_v20 = vpop.f32.mrf.mxu0 }
 0x1ea   :  { %v1027_v21 = vpop.f32.mrf.mxu0 }
 0x1eb   :  { %7076 = vmatprep.mubr.msk.f32.mxu1 %vm389_vm1, %v1027_v21  ;;  %v6082_v21 = vld [vmem:[%s9453_s5 + $0x100] sm:$0xff] }
 0x1ec   :  { %v7061_v23 = vpop.f32.mrf.mxu0  ;;  %7077 = vmatmul.mubr.msk.f32.vlgmr.msra.gmra.mxu1 %vm389_vm1, %v7058_v20 }
 0x1ed   :  { %7117 = vmatpush3.msra.mxu1 %v6005_v16 }
 0x1ee   :  { %v1037_v25 = vpop.f32.mrf.mxu0  ;;  %7118 = vmatprep.subr.mxu1 %v6004_v22 }
 0x1ef   :  { %7079 = vmatprep.mubr.msk.f32.mxu1 %vm389_vm1, %v1037_v25  ;;  %7119 = vmatpush3.msra.mxu1 %v6004_v22 }
 0x1f0   :  { %v7064_v27 = vpop.f32.mrf.mxu0  ;;  %7080 = vmatmul.mubr.msk.f32.gmra.mxu1 %vm389_vm1, %v7061_v23  ;;  %7120 = vmatprep.subr.mxu1 %v6003_v24 }
 0x1f1   :  { %7121 = vmatpush3.msra.mxu1 %v6003_v24 }
 0x1f2   :  { %v1047_v29 = vpop.f32.mrf.mxu0  ;;  %7122 = vmatprep.subr.mxu1 %v6002_v26 }
 0x1f3   :  { %7082 = vmatprep.mubr.msk.f32.mxu1 %vm389_vm1, %v1047_v29  ;;  %7123 = vmatpush3.msra.mxu1 %v6002_v26 }
 0x1f4   :  { %v7067_v30 = vpop.f32.mrf.mxu0  ;;  %7083 = vmatmul.mubr.msk.f32.gmra.mxu1 %vm389_vm1, %v7064_v27  ;;  %7164 = vmatprep.subr.mxu1 %v6025_v28 }
 0x1f6   :  { %v1057_v31 = vpop.f32.mrf.mxu0 }
 0x1f7   :  { %7085 = vmatprep.mubr.msk.f32.mxu1 %vm389_vm1, %v1057_v31 }
 0x1f8   :  { %7086 = vmatmul.mubr.msk.f32.gmra.mxu1 %vm389_vm1, %v7067_v30  ;;  %v7106_v32 = vpop.f32.mrf.mxu0 }
 0x1fa   :  { %v1307_v33 = vpop.f32.mrf.mxu0 }
 0x1fb   :  { %7124 = vmatprep.mubr.msk.f32.mxu1 %vm389_vm1, %v1307_v33 }
 0x1fc   :  { %v7109_v35 = vpop.f32.mrf.mxu0  ;;  %7125 = vmatmul.mubr.msk.f32.vlgmr.msra.gmra.mxu1 %vm389_vm1, %v7106_v32 }
 0x1fd   :  { %7165 = vmatpush3.msra.mxu1 %v6025_v28 }
 0x1fe   :  { %v1317_v37 = vpop.f32.mrf.mxu0  ;;  %7166 = vmatprep.subr.mxu1 %v6024_v34 }
 0x1ff   :  { %7127 = vmatprep.mubr.msk.f32.mxu1 %vm389_vm1, %v1317_v37  ;;  %7167 = vmatpush3.msra.mxu1 %v6024_v34  ;;  %v8207_v34 = vmov 0.0   ;;  %v93_v37 = vld [vmem:[#allocation5 + $0x28] sm:$0xff] }
 0x200   :  { %v7112_v39 = vpop.f32.mrf.mxu0  ;;  %7128 = vmatmul.mubr.msk.f32.gmra.mxu1 %vm389_vm1, %v7109_v35  ;;  %7168 = vmatprep.subr.mxu1 %v6023_v36  ;;  %v95_v35 = vld [vmem:[#allocation5 + $0x38] sm:$0xff] }
 0x201   :  { %7169 = vmatpush3.msra.mxu1 %v6023_v36  ;;  %7328 = vmatprep.subr.mxu0 %v8207_v34  ;;  %v94_v36 = vld [vmem:[#allocation5 + $0x30] sm:$0xff] }
 0x202   :  { %v1327_v41 = vpop.f32.mrf.mxu0  ;;  %7170 = vmatprep.subr.mxu1 %v6022_v38  ;;  %7329 = vmatpush3.msra.mxu0 %v95_v35 }
 0x203   :  { %7130 = vmatprep.mubr.msk.f32.mxu1 %vm389_vm1, %v1327_v41  ;;  %7171 = vmatpush3.msra.mxu1 %v6022_v38  ;;  %v92_v38 = vld [vmem:[#allocation5 + $0x20] sm:$0xff]  ;;  %v89_v41 = vld [vmem:[#allocation5 + $0x8] sm:$0xff] }
 0x204   :  { %v7115_v42 = vpop.f32.mrf.mxu0  ;;  %7131 = vmatmul.mubr.msk.f32.gmra.mxu1 %vm389_vm1, %v7112_v39  ;;  %7212 = vmatprep.subr.mxu1 %v6045_v40  ;;  %v91_v39 = vld [vmem:[#allocation5 + $0x18] sm:$0xff] }
 0x205   :  { %7330 = vmatprep.subr.mxu0 %v8207_v34  ;;  %7344 = vmatprep.mubr.msk.f32.mxu0 %vm8208_vm2, %v8207_v34 }
 0x206   :  { %v1337_v0 = vpop.f32.mrf.mxu0  ;;  %7331 = vmatpush3.msra.mxu0 %v94_v36 }
 0x207   :  { %7133 = vmatprep.mubr.msk.f32.mxu1 %vm389_vm1, %v1337_v0  ;;  %7332 = vmatprep.subr.mxu0 %v8207_v34  ;;  %v88_v0 = vld [vmem:[#allocation5] sm:$0xff] }
 0x208   :  { %7134 = vmatmul.mubr.msk.f32.gmra.mxu1 %vm389_vm1, %v7115_v42  ;;  %v7154_v1 = vpop.f32.mrf.mxu0  ;;  %7333 = vmatpush3.msra.mxu0 %v93_v37  ;;  %v8760_v42 = vpop.f32.mrf.mxu1 }
 0x209   :  { %7334 = vmatprep.subr.mxu0 %v8207_v34 }
 0x20a   :  { %v1587_v2 = vpop.f32.mrf.mxu0  ;;  %7335 = vmatpush3.msra.mxu0 %v92_v38 }
 0x20b   :  { %7172 = vmatprep.mubr.msk.f32.mxu1 %vm389_vm1, %v1587_v2  ;;  %7336 = vmatprep.subr.mxu0 %v8207_v34 }
 0x20c   :  { %v7157_v4 = vpop.f32.mrf.mxu0  ;;  %7173 = vmatmul.mubr.msk.f32.vlgmr.msra.gmra.mxu1 %vm389_vm1, %v7154_v1  ;;  %7337 = vmatpush3.msra.mxu0 %v91_v39 }
 0x20d   :  { %7213 = vmatpush3.msra.mxu1 %v6045_v40  ;;  %7338 = vmatprep.subr.mxu0 %v8207_v34  ;;  %v90_v40 = vld [vmem:[#allocation5 + $0x10] sm:$0xff] }
 0x20e   :  { %v1597_v5 = vpop.f32.mrf.mxu0  ;;  %7214 = vmatprep.subr.mxu1 %v6044_v3  ;;  %7339 = vmatpush3.msra.mxu0 %v90_v40 }
 0x20f   :  { %7175 = vmatprep.mubr.msk.f32.mxu1 %vm389_vm1, %v1597_v5  ;;  %7215 = vmatpush3.msra.mxu1 %v6044_v3 }
 0x210   :  { %v7160_v6 = vpop.f32.mrf.mxu0  ;;  %7176 = vmatmul.mubr.msk.f32.gmra.mxu1 %vm389_vm1, %v7157_v4  ;;  %7216 = vmatprep.subr.mxu1 %v6043_v43 }
 0x211   :  { %7217 = vmatpush3.msra.mxu1 %v6043_v43  ;;  %7340 = vmatprep.subr.mxu0 %v8207_v34 }
 0x212   :  { %v1607_v7 = vpop.f32.mrf.mxu0  ;;  %7218 = vmatprep.subr.mxu1 %v6042_v44  ;;  %7341 = vmatpush3.msra.mxu0 %v89_v41 }
 0x213   :  { %7178 = vmatprep.mubr.msk.f32.mxu1 %vm389_vm1, %v1607_v7  ;;  %7219 = vmatpush3.msra.mxu1 %v6042_v44 }
 0x214   :  { %v7163_v46 = vpop.f32.mrf.mxu0  ;;  %7179 = vmatmul.mubr.msk.f32.gmra.mxu1 %vm389_vm1, %v7160_v6  ;;  %7260 = vmatprep.subr.mxu1 %v6065_v45 }
 0x215   :  { %7342 = vmatprep.subr.mxu0 %v8207_v34 }
 0x216   :  { %v1617_v50 = vpop.f32.mrf.mxu0  ;;  %7343 = vmatpush3.msra.mxu0 %v88_v0 }
 0x217   :  { %7181 = vmatprep.mubr.msk.f32.mxu1 %vm389_vm1, %v1617_v50 }
 0x218   :  { %7182 = vmatmul.mubr.msk.f32.gmra.mxu1 %vm389_vm1, %v7163_v46  ;;  %v7202_v51 = vpop.f32.mrf.mxu0 }
 0x21a   :  { %v1867_v55 = vpop.f32.mrf.mxu0 }
 0x21b   :  { %7220 = vmatprep.mubr.msk.f32.mxu1 %vm389_vm1, %v1867_v55 }
 0x21c   :  { %v7205_v60 = vpop.f32.mrf.mxu0  ;;  %7221 = vmatmul.mubr.msk.f32.vlgmr.msra.gmra.mxu1 %vm389_vm1, %v7202_v51 }
 0x21d   :  { %7261 = vmatpush3.msra.mxu1 %v6065_v45 }
 0x21e   :  { %v1877_v8 = vpop.f32.mrf.mxu0  ;;  %7262 = vmatprep.subr.mxu1 %v6064_v56 }
 0x21f   :  { %7223 = vmatprep.mubr.msk.f32.mxu1 %vm389_vm1, %v1877_v8  ;;  %7263 = vmatpush3.msra.mxu1 %v6064_v56 }
 0x220   :  { %v7208_v10 = vpop.f32.mrf.mxu0  ;;  %7224 = vmatmul.mubr.msk.f32.gmra.mxu1 %vm389_vm1, %v7205_v60  ;;  %7264 = vmatprep.subr.mxu1 %v6063_v61 }
 0x221   :  { %7265 = vmatpush3.msra.mxu1 %v6063_v61 }
 0x222   :  { %v1887_v12 = vpop.f32.mrf.mxu0  ;;  %7266 = vmatprep.subr.mxu1 %v6062_v9 }
 0x223   :  { %7226 = vmatprep.mubr.msk.f32.mxu1 %vm389_vm1, %v1887_v12  ;;  %7267 = vmatpush3.msra.mxu1 %v6062_v9 }
 0x224   :  { %v7211_v13 = vpop.f32.mrf.mxu0  ;;  %7227 = vmatmul.mubr.msk.f32.gmra.mxu1 %vm389_vm1, %v7208_v10  ;;  %7308 = vmatprep.subr.mxu1 %v6085_v11 }
 0x226   :  { %v1897_v14 = vpop.f32.mrf.mxu0 }
 0x227   :  { %7229 = vmatprep.mubr.msk.f32.mxu1 %vm389_vm1, %v1897_v14 }
 0x228   :  { %7230 = vmatmul.mubr.msk.f32.gmra.mxu1 %vm389_vm1, %v7211_v13  ;;  %v7250_v15 = vpop.f32.mrf.mxu0 }
 0x22a   :  { %v2147_v16 = vpop.f32.mrf.mxu0 }
 0x22b   :  { %7268 = vmatprep.mubr.msk.f32.mxu1 %vm389_vm1, %v2147_v16 }
 0x22c   :  { %v7253_v18 = vpop.f32.mrf.mxu0  ;;  %7269 = vmatmul.mubr.msk.f32.vlgmr.msra.gmra.mxu1 %vm389_vm1, %v7250_v15 }
 0x22d   :  { %7309 = vmatpush3.msra.mxu1 %v6085_v11 }
 0x22e   :  { %v2157_v20 = vpop.f32.mrf.mxu0  ;;  %7310 = vmatprep.subr.mxu1 %v6084_v17 }
 0x22f   :  { %7271 = vmatprep.mubr.msk.f32.mxu1 %vm389_vm1, %v2157_v20  ;;  %7311 = vmatpush3.msra.mxu1 %v6084_v17 }
 0x230   :  { %v7256_v22 = vpop.f32.mrf.mxu0  ;;  %7272 = vmatmul.mubr.msk.f32.gmra.mxu1 %vm389_vm1, %v7253_v18  ;;  %7312 = vmatprep.subr.mxu1 %v6083_v19 }
 0x231   :  { %7313 = vmatpush3.msra.mxu1 %v6083_v19 }
 0x232   :  { %v2167_v23 = vpop.f32.mrf.mxu0  ;;  %7314 = vmatprep.subr.mxu1 %v6082_v21 }
 0x233   :  { %7274 = vmatprep.mubr.msk.f32.mxu1 %vm389_vm1, %v2167_v23  ;;  %7315 = vmatpush3.msra.mxu1 %v6082_v21 }
 0x234   :  { %v7259_v24 = vpop.f32.mrf.mxu0  ;;  %7275 = vmatmul.mubr.msk.f32.gmra.mxu1 %vm389_vm1, %v7256_v22  ;;  %7347 = vmatprep.subr.mxu1 %v8207_v34 }
 0x236   :  { %v2177_v25 = vpop.f32.mrf.mxu0 }
 0x237   :  { %7277 = vmatprep.mubr.msk.f32.mxu1 %vm389_vm1, %v2177_v25 }
 0x238   :  { %7278 = vmatmul.mubr.msk.f32.gmra.mxu1 %vm389_vm1, %v7259_v24  ;;  %v7298_v26 = vpop.f32.mrf.mxu0 }
 0x23a   :  { %v2427_v27 = vpop.f32.mrf.mxu0 }
 0x23b   :  { %7316 = vmatprep.mubr.msk.f32.mxu1 %vm389_vm1, %v2427_v27 }
 0x23c   :  { %v7301_v28 = vpop.f32.mrf.mxu0  ;;  %7317 = vmatmul.mubr.msk.f32.vlgmr.msra.gmra.mxu1 %vm389_vm1, %v7298_v26 }
 0x23d   :  { %7348 = vmatpush3.msra.mxu1 %v95_v35 }
 0x23e   :  { %v2437_v29 = vpop.f32.mrf.mxu0  ;;  %7349 = vmatprep.subr.mxu1 %v8207_v34 }
 0x23f   :  { %7319 = vmatprep.mubr.msk.f32.mxu1 %vm389_vm1, %v2437_v29  ;;  %7350 = vmatpush3.msra.mxu1 %v94_v36 }
 0x240   :  { %v7304_v30 = vpop.f32.mrf.mxu0  ;;  %7320 = vmatmul.mubr.msk.f32.gmra.mxu1 %vm389_vm1, %v7301_v28  ;;  %7351 = vmatprep.subr.mxu1 %v8207_v34 }
 0x241   :  { %7352 = vmatpush3.msra.mxu1 %v93_v37 }
 0x242   :  { %v2447_v31 = vpop.f32.mrf.mxu0  ;;  %7353 = vmatprep.subr.mxu1 %v8207_v34 }
 0x243   :  { %7322 = vmatprep.mubr.msk.f32.mxu1 %vm389_vm1, %v2447_v31  ;;  %7354 = vmatpush3.msra.mxu1 %v92_v38 }
 0x244   :  { %v7307_v32 = vpop.f32.mrf.mxu0  ;;  %7323 = vmatmul.mubr.msk.f32.gmra.mxu1 %vm389_vm1, %v7304_v30  ;;  %7355 = vmatprep.subr.mxu1 %v8207_v34 }
 0x245   :  { %7356 = vmatpush3.msra.mxu1 %v91_v39  ;;  %v610_v39 = vadd.f32 %v8602_v49, %v8600_v48 }
 0x246   :  { %v2457_v33 = vpop.f32.mrf.mxu0  ;;  %7357 = vmatprep.subr.mxu1 %v8207_v34 }
 0x247   :  { %7325 = vmatprep.mubr.msk.f32.mxu1 %vm389_vm1, %v2457_v33  ;;  %7358 = vmatpush3.msra.mxu1 %v90_v40 }
 0x248   :  { %7326 = vmatmul.mubr.msk.f32.gmra.mxu1 %vm389_vm1, %v7307_v32  ;;  %7359 = vmatprep.subr.mxu1 %v8207_v34 }
 0x249   :  { %7360 = vmatpush3.msra.mxu1 %v89_v41  ;;  %7363 = vmatprep.mubr.msk.f32.mxu1 %vm8208_vm2, %v8207_v34 }
 0x24a   :  { %7361 = vmatprep.subr.mxu1 %v8207_v34 }
 0x24b   :  { %7362 = vmatpush3.msra.mxu1 %v88_v0 }
 0x29c   :  { %v7030_v1 = vpop.f32.mrf.mxu1 }
 0x29d   :  { %v921_v2 = vadd.f32 %v7030_v1, %v8598_v47 }
 0x29e   :  { %v881_v3 = vpop.f32.mrf.mxu1 }
 0x29f   :  { %v920_v41 = vadd.f32 %v881_v3, %v610_v39 }
 0x2a0   :  { %v7033_v4 = vpop.f32.mrf.mxu1 }
 0x2a1   :  { %v923_v43 = vadd.f32 %v7033_v4, %v8604_v52  ;;  %v620_v4 = vadd.f32 %v8608_v54, %v8606_v53  ;;  %v640_v53 = vadd.f32 %v8760_v42, %v8618_v63 }
 0x2a2   :  { %v891_v5 = vpop.f32.mrf.mxu1 }
 0x2a4   :  { %v7036_v44 = vpop.f32.mrf.mxu1 }
 0x2a5   :  { %v925_v6 = vadd.f32 %v7036_v44, %v8610_v57 }
 0x2a6   :  { %v901_v45 = vpop.f32.mrf.mxu1 }
 0x2a8   :  { %v7039_v7 = vpop.f32.mrf.mxu1 }
 0x2a9   :  { %v927_v46 = vadd.f32 %v7039_v7, %v8616_v62  ;;  %v630_v7 = vadd.f32 %v8614_v59, %v8612_v58 }
 0x2aa   :  { %v8772_v50 = vpop.f32.mrf.mxu1 }
 0x2ab   :  { %v924_v48 = vadd.f32 %v901_v45, %v630_v7  ;;  %v926_v45 = vadd.f32 %v8772_v50, %v640_v53 }
 0x2ac   :  { %v7078_v51 = vpop.f32.mrf.mxu1 }
 0x2ad   :  { %v1201_v55 = vadd.f32 %v7078_v51, %v921_v2 }
 0x2ae   :  { %v1161_v56 = vpop.f32.mrf.mxu1 }
 0x2af   :  { %v1200_v1 = vadd.f32 %v1161_v56, %v920_v41 }
 0x2b0   :  { %v7081_v60 = vpop.f32.mrf.mxu1 }
 0x2b1   :  { %v1203_v61 = vadd.f32 %v7081_v60, %v923_v43 }
 0x2b2   :  { %v1171_v47 = vpop.f32.mrf.mxu1 }
 0x2b4   :  { %v7084_v8 = vpop.f32.mrf.mxu1 }
 0x2b5   :  { %v1205_v9 = vadd.f32 %v7084_v8, %v925_v6 }
 0x2b6   :  { %v1181_v10 = vpop.f32.mrf.mxu1 }
 0x2b7   :  { %v1204_v54 = vadd.f32 %v1181_v10, %v924_v48 }
 0x2b8   :  { %v7087_v52 = vpop.f32.mrf.mxu1 }
 0x2b9   :  { %v8774_v11 = vadd.f32 %v7087_v52, %v927_v46  ;;  %v922_v46 = vadd.f32 %v891_v5, %v620_v4  ;;  %v8797_v5 = vld [vmem:[%s9454_s6] ss:$0 sm:$0xff] }
 0x2ba   :  { %v8776_v12 = vpop.f32.mrf.mxu1 }
 0x2bb   :  { %v1202_v49 = vadd.f32 %v1171_v47, %v922_v46  ;;  %v1206_v42 = vadd.f32 %v8776_v12, %v926_v45 }
 0x2bc   :  { %v7126_v57 = vpop.f32.mrf.mxu1 }
 0x2bd   :  { %v1481_v2 = vadd.f32 %v7126_v57, %v1201_v55 }
 0x2be   :  { %v1441_v13 = vpop.f32.mrf.mxu1 }
 0x2bf   :  { %v1480_v44 = vadd.f32 %v1441_v13, %v1200_v1 }
 0x2c0   :  { %v7129_v14 = vpop.f32.mrf.mxu1 }
 0x2c1   :  { %v1483_v60 = vadd.f32 %v7129_v14, %v1203_v61 }
 0x2c2   :  { %v1451_v62 = vpop.f32.mrf.mxu1 }
 0x2c3   :  { %v1482_v57 = vadd.f32 %v1451_v62, %v1202_v49 }
 0x2c4   :  { %v7132_v15 = vpop.f32.mrf.mxu1 }
 0x2c6   :  { %v1461_v16 = vpop.f32.mrf.mxu1 }
 0x2c7   :  { %v1484_v14 = vadd.f32 %v1461_v16, %v1204_v54 }
 0x2c8   :  { %v7135_v17 = vpop.f32.mrf.mxu1 }
 0x2ca   :  { %v8778_v18 = vpop.f32.mrf.mxu1 }
 0x2cb   :  { %v1486_v16 = vadd.f32 %v8778_v18, %v1206_v42 }
 0x2cc   :  { %v7174_v19 = vpop.f32.mrf.mxu1 }
 0x2cd   :  { %v1761_v6 = vadd.f32 %v7174_v19, %v1481_v2  ;;  %v1485_v19 = vadd.f32 %v7132_v15, %v1205_v9  ;;  %v1487_v9 = vadd.f32 %v7135_v17, %v8774_v11 }
 0x2ce   :  { %v1721_v20 = vpop.f32.mrf.mxu1 }
 0x2cf   :  { %v1760_v8 = vadd.f32 %v1721_v20, %v1480_v44 }
 0x2d0   :  { %v7177_v21 = vpop.f32.mrf.mxu1 }
 0x2d1   :  { %v1763_v39 = vadd.f32 %v7177_v21, %v1483_v60 }
 0x2d2   :  { %v1731_v22 = vpop.f32.mrf.mxu1 }
 0x2d3   :  { %v1762_v61 = vadd.f32 %v1731_v22, %v1482_v57 }
 0x2d4   :  { %v7180_v23 = vpop.f32.mrf.mxu1 }
 0x2d5   :  { %v1765_v20 = vadd.f32 %v7180_v23, %v1485_v19 }
 0x2d6   :  { %v1741_v24 = vpop.f32.mrf.mxu1 }
 0x2d8   :  { %v7183_v25 = vpop.f32.mrf.mxu1 }
 0x2d9   :  { %v1767_v22 = vadd.f32 %v7183_v25, %v1487_v9 }
 0x2da   :  { %v8780_v26 = vpop.f32.mrf.mxu1 }
 0x2dc   :  { %v7222_v27 = vpop.f32.mrf.mxu1 }
 0x2dd   :  { %v2041_v52 = vadd.f32 %v7222_v27, %v1761_v6  ;;  %v1764_v27 = vadd.f32 %v1741_v24, %v1484_v14  ;;  %v1766_v24 = vadd.f32 %v8780_v26, %v1486_v16 }
 0x2de   :  { %v2001_v28 = vpop.f32.mrf.mxu1 }
 0x2df   :  { %v2040_v56 = vadd.f32 %v2001_v28, %v1760_v8 }
 0x2e0   :  { %v7225_v29 = vpop.f32.mrf.mxu1 }
 0x2e1   :  { %v2043_v41 = vadd.f32 %v7225_v29, %v1763_v39 }
 0x2e2   :  { %v2011_v30 = vpop.f32.mrf.mxu1 }
 0x2e3   :  { %v2042_v10 = vadd.f32 %v2011_v30, %v1762_v61 }
 0x2e4   :  { %v7228_v31 = vpop.f32.mrf.mxu1 }
 0x2e5   :  { %v2045_v28 = vadd.f32 %v7228_v31, %v1765_v20 }
 0x2e6   :  { %v2021_v32 = vpop.f32.mrf.mxu1 }
 0x2e8   :  { %v8782_v33 = vpop.f32.mrf.mxu1 }
 0x2ea   :  { %v8784_v35 = vpop.f32.mrf.mxu1 }
 0x2ec   :  { %v7270_v36 = vpop.f32.mrf.mxu1 }
 0x2ed   :  { %v2321_v55 = vadd.f32 %v7270_v36, %v2041_v52 }
 0x2ee   :  { %v2281_v37 = vpop.f32.mrf.mxu1 }
 0x2ef   :  { %v2320_v58 = vadd.f32 %v2281_v37, %v2040_v56  ;;  %v2044_v37 = vadd.f32 %v2021_v32, %v1764_v27 }
 0x2f0   :  { %v7273_v38 = vpop.f32.mrf.mxu1 }
 0x2f1   :  { %v2323_v21 = vadd.f32 %v7273_v38, %v2043_v41  ;;  %v2047_v38 = vadd.f32 %v8782_v33, %v1767_v22 }
 0x2f2   :  { %v2291_v40 = vpop.f32.mrf.mxu1 }
 0x2f3   :  { %v2322_v23 = vadd.f32 %v2291_v40, %v2042_v10 }
 0x2f4   :  { %v7276_v0 = vpop.f32.mrf.mxu1 }
 0x2f5   :  { %v2325_v12 = vadd.f32 %v7276_v0, %v2045_v28  ;;  %v2046_v0 = vadd.f32 %v8784_v35, %v1766_v24 }
 0x2f6   :  { %v2301_v43 = vpop.f32.mrf.mxu1 }
 0x2f7   :  { %v2324_v32 = vadd.f32 %v2301_v43, %v2044_v37 }
 0x2f8   :  { %v7279_v51 = vpop.f32.mrf.mxu1 }
 0x2f9   :  { %v2327_v43 = vadd.f32 %v7279_v51, %v2047_v38 }
 0x2fa   :  { %v2311_v3 = vpop.f32.mrf.mxu1 }
 0x2fb   :  { %v2326_v39 = vadd.f32 %v2311_v3, %v2046_v0 }
 0x2fc   :  { %v7318_v13 = vpop.f32.mrf.mxu1 }
 0x2fd   :  { %v2601_v59 = vadd.f32 %v7318_v13, %v2321_v55 }
 0x2fe   :  { %v2561_v47 = vpop.f32.mrf.mxu1 }
 0x2ff   :  { %v2600_v63 = vadd.f32 %v2561_v47, %v2320_v58  ;;  %v8803_v62 = vadd.f32 %v8797_v5, %v2601_v59 }
 0x300   :  { %v7321_v15 = vpop.f32.mrf.mxu1 }
 0x301   :  { %v8806_v29 = vadd.f32 %v8797_v5, %v2600_v63  ;;  %v2603_v50 = vadd.f32 %v7321_v15, %v2323_v21  ;;  %v2635_v30 = vmul.f32 %v8803_v62, %v8803_v62  ;;  %v2622_v1 = vsel %vm112_vm0, %v8803_v62, 0.0 }
 0x302   :  { %v2571_v36 = vpop.f32.mrf.mxu1 }
 0x303   :  { %v2634_v11 = vmul.f32 %v8806_v29, %v8806_v29  ;;  %v8812_v17 = vadd.f32 %v8797_v5, %v2603_v50  ;;  %v2621_v31 = vsel %vm112_vm0, %v8806_v29, 0.0  ;;  %v2602_v18 = vadd.f32 %v2571_v36, %v2322_v23 }
 0x304   :  { %v7324_v25 = vpop.f32.mrf.mxu1  ;;  %v2623_v44 = vadd.f32 %v2622_v1, %v2621_v31  ;;  %v2639_v35 = vsel %vm112_vm0, %v2635_v30, 0.0 }
 0x305   :  { %v2605_v40 = vadd.f32 %v7324_v25, %v2325_v12  ;;  %v2638_v2 = vsel %vm112_vm0, %v2634_v11, 0.0  ;;  %v8825_v26 = vadd.f32 %v8797_v5, %v2602_v18  ;;  %v2637_v6 = vmul.f32 %v8812_v17, %v8812_v17 }
 0x306   :  { %v2581_v4 = vpop.f32.mrf.mxu1  ;;  %v2640_v52 = vadd.f32 %v2639_v35, %v2638_v2  ;;  %v2626_v56 = vsel %vm112_vm0, %v8812_v17, 0.0 }
 0x307   :  { %v8830_v7 = vadd.f32 %v8797_v5, %v2605_v40  ;;  %v2604_v33 = vadd.f32 %v2581_v4, %v2324_v32  ;;  %v2624_v46 = vsel %vm112_vm0, %v8825_v26, 0.0  ;;  %v2636_v60 = vmul.f32 %v8825_v26, %v8825_v26 }
 0x308   :  { %v7327_v8 = vpop.f32.mrf.mxu1  ;;  %v2625_v48 = vadd.f32 %v2624_v46, %v2623_v44  ;;  %v2643_v54 = vsel %vm112_vm0, %v2637_v6, 0.0  ;;  %v8013_v46 = vld [vmem:[#allocation2] sm:$0xff] }
 0x309   :  { %v8838_v49 = vadd.f32 %v8797_v5, %v2604_v33  ;;  %v2641_v51 = vsel %vm112_vm0, %v2636_v60, 0.0  ;;  %v2607_v55 = vadd.f32 %v7327_v8, %v2327_v43  ;;  %v2763_v19 = vmul.f32 %v8830_v7, %v8830_v7 }
 0x30a   :  { %v2591_v53 = vpop.f32.mrf.mxu1  ;;  %v2627_v57 = vadd.f32 %v2626_v56, %v2625_v48  ;;  %v2642_v13 = vadd.f32 %v2641_v51, %v2640_v52  ;;  %v2750_v47 = vsel %vm112_vm0, %v8830_v7, 0.0 }
 0x30b   :  { %v2749_v41 = vsel %vm112_vm0, %v8838_v49, 0.0  ;;  %v2762_v3 = vmul.f32 %v8838_v49, %v8838_v49  ;;  %v8851_v58 = vadd.f32 %v8797_v5, %v2607_v55  ;;  %v2606_v59 = vadd.f32 %v2591_v53, %v2326_v39  ;;  %v8014_v39 = vld [vmem:[#allocation2 + $0x40] sm:$0xff] }
 0x30c   :  { %v2628_v45 = vrot.slane %v2627_v57, 4  ;;  %v2644_v61 = vadd.f32 %v2643_v54, %v2642_v13  ;;  %v2751_v42 = vadd.f32 %v2750_v47, %v2749_v41  ;;  %v2767_v9 = vsel %vm112_vm0, %v2763_v19, 0.0 }
 0x30d   :  { %v2766_v14 = vsel %vm112_vm0, %v2762_v3, 0.0  ;;  %v8857_v20 = vadd.f32 %v8797_v5, %v2606_v59  ;;  %v2765_v10 = vmul.f32 %v8851_v58, %v8851_v58  ;;  %v2754_v5 = vsel %vm112_vm0, %v8851_v58, 0.0 }
 0x30e   :  { %v2629_v21 = vadd.f32 %v2628_v45, %v2627_v57  ;;  %v2645_v63 = vrot.slane %v2644_v61, 4  ;;  %v2768_v16 = vadd.f32 %v2767_v9, %v2766_v14 }
 0x30f   :  { %v2752_v15 = vsel %vm112_vm0, %v8857_v20, 0.0  ;;  %v2764_v27 = vmul.f32 %v8857_v20, %v8857_v20  ;;  %v2771_v24 = vsel %vm112_vm0, %v2765_v10, 0.0 }
 0x310   :  { %v2630_v28 = vrot.slane %v2629_v21, 2  ;;  %v2646_v50 = vadd.f32 %v2645_v63, %v2644_v61  ;;  %v2753_v22 = vadd.f32 %v2752_v15, %v2751_v42  ;;  %v2731_v61 = vlaneseq }
 0x311   :  { %v2769_v23 = vsel %vm112_vm0, %v2764_v27, 0.0 }
 0x312   :  { %v2631_v36 = vadd.f32 %v2630_v28, %v2629_v21  ;;  %v2647_v37 = vrot.slane %v2646_v50, 2  ;;  %v2755_v12 = vadd.f32 %v2754_v5, %v2753_v22  ;;  %v2770_v11 = vadd.f32 %v2769_v23, %v2768_v16 }
 0x313   :  { %v2732_v47 = vshrl.u32 %v2731_v61, 7  ;;  %v3151_v61 = vld [vmem:[#allocation8 + $0x70] sm:$0xff] }
 0x314   :  { %v2756_v30 = vrot.slane %v2755_v12, 4  ;;  %v2772_v31 = vadd.f32 %v2771_v24, %v2770_v11  ;;  %v2632_v18 = vrot.slane %v2631_v36, 1  ;;  %v2648_v25 = vadd.f32 %v2647_v37, %v2646_v50 }
 0x315   :  { %v8876_v14 = vsub.s32 0, %v2732_v47  ;;  %v8878_v21 = vsub.s32 1, %v2732_v47  ;;  %v3038_v47 = vld [vmem:[#allocation8 + $0x38] sm:$0xff] }
 0x316   :  { %v2757_v38 = vadd.f32 %v2756_v30, %v2755_v12  ;;  %v2773_v32 = vrot.slane %v2772_v31, 4  ;;  %v2649_v40 = vrot.slane %v2648_v25, 1  ;;  %v2633_v2 = vadd.f32 %v2632_v18, %v2631_v36 }
 0x318   :  { %v2758_v0 = vrot.slane %v2757_v38, 2  ;;  %v2774_v1 = vadd.f32 %v2773_v32, %v2772_v31  ;;  %v2650_v4 = vadd.f32 %v2649_v40, %v2648_v25 }
 0x31a   :  { %v2759_v44 = vadd.f32 %v2758_v0, %v2757_v38  ;;  %v2775_v6 = vrot.slane %v2774_v1, 2  ;;  %v2652_v33 = vsel %vm2651_vm3, %v2633_v2, %v2650_v4 }
 0x31b   :  { %7345 = vmatmul.mubr.msk.f32.vlgmr.msra.gmra.mxu0 %vm112_vm0, %v2652_v33 }
 0x31c   :  { %v2760_v43 = vrot.slane %v2759_v44, 1  ;;  %v2776_v35 = vadd.f32 %v2775_v6, %v2774_v1  ;;  %7382 = vmatprep.mubr.msk.f32.mxu0 %vm112_vm0, %v8013_v46 }
 0x31e   :  { %v2777_v60 = vrot.slane %v2776_v35, 1  ;;  %v2761_v8 = vadd.f32 %v2760_v43, %v2759_v44 }
 0x320   :  { %v2778_v52 = vadd.f32 %v2777_v60, %v2776_v35 }
 0x322   :  { %v2779_v48 = vsel %vm2651_vm3, %v2761_v8, %v2778_v52 }
 0x323   :  { %7364 = vmatmul.mubr.msk.f32.vlgmr.msra.gmra.mxu1 %vm112_vm0, %v2779_v48 }
 0x324   :  { %7410 = vmatprep.mubr.msk.f32.mxu1 %vm112_vm0, %v8014_v39 }
 0x3db   :  { %v2722_v56 = vpop.f32.mrf.mxu0 }
 0x3dc   :  { %v2726_v51 = vmul.f32 %v2722_v56, %v2722_v56  ;;  %v2734_v10 = vrot.slane %v2722_v56, %v8876_v14 }
 0x3dd   :  { %v7346_v55 = vpop.f32.mrf.mxu0 }
 0x3de   :  { %v2728_v53 = vrot.slane %v2726_v51, 7  ;;  %v2738_v5 = vsub.f32 %v8812_v17, %v2734_v10  ;;  %v2737_v11 = vsub.f32 %v8825_v26, %v2734_v10  ;;  %v6098_v17 = vld [vmem:[%s9454_s6 + $0x2] ss:$0 sm:$0xff]  ;;  %v2735_v25 = vsub.f32 %v8806_v29, %v2734_v10 }
 0x3e0   :  { %v2730_v54 = vsub.f32 %v2722_v56, %v2728_v53 }
 0x3e2   :  { %v2739_v3 = vadd.f32 1e-05, %v2730_v54 }
 0x3e3   :  { %v2849_v57 = vpop.f32.mrf.mxu1 }
 0x3e4   :  { %v2853_v13 = vmul.f32 %v2849_v57, %v2849_v57  ;;  %8005 = vrsqrt.f32 %v2739_v3  ;;  %v2861_v63 = vrot.slane %v2849_v57, %v8876_v14  ;;  %v3152_v3 = vld [vmem:[#allocation8 + $0x78] sm:$0xff] }
 0x3e5   :  { %v7365_v19 = vpop.f32.mrf.mxu1 }
 0x3e6   :  { %v2855_v41 = vrot.slane %v2853_v13, 7  ;;  %v2862_v27 = vsub.f32 %v8838_v49, %v2861_v63  ;;  %v2863_v50 = vsub.f32 %v8830_v7, %v2861_v63  ;;  %v2864_v16 = vsub.f32 %v8857_v20, %v2861_v63  ;;  %v6097_v49 = vld [vmem:[%s9454_s6 + $0x1] ss:$0 sm:$0xff] }
 0x3e7   :  { %v2865_v22 = vsub.f32 %v8851_v58, %v2861_v63  ;;  %v2736_v20 = vsub.f32 %v8803_v62, %v2734_v10  ;;  %v8017_v63 = vld [vmem:[#allocation2 + $0x10] sm:$0xff]  ;;  %v8019_v10 = vld [vmem:[#allocation2 + $0x58] sm:$0xff] }
 0x3e8   :  { %v2857_v59 = vsub.f32 %v2849_v57, %v2855_v41 }
 0x3ea   :  { %v2866_v45 = vadd.f32 1e-05, %v2857_v59  ;;  %v8015_v59 = vld [vmem:[#allocation2 + $0x8] sm:$0xff] }
 0x3ec   :  { %8007 = vrsqrt.f32 %v2866_v45  ;;  %v8016_v45 = vld [vmem:[#allocation2 + $0x48] sm:$0xff] }
 0x3f1   :  { %v8006_v42 = vpop.eup %8005 }
 0x3f2   :  { %v2744_v15 = vrot.slane %v8006_v42, %v8878_v21  ;;  %v8018_v42 = vld [vmem:[#allocation2 + $0x50] sm:$0xff] }
 0x3f4   :  { %v2748_v24 = vmul.f32 %v2744_v15, %v2738_v5  ;;  %v2747_v18 = vmul.f32 %v2744_v15, %v2737_v11  ;;  %v2746_v32 = vmul.f32 %v2744_v15, %v2736_v20  ;;  %v2745_v1 = vmul.f32 %v2744_v15, %v2735_v25  ;;  %v3149_v15 = vld [vmem:[#allocation8 + $0x60] sm:$0xff]  ;;  %v3147_v5 = vld [vmem:[#allocation8 + $0x50] sm:$0xff]  ;;  %v8027_v11 = vld [vmem:[#allocation2 + $0x78] sm:$0xff] }
 0x3f5   :  { %v3034_v20 = vld [vmem:[#allocation8 + $0x18] sm:$0xff] }
 0x3f6   :  { %v2884_v40 = vmul.f32 %v6097_v49, %v2748_v24  ;;  %v2883_v2 = vmul.f32 %v6097_v49, %v2747_v18  ;;  %v2882_v62 = vmul.f32 %v6097_v49, %v2746_v32  ;;  %v2881_v29 = vmul.f32 %v6097_v49, %v2745_v1  ;;  %v3145_v24 = vld [vmem:[#allocation8 + $0x40] sm:$0xff]  ;;  %v3033_v18 = vld [vmem:[#allocation8 + $0x10] sm:$0xff] }
 0x3f8   :  { %v2897_v33 = vadd.f32 %v6098_v17, %v2884_v40  ;;  %v2896_v46 = vadd.f32 %v6098_v17, %v2883_v2  ;;  %v2895_v52 = vadd.f32 %v6098_v17, %v2882_v62  ;;  %v2894_v56 = vadd.f32 %v6098_v17, %v2881_v29 }
 0x3f9   :  { %v8008_v9 = vpop.eup %8007 }
 0x3fa   :  { %v2871_v28 = vrot.slane %v8008_v9, %v8878_v21  ;;  %v2913_v48 = vmul.f32 0.01, %v2897_v33  ;;  %vm2905_vm8 = vcmp.ge.f32.partialorder %v2897_v33, 0.0  ;;  %v2912_v51 = vmul.f32 0.01, %v2896_v46  ;;  %v3150_v9 = vld [vmem:[#allocation8 + $0x68] sm:$0xff] }
 0x3fb   :  { %vm2904_vm9 = vcmp.ge.f32.partialorder %v2896_v46, 0.0  ;;  %v2911_v53 = vmul.f32 0.01, %v2895_v52  ;;  %vm2903_vm10 = vcmp.ge.f32.partialorder %v2895_v52, 0.0  ;;  %v2910_v57 = vmul.f32 0.01, %v2894_v56 }
 0x3fc   :  { %v2872_v23 = vmul.f32 %v2871_v28, %v2862_v27  ;;  %v2873_v36 = vmul.f32 %v2871_v28, %v2863_v50  ;;  %v2874_v37 = vmul.f32 %v2871_v28, %v2864_v16  ;;  %v2875_v12 = vmul.f32 %v2871_v28, %v2865_v22  ;;  %v8020_v27 = vld [vmem:[#allocation2 + $0x18] sm:$0xff]  ;;  %v8021_v28 = vld [vmem:[#allocation2 + $0x20] sm:$0xff]  ;;  %v8023_v22 = vld [vmem:[#allocation2 + $0x68] sm:$0xff] }
 0x3fd   :  { %v8920_v54 = vsel %vm2905_vm8, %v2897_v33, %v2913_v48  ;;  %v8926_v13 = vsel %vm2904_vm9, %v2896_v46, %v2912_v51  ;;  %vm2902_vm11 = vcmp.ge.f32.partialorder %v2894_v56, 0.0  ;;  %v8932_v19 = vsel %vm2903_vm10, %v2895_v52, %v2911_v53  ;;  %v3148_v50 = vld [vmem:[#allocation8 + $0x58] sm:$0xff]  ;;  %v8022_v16 = vld [vmem:[#allocation2 + $0x60] sm:$0xff]  ;;  %v8030_v52 = vld [vmem:[#allocation2 + $0x88] sm:$0xff] }
 0x3fe   :  { %v2886_v30 = vmul.f32 %v6097_v49, %v2873_v36  ;;  %v2887_v31 = vmul.f32 %v6097_v49, %v2874_v37  ;;  %v2888_v7 = vmul.f32 %v6097_v49, %v2875_v12  ;;  %v2885_v58 = vmul.f32 %v6097_v49, %v2872_v23  ;;  %v8024_v23 = vld [vmem:[#allocation2 + $0x28] sm:$0xff]  ;;  %v8025_v36 = vld [vmem:[#allocation2 + $0x30] sm:$0xff]  ;;  %v8033_v51 = vld [vmem:[#allocation2 + $0xa0] sm:$0xff] }
 0x3ff   :  { %v8938_v41 = vsel %vm2902_vm11, %v2894_v56, %v2910_v57  ;;  %v3146_v37 = vld [vmem:[#allocation8 + $0x48] sm:$0xff]  ;;  %v8026_v12 = vld [vmem:[#allocation2 + $0x70] sm:$0xff]  ;;  %v8032_v56 = vld [vmem:[#allocation2 + $0x98] sm:$0xff] }
 0x400   :  { %v2900_v38 = vadd.f32 %v6098_v17, %v2887_v31  ;;  %v2901_v26 = vadd.f32 %v6098_v17, %v2888_v7  ;;  %v2899_v0 = vadd.f32 %v6098_v17, %v2886_v30  ;;  %v2898_v4 = vadd.f32 %v6098_v17, %v2885_v58  ;;  %v3037_v49 = vld [vmem:[#allocation8 + $0x30] sm:$0xff]  ;;  %v8028_v30 = vld [vmem:[#allocation2 + $0x38] sm:$0xff]  ;;  %v3036_v31 = vld [vmem:[#allocation8 + $0x28] sm:$0xff] }
 0x401   :  { %v3035_v7 = vld [vmem:[#allocation8 + $0x20] sm:$0xff]  ;;  %v3032_v17 = vld [vmem:[#allocation8 + $0x8] sm:$0xff]  ;;  %v8031_v48 = vld [vmem:[#allocation2 + $0x90] sm:$0xff] }
 0x402   :  { %vm2909_vm4 = vcmp.ge.f32.partialorder %v2901_v26, 0.0  ;;  %v2916_v44 = vmul.f32 0.01, %v2900_v38  ;;  %v2917_v6 = vmul.f32 0.01, %v2901_v26  ;;  %vm2908_vm5 = vcmp.ge.f32.partialorder %v2900_v38, 0.0 }
 0x403   :  { %v2915_v43 = vmul.f32 0.01, %v2899_v0  ;;  %vm2907_vm6 = vcmp.ge.f32.partialorder %v2899_v0, 0.0  ;;  %v2914_v60 = vmul.f32 0.01, %v2898_v4  ;;  %vm2906_vm7 = vcmp.ge.f32.partialorder %v2898_v4, 0.0 }
 0x404   :  { %v8898_v35 = vsel %vm2909_vm4, %v2901_v26, %v2917_v6  ;;  %v8902_v8 = vsel %vm2908_vm5, %v2900_v38, %v2916_v44  ;;  %v3031_v58 = vld [vmem:[#allocation8] sm:$0xff]  ;;  %v8034_v53 = vld [vmem:[#allocation2 + $0xa8] sm:$0xff]  ;;  %v8035_v57 = vld [vmem:[#allocation2 + $0xb0] sm:$0xff] }
 0x405   :  { %7366 = vmatprep.subr.mxu0 %v8898_v35  ;;  %7394 = vmatprep.subr.mxu1 %v8898_v35  ;;  %v8908_v39 = vsel %vm2907_vm6, %v2899_v0, %v2915_v43  ;;  %v8914_v55 = vsel %vm2906_vm7, %v2898_v4, %v2914_v60  ;;  %v8029_v60 = vld [vmem:[#allocation2 + $0x80] sm:$0xff] }
 0x406   :  { %7367 = vmatpush3.msra.mxu0 %v8898_v35  ;;  %7395 = vmatpush3.msra.mxu1 %v8898_v35 }
 0x407   :  { %7368 = vmatprep.subr.mxu0 %v8902_v8  ;;  %7396 = vmatprep.subr.mxu1 %v8902_v8 }
 0x408   :  { %7369 = vmatpush3.msra.mxu0 %v8902_v8  ;;  %7397 = vmatpush3.msra.mxu1 %v8902_v8 }
 0x409   :  { %7370 = vmatprep.subr.mxu0 %v8908_v39  ;;  %7398 = vmatprep.subr.mxu1 %v8908_v39 }
 0x40a   :  { %7371 = vmatpush3.msra.mxu0 %v8908_v39  ;;  %7399 = vmatpush3.msra.mxu1 %v8908_v39 }
 0x40b   :  { %7372 = vmatprep.subr.mxu0 %v8914_v55  ;;  %7400 = vmatprep.subr.mxu1 %v8914_v55 }
 0x40c   :  { %7373 = vmatpush3.msra.mxu0 %v8914_v55  ;;  %7401 = vmatpush3.msra.mxu1 %v8914_v55 }
 0x40d   :  { %7374 = vmatprep.subr.mxu0 %v8920_v54  ;;  %7402 = vmatprep.subr.mxu1 %v8920_v54 }
 0x40e   :  { %7375 = vmatpush3.msra.mxu0 %v8920_v54  ;;  %7403 = vmatpush3.msra.mxu1 %v8920_v54 }
 0x40f   :  { %7376 = vmatprep.subr.mxu0 %v8926_v13  ;;  %7404 = vmatprep.subr.mxu1 %v8926_v13 }
 0x410   :  { %7377 = vmatpush3.msra.mxu0 %v8926_v13  ;;  %7405 = vmatpush3.msra.mxu1 %v8926_v13 }
 0x411   :  { %7378 = vmatprep.subr.mxu0 %v8932_v19  ;;  %7406 = vmatprep.subr.mxu1 %v8932_v19 }
 0x412   :  { %7379 = vmatpush3.msra.mxu0 %v8932_v19  ;;  %7407 = vmatpush3.msra.mxu1 %v8932_v19 }
 0x413   :  { %7380 = vmatprep.subr.mxu0 %v8938_v41  ;;  %7408 = vmatprep.subr.mxu1 %v8938_v41 }
 0x414   :  { %7381 = vmatpush3.msra.mxu0 %v8938_v41  ;;  %7409 = vmatpush3.msra.mxu1 %v8938_v41 }
 0x415   :  { %7383 = vmatmul.mubr.msk.f32.vlgmr.msra.gmra.mxu0 %vm112_vm0, %v8015_v59  ;;  %7411 = vmatmul.mubr.msk.f32.vlgmr.msra.gmra.mxu1 %vm112_vm0, %v8016_v45  ;;  %v8037_v59 = vld [vmem:[#allocation2 + $0xc0] sm:$0xff]  ;;  %v8038_v45 = vld [vmem:[#allocation2 + $0xc8] sm:$0xff] }
 0x416   :  { %7422 = vmatprep.subr.mxu0 %v3152_v3  ;;  %7385 = vmatprep.mubr.msk.f32.mxu0 %vm112_vm0, %v8017_v63  ;;  %v8041_v63 = vld [vmem:[#allocation2 + $0xe0] sm:$0xff] }
 0x417   :  { %7423 = vmatpush3.msra.mxu0 %v3152_v3  ;;  %7413 = vmatprep.mubr.msk.f32.mxu1 %vm112_vm0, %v8018_v42  ;;  %v8036_v3 = vld [vmem:[#allocation2 + $0xb8] sm:$0xff]  ;;  %v8042_v42 = vld [vmem:[#allocation2 + $0xe8] sm:$0xff] }
 0x418   :  { %7424 = vmatprep.subr.mxu0 %v3151_v61  ;;  %7450 = vmatprep.subr.mxu1 %v3038_v47 }
 0x419   :  { %7425 = vmatpush3.msra.mxu0 %v3151_v61  ;;  %7414 = vmatmul.mubr.msk.f32.gmra.mxu1 %vm112_vm0, %v8019_v10  ;;  %v8039_v61 = vld [vmem:[#allocation2 + $0xd0] sm:$0xff]  ;;  %v8044_v10 = vld [vmem:[#allocation2 + $0xf8] sm:$0xff] }
 0x41a   :  { %7386 = vmatmul.mubr.msk.f32.gmra.mxu0 %vm112_vm0, %v8020_v27  ;;  %7426 = vmatprep.subr.mxu0 %v3150_v9  ;;  %v8046_v27 = vld [vmem:[#allocation2 + $0x108] sm:$0xff] }
 0x41b   :  { %7427 = vmatpush3.msra.mxu0 %v3150_v9  ;;  %7388 = vmatprep.mubr.msk.f32.mxu0 %vm112_vm0, %v8021_v28  ;;  %v8043_v9 = vld [vmem:[#allocation2 + $0xf0] sm:$0xff] }
 0x41c   :  { %7428 = vmatprep.subr.mxu0 %v3149_v15  ;;  %7416 = vmatprep.mubr.msk.f32.mxu1 %vm112_vm0, %v8022_v16  ;;  %v8047_v28 = vld [vmem:[#allocation2 + $0x110] sm:$0xff]  ;;  %v8049_v16 = vld [vmem:[#allocation2 + $0x120] sm:$0xff] }
 0x41d   :  { %7429 = vmatpush3.msra.mxu0 %v3149_v15  ;;  %7417 = vmatmul.mubr.msk.f32.gmra.mxu1 %vm112_vm0, %v8023_v22  ;;  %v8045_v15 = vld [vmem:[#allocation2 + $0x100] sm:$0xff]  ;;  %v8050_v22 = vld [vmem:[#allocation2 + $0x128] sm:$0xff] }
 0x41e   :  { %7389 = vmatmul.mubr.msk.f32.gmra.mxu0 %vm112_vm0, %v8024_v23  ;;  %7430 = vmatprep.subr.mxu0 %v3148_v50  ;;  %v8052_v23 = vld [vmem:[#allocation2 + $0x138] sm:$0xff] }
 0x41f   :  { %7431 = vmatpush3.msra.mxu0 %v3148_v50  ;;  %7391 = vmatprep.mubr.msk.f32.mxu0 %vm112_vm0, %v8025_v36  ;;  %v8048_v50 = vld [vmem:[#allocation2 + $0x118] sm:$0xff]  ;;  %v8053_v36 = vld [vmem:[#allocation2 + $0x140] sm:$0xff] }
 0x420   :  { %7432 = vmatprep.subr.mxu0 %v3147_v5  ;;  %7419 = vmatprep.mubr.msk.f32.mxu1 %vm112_vm0, %v8026_v12  ;;  %v8055_v12 = vld [vmem:[#allocation2 + $0x150] sm:$0xff] }
 0x421   :  { %7433 = vmatpush3.msra.mxu0 %v3147_v5  ;;  %7420 = vmatmul.mubr.msk.f32.gmra.mxu1 %vm112_vm0, %v8027_v11  ;;  %v8051_v5 = vld [vmem:[#allocation2 + $0x130] sm:$0xff]  ;;  %v3524_v11 = vld [vmem:[#allocation8 + $0xb8] sm:$0xff] }
 0x422   :  { %7392 = vmatmul.mubr.msk.f32.gmra.mxu0 %vm112_vm0, %v8028_v30  ;;  %7434 = vmatprep.subr.mxu0 %v3146_v37  ;;  %v3523_v30 = vld [vmem:[#allocation8 + $0xb0] sm:$0xff] }
 0x423   :  { %7435 = vmatpush3.msra.mxu0 %v3146_v37  ;;  %7451 = vmatpush3.msra.mxu1 %v3038_v47  ;;  %v8040_v47 = vld [vmem:[#allocation2 + $0xd8] sm:$0xff]  ;;  %v8054_v37 = vld [vmem:[#allocation2 + $0x148] sm:$0xff] }
 0x424   :  { %7436 = vmatprep.subr.mxu0 %v3145_v24  ;;  %7452 = vmatprep.subr.mxu1 %v3037_v49 }
 0x425   :  { %7437 = vmatpush3.msra.mxu0 %v3145_v24  ;;  %7453 = vmatpush3.msra.mxu1 %v3037_v49  ;;  %v8056_v24 = vld [vmem:[#allocation2 + $0x158] sm:$0xff]  ;;  %v8057_v49 = vld [vmem:[#allocation2 + $0x160] sm:$0xff] }
 0x426   :  { %7478 = vmatprep.subr.mxu0 %v8898_v35  ;;  %7454 = vmatprep.subr.mxu1 %v3036_v31 }
 0x427   :  { %7455 = vmatpush3.msra.mxu1 %v3036_v31  ;;  %v8058_v31 = vld [vmem:[#allocation2 + $0x168] sm:$0xff] }
 0x428   :  { %7456 = vmatprep.subr.mxu1 %v3035_v7 }
 0x429   :  { %7457 = vmatpush3.msra.mxu1 %v3035_v7  ;;  %v3522_v7 = vld [vmem:[#allocation8 + $0xa8] sm:$0xff] }
 0x42a   :  { %7458 = vmatprep.subr.mxu1 %v3034_v20 }
 0x42b   :  { %7459 = vmatpush3.msra.mxu1 %v3034_v20  ;;  %v8059_v20 = vld [vmem:[#allocation2 + $0x170] sm:$0xff] }
 0x42c   :  { %7460 = vmatprep.subr.mxu1 %v3033_v18 }
 0x42d   :  { %7461 = vmatpush3.msra.mxu1 %v3033_v18  ;;  %v8060_v18 = vld [vmem:[#allocation2 + $0x178] sm:$0xff] }
 0x42e   :  { %7462 = vmatprep.subr.mxu1 %v3032_v17 }
 0x42f   :  { %7463 = vmatpush3.msra.mxu1 %v3032_v17  ;;  %v3521_v17 = vld [vmem:[#allocation8 + $0xa0] sm:$0xff] }
 0x430   :  { %7464 = vmatprep.subr.mxu1 %v3031_v58 }
 0x431   :  { %7465 = vmatpush3.msra.mxu1 %v3031_v58  ;;  %v8061_v58 = vld [vmem:[#allocation2 + $0x180] sm:$0xff] }
 0x432   :  { %7506 = vmatprep.subr.mxu1 %v3524_v11 }
 0x4d5   :  { %v7384_v25 = vpop.f32.mrf.mxu0  ;;  %v7412_v38 = vpop.f32.mrf.mxu1 }
 0x4d7   :  { %v2992_v26 = vpop.f32.mrf.mxu0  ;;  %v3105_v32 = vpop.f32.mrf.mxu1 }
 0x4d8   :  { %7438 = vmatprep.mubr.msk.f32.mxu0 %vm112_vm0, %v3105_v32  ;;  %7466 = vmatprep.mubr.msk.f32.mxu1 %vm112_vm0, %v2992_v26  ;;  %v8063_v26 = vld [vmem:[#allocation2 + $0x190] sm:$0xff]  ;;  %v8064_v32 = vld [vmem:[#allocation2 + $0x198] sm:$0xff] }
 0x4d9   :  { %v7415_v40 = vpop.f32.mrf.mxu1  ;;  %7439 = vmatmul.mubr.msk.f32.vlgmr.msra.gmra.mxu0 %vm112_vm0, %v7412_v38  ;;  %7467 = vmatmul.mubr.msk.f32.vlgmr.msra.gmra.mxu1 %vm112_vm0, %v7384_v25  ;;  %v8062_v25 = vld [vmem:[#allocation2 + $0x188] sm:$0xff]  ;;  %v3520_v38 = vld [vmem:[#allocation8 + $0x98] sm:$0xff] }
 0x4da   :  { %v7387_v0 = vpop.f32.mrf.mxu0  ;;  %7479 = vmatpush3.msra.mxu0 %v8898_v35  ;;  %7507 = vmatpush3.msra.mxu1 %v3524_v11 }
 0x4db   :  { %7480 = vmatprep.subr.mxu0 %v8902_v8  ;;  %v3115_v1 = vpop.f32.mrf.mxu1  ;;  %7508 = vmatprep.subr.mxu1 %v3523_v30 }
 0x4dc   :  { %v3002_v2 = vpop.f32.mrf.mxu0  ;;  %7481 = vmatpush3.msra.mxu0 %v8902_v8  ;;  %7441 = vmatprep.mubr.msk.f32.mxu0 %vm112_vm0, %v3115_v1  ;;  %v8066_v1 = vld [vmem:[#allocation2 + $0x1a8] sm:$0xff] }
 0x4dd   :  { %7469 = vmatprep.mubr.msk.f32.mxu1 %vm112_vm0, %v3002_v2  ;;  %7482 = vmatprep.subr.mxu0 %v8908_v39  ;;  %v7418_v4 = vpop.f32.mrf.mxu1  ;;  %v3518_v2 = vld [vmem:[#allocation8 + $0x88] sm:$0xff] }
 0x4de   :  { %v7390_v44 = vpop.f32.mrf.mxu0  ;;  %7442 = vmatmul.mubr.msk.f32.gmra.mxu0 %vm112_vm0, %v7415_v40  ;;  %7470 = vmatmul.mubr.msk.f32.gmra.mxu1 %vm112_vm0, %v7387_v0  ;;  %v3519_v40 = vld [vmem:[#allocation8 + $0x90] sm:$0xff]  ;;  %v8065_v0 = vld [vmem:[#allocation2 + $0x1a0] sm:$0xff] }
 0x4df   :  { %7483 = vmatpush3.msra.mxu0 %v8908_v39  ;;  %v3125_v6 = vpop.f32.mrf.mxu1  ;;  %7509 = vmatpush3.msra.mxu1 %v3523_v30 }
 0x4e0   :  { %7484 = vmatprep.subr.mxu0 %v8914_v55  ;;  %v3012_v62 = vpop.f32.mrf.mxu0  ;;  %7444 = vmatprep.mubr.msk.f32.mxu0 %vm112_vm0, %v3125_v6  ;;  %v3517_v6 = vld [vmem:[#allocation8 + $0x80] sm:$0xff] }
 0x4e1   :  { %7485 = vmatpush3.msra.mxu0 %v8914_v55  ;;  %7472 = vmatprep.mubr.msk.f32.mxu1 %vm112_vm0, %v3012_v62  ;;  %v7421_v33 = vpop.f32.mrf.mxu1  ;;  %v8069_v62 = vld [vmem:[#allocation2 + $0x1c0] sm:$0xff] }
 0x4e2   :  { %7486 = vmatprep.subr.mxu0 %v8920_v54  ;;  %v7393_v43 = vpop.f32.mrf.mxu0  ;;  %7445 = vmatmul.mubr.msk.f32.gmra.mxu0 %vm112_vm0, %v7418_v4  ;;  %v8067_v4 = vld [vmem:[#allocation2 + $0x1b0] sm:$0xff] }
 0x4e3   :  { %7473 = vmatmul.mubr.msk.f32.gmra.mxu1 %vm112_vm0, %v7390_v44  ;;  %7487 = vmatpush3.msra.mxu0 %v8920_v54  ;;  %v3135_v29 = vpop.f32.mrf.mxu1  ;;  %v8068_v44 = vld [vmem:[#allocation2 + $0x1b8] sm:$0xff] }
 0x4e4   :  { %7488 = vmatprep.subr.mxu0 %v8926_v13  ;;  %v3022_v46 = vpop.f32.mrf.mxu0  ;;  %7447 = vmatprep.mubr.msk.f32.mxu0 %vm112_vm0, %v3135_v29  ;;  %v8071_v29 = vld [vmem:[#allocation2 + $0x1d0] sm:$0xff] }
 0x4e5   :  { %7489 = vmatpush3.msra.mxu0 %v8926_v13  ;;  %7475 = vmatprep.mubr.msk.f32.mxu1 %vm112_vm0, %v3022_v46  ;;  %v8072_v46 = vld [vmem:[#allocation2 + $0x1d8] sm:$0xff] }
 0x4e6   :  { %7490 = vmatprep.subr.mxu0 %v8932_v19  ;;  %7448 = vmatmul.mubr.msk.f32.gmra.mxu0 %vm112_vm0, %v7421_v33  ;;  %v8070_v33 = vld [vmem:[#allocation2 + $0x1c8] sm:$0xff] }
 0x4e7   :  { %7476 = vmatmul.mubr.msk.f32.gmra.mxu1 %vm112_vm0, %v7393_v43  ;;  %7491 = vmatpush3.msra.mxu0 %v8932_v19  ;;  %v9115_v43 = vld [vmem:[#allocation8 + $0xf8] sm:$0xff] }
 0x4e8   :  { %7492 = vmatprep.subr.mxu0 %v8938_v41  ;;  %7494 = vmatprep.mubr.msk.f32.mxu0 %vm112_vm0, %v8029_v60  ;;  %v8073_v60 = vld [vmem:[#allocation2 + $0x1e0] sm:$0xff] }
 0x4e9   :  { %7493 = vmatpush3.msra.mxu0 %v8938_v41  ;;  %7510 = vmatprep.subr.mxu1 %v3522_v7 }
 0x4ea   :  { %7534 = vmatprep.subr.mxu0 %v8898_v35  ;;  %7495 = vmatmul.mubr.msk.f32.vlgmr.msra.gmra.mxu0 %vm112_vm0, %v8030_v52  ;;  %v9143_v52 = vld [vmem:[#allocation5 + $0x38] sm:$0xff] }
 0x4eb   :  { %7535 = vmatpush3.msra.mxu0 %v8898_v35  ;;  %7497 = vmatprep.mubr.msk.f32.mxu0 %vm112_vm0, %v8031_v48  ;;  %v8082_v48 = vld [vmem:[#allocation2 + $0x218] sm:$0xff] }
 0x4ec   :  { %7536 = vmatprep.subr.mxu0 %v8902_v8  ;;  %7511 = vmatpush3.msra.mxu1 %v3522_v7 }
 0x4ed   :  { %7537 = vmatpush3.msra.mxu0 %v8902_v8  ;;  %7512 = vmatprep.subr.mxu1 %v3521_v17 }
 0x4ee   :  { %7538 = vmatprep.subr.mxu0 %v8908_v39  ;;  %7498 = vmatmul.mubr.msk.f32.gmra.mxu0 %vm112_vm0, %v8032_v56  ;;  %v9153_v56 = vld [vmem:[#allocation5 + $0x28] sm:$0xff] }
 0x4ef   :  { %7539 = vmatpush3.msra.mxu0 %v8908_v39  ;;  %7500 = vmatprep.mubr.msk.f32.mxu0 %vm112_vm0, %v8033_v51  ;;  %v9157_v51 = vld [vmem:[#allocation5 + $0x20] sm:$0xff] }
 0x4f0   :  { %7540 = vmatprep.subr.mxu0 %v8914_v55  ;;  %7513 = vmatpush3.msra.mxu1 %v3521_v17 }
 0x4f1   :  { %7541 = vmatpush3.msra.mxu0 %v8914_v55  ;;  %7514 = vmatprep.subr.mxu1 %v3520_v38 }
 0x4f2   :  { %7542 = vmatprep.subr.mxu0 %v8920_v54  ;;  %7501 = vmatmul.mubr.msk.f32.gmra.mxu0 %vm112_vm0, %v8034_v53  ;;  %v8086_v53 = vld [vmem:[#allocation2 + $0x228] sm:$0xff] }
 0x4f3   :  { %7543 = vmatpush3.msra.mxu0 %v8920_v54  ;;  %7503 = vmatprep.mubr.msk.f32.mxu0 %vm112_vm0, %v8035_v57  ;;  %v8087_v57 = vld [vmem:[#allocation2 + $0x230] sm:$0xff] }
 0x4f4   :  { %7544 = vmatprep.subr.mxu0 %v8926_v13  ;;  %7515 = vmatpush3.msra.mxu1 %v3520_v38  ;;  %v3773_v38 = vld [vmem:[#allocation8 + $0xe8] sm:$0xff] }
 0x4f5   :  { %7545 = vmatpush3.msra.mxu0 %v8926_v13  ;;  %7516 = vmatprep.subr.mxu1 %v3519_v40 }
 0x4f6   :  { %7546 = vmatprep.subr.mxu0 %v8932_v19  ;;  %7504 = vmatmul.mubr.msk.f32.gmra.mxu0 %vm112_vm0, %v8036_v3  ;;  %v9163_v3 = vld [vmem:[#allocation5 + $0x18] sm:$0xff] }
 0x4f7   :  { %7547 = vmatpush3.msra.mxu0 %v8932_v19  ;;  %7550 = vmatprep.mubr.msk.f32.mxu0 %vm112_vm0, %v8037_v59  ;;  %v9167_v59 = vld [vmem:[#allocation5 + $0x10] sm:$0xff] }
 0x4f8   :  { %7548 = vmatprep.subr.mxu0 %v8938_v41  ;;  %7517 = vmatpush3.msra.mxu1 %v3519_v40 }
 0x4f9   :  { %7549 = vmatpush3.msra.mxu0 %v8938_v41  ;;  %7518 = vmatprep.subr.mxu1 %v3518_v2 }
 0x4fa   :  { %7590 = vmatprep.subr.mxu0 %v8898_v35  ;;  %7551 = vmatmul.mubr.msk.f32.vlgmr.msra.gmra.mxu0 %vm112_vm0, %v8038_v45  ;;  %v8090_v45 = vld [vmem:[#allocation2 + $0x238] sm:$0xff] }
 0x4fb   :  { %7591 = vmatpush3.msra.mxu0 %v8898_v35  ;;  %7553 = vmatprep.mubr.msk.f32.mxu0 %vm112_vm0, %v8039_v61  ;;  %v9172_v61 = vld [vmem:[#allocation5 + $0x8] sm:$0xff] }
 0x4fc   :  { %7592 = vmatprep.subr.mxu0 %v8902_v8  ;;  %7519 = vmatpush3.msra.mxu1 %v3518_v2  ;;  %v3770_v2 = vld [vmem:[#allocation8 + $0xd0] sm:$0xff] }
 0x4fd   :  { %7593 = vmatpush3.msra.mxu0 %v8902_v8  ;;  %7520 = vmatprep.subr.mxu1 %v3517_v6 }
 0x4fe   :  { %7594 = vmatprep.subr.mxu0 %v8908_v39  ;;  %7554 = vmatmul.mubr.msk.f32.gmra.mxu0 %vm112_vm0, %v8040_v47  ;;  %v9178_v47 = vld [vmem:[#allocation5] sm:$0xff] }
 0x4ff   :  { %7595 = vmatpush3.msra.mxu0 %v8908_v39  ;;  %7556 = vmatprep.mubr.msk.f32.mxu0 %vm112_vm0, %v8041_v63 }
 0x500   :  { %7596 = vmatprep.subr.mxu0 %v8914_v55  ;;  %7521 = vmatpush3.msra.mxu1 %v3517_v6 }
 0x501   :  { %7597 = vmatpush3.msra.mxu0 %v8914_v55  ;;  %7562 = vmatprep.subr.mxu1 %v9115_v43 }
 0x502   :  { %7598 = vmatprep.subr.mxu0 %v8920_v54  ;;  %7557 = vmatmul.mubr.msk.f32.gmra.mxu0 %vm112_vm0, %v8042_v42 }
 0x503   :  { %7599 = vmatpush3.msra.mxu0 %v8920_v54  ;;  %7559 = vmatprep.mubr.msk.f32.mxu0 %vm112_vm0, %v8043_v9 }
 0x504   :  { %7600 = vmatprep.subr.mxu0 %v8926_v13 }
 0x505   :  { %7601 = vmatpush3.msra.mxu0 %v8926_v13 }
 0x506   :  { %7602 = vmatprep.subr.mxu0 %v8932_v19  ;;  %7560 = vmatmul.mubr.msk.f32.gmra.mxu0 %vm112_vm0, %v8044_v10 }
 0x507   :  { %7603 = vmatpush3.msra.mxu0 %v8932_v19  ;;  %7606 = vmatprep.mubr.msk.f32.mxu0 %vm112_vm0, %v8045_v15 }
 0x508   :  { %7604 = vmatprep.subr.mxu0 %v8938_v41 }
 0x509   :  { %7605 = vmatpush3.msra.mxu0 %v8938_v41 }
 0x50a   :  { %7646 = vmatprep.subr.mxu0 %v8898_v35  ;;  %7607 = vmatmul.mubr.msk.f32.vlgmr.msra.gmra.mxu0 %vm112_vm0, %v8046_v27 }
 0x50b   :  { %7647 = vmatpush3.msra.mxu0 %v8898_v35  ;;  %7609 = vmatprep.mubr.msk.f32.mxu0 %vm112_vm0, %v8047_v28 }
 0x50c   :  { %7648 = vmatprep.subr.mxu0 %v8902_v8 }
 0x50d   :  { %7649 = vmatpush3.msra.mxu0 %v8902_v8 }
 0x50e   :  { %7650 = vmatprep.subr.mxu0 %v8908_v39  ;;  %7610 = vmatmul.mubr.msk.f32.gmra.mxu0 %vm112_vm0, %v8048_v50 }
 0x50f   :  { %7651 = vmatpush3.msra.mxu0 %v8908_v39  ;;  %7612 = vmatprep.mubr.msk.f32.mxu0 %vm112_vm0, %v8049_v16 }
 0x510   :  { %7652 = vmatprep.subr.mxu0 %v8914_v55 }
 0x511   :  { %7653 = vmatpush3.msra.mxu0 %v8914_v55 }
 0x512   :  { %7654 = vmatprep.subr.mxu0 %v8920_v54  ;;  %7613 = vmatmul.mubr.msk.f32.gmra.mxu0 %vm112_vm0, %v8050_v22 }
 0x513   :  { %7655 = vmatpush3.msra.mxu0 %v8920_v54  ;;  %7615 = vmatprep.mubr.msk.f32.mxu0 %vm112_vm0, %v8051_v5 }
 0x514   :  { %7656 = vmatprep.subr.mxu0 %v8926_v13 }
 0x515   :  { %7657 = vmatpush3.msra.mxu0 %v8926_v13 }
 0x516   :  { %7658 = vmatprep.subr.mxu0 %v8932_v19  ;;  %7616 = vmatmul.mubr.msk.f32.gmra.mxu0 %vm112_vm0, %v8052_v23 }
 0x517   :  { %7659 = vmatpush3.msra.mxu0 %v8932_v19  ;;  %7662 = vmatprep.mubr.msk.f32.mxu0 %vm112_vm0, %v8053_v36 }
 0x518   :  { %7660 = vmatprep.subr.mxu0 %v8938_v41 }
 0x519   :  { %7661 = vmatpush3.msra.mxu0 %v8938_v41 }
 0x51a   :  { %7702 = vmatprep.subr.mxu0 %v8898_v35  ;;  %7663 = vmatmul.mubr.msk.f32.vlgmr.msra.gmra.mxu0 %vm112_vm0, %v8054_v37 }
 0x51b   :  { %7703 = vmatpush3.msra.mxu0 %v8898_v35  ;;  %7665 = vmatprep.mubr.msk.f32.mxu0 %vm112_vm0, %v8055_v12 }
 0x51c   :  { %7704 = vmatprep.subr.mxu0 %v8902_v8 }
 0x51d   :  { %7705 = vmatpush3.msra.mxu0 %v8902_v8 }
 0x51e   :  { %7706 = vmatprep.subr.mxu0 %v8908_v39  ;;  %7666 = vmatmul.mubr.msk.f32.gmra.mxu0 %vm112_vm0, %v8056_v24 }
 0x51f   :  { %7707 = vmatpush3.msra.mxu0 %v8908_v39  ;;  %7668 = vmatprep.mubr.msk.f32.mxu0 %vm112_vm0, %v8057_v49 }
 0x520   :  { %7708 = vmatprep.subr.mxu0 %v8914_v55 }
 0x521   :  { %7709 = vmatpush3.msra.mxu0 %v8914_v55 }
 0x522   :  { %7710 = vmatprep.subr.mxu0 %v8920_v54  ;;  %7669 = vmatmul.mubr.msk.f32.gmra.mxu0 %vm112_vm0, %v8058_v31 }
 0x523   :  { %7711 = vmatpush3.msra.mxu0 %v8920_v54  ;;  %7671 = vmatprep.mubr.msk.f32.mxu0 %vm112_vm0, %v8059_v20 }
 0x524   :  { %7712 = vmatprep.subr.mxu0 %v8926_v13 }
 0x525   :  { %7713 = vmatpush3.msra.mxu0 %v8926_v13 }
 0x526   :  { %7714 = vmatprep.subr.mxu0 %v8932_v19  ;;  %7672 = vmatmul.mubr.msk.f32.gmra.mxu0 %vm112_vm0, %v8060_v18 }
 0x527   :  { %7715 = vmatpush3.msra.mxu0 %v8932_v19  ;;  %7718 = vmatprep.mubr.msk.f32.mxu0 %vm112_vm0, %v8061_v58  ;;  %v3774_v58 = vld [vmem:[#allocation8 + $0xf0] sm:$0xff] }
 0x528   :  { %7716 = vmatprep.subr.mxu0 %v8938_v41 }
 0x529   :  { %7717 = vmatpush3.msra.mxu0 %v8938_v41 }
 0x52a   :  { %7758 = vmatprep.subr.mxu0 %v8898_v35  ;;  %7719 = vmatmul.mubr.msk.f32.vlgmr.msra.gmra.mxu0 %vm112_vm0, %v8062_v25 }
 0x52b   :  { %7759 = vmatpush3.msra.mxu0 %v8898_v35  ;;  %7721 = vmatprep.mubr.msk.f32.mxu0 %vm112_vm0, %v8063_v26 }
 0x52c   :  { %7760 = vmatprep.subr.mxu0 %v8902_v8 }
 0x52d   :  { %7761 = vmatpush3.msra.mxu0 %v8902_v8 }
 0x52e   :  { %7762 = vmatprep.subr.mxu0 %v8908_v39  ;;  %7722 = vmatmul.mubr.msk.f32.gmra.mxu0 %vm112_vm0, %v8064_v32  ;;  %v3772_v32 = vld [vmem:[#allocation8 + $0xe0] sm:$0xff] }
 0x52f   :  { %7763 = vmatpush3.msra.mxu0 %v8908_v39  ;;  %7724 = vmatprep.mubr.msk.f32.mxu0 %vm112_vm0, %v8065_v0  ;;  %v3771_v0 = vld [vmem:[#allocation8 + $0xd8] sm:$0xff] }
 0x530   :  { %7764 = vmatprep.subr.mxu0 %v8914_v55 }
 0x531   :  { %7765 = vmatpush3.msra.mxu0 %v8914_v55 }
 0x532   :  { %7766 = vmatprep.subr.mxu0 %v8920_v54  ;;  %7725 = vmatmul.mubr.msk.f32.gmra.mxu0 %vm112_vm0, %v8066_v1 }
 0x533   :  { %7767 = vmatpush3.msra.mxu0 %v8920_v54  ;;  %7727 = vmatprep.mubr.msk.f32.mxu0 %vm112_vm0, %v8067_v4 }
 0x534   :  { %7768 = vmatprep.subr.mxu0 %v8926_v13 }
 0x535   :  { %7769 = vmatpush3.msra.mxu0 %v8926_v13 }
 0x536   :  { %7770 = vmatprep.subr.mxu0 %v8932_v19  ;;  %7728 = vmatmul.mubr.msk.f32.gmra.mxu0 %vm112_vm0, %v8068_v44  ;;  %v3769_v44 = vld [vmem:[#allocation8 + $0xc8] sm:$0xff] }
 0x537   :  { %7771 = vmatpush3.msra.mxu0 %v8932_v19  ;;  %7774 = vmatprep.mubr.msk.f32.mxu0 %vm112_vm0, %v8069_v62  ;;  %v3768_v62 = vld [vmem:[#allocation8 + $0xc0] sm:$0xff] }
 0x538   :  { %7772 = vmatprep.subr.mxu0 %v8938_v41 }
 0x539   :  { %7773 = vmatpush3.msra.mxu0 %v8938_v41 }
 0x53a   :  { %7814 = vmatprep.subr.mxu0 %v8898_v35  ;;  %7775 = vmatmul.mubr.msk.f32.vlgmr.msra.gmra.mxu0 %vm112_vm0, %v8070_v33 }
 0x53b   :  { %7815 = vmatpush3.msra.mxu0 %v8898_v35  ;;  %7777 = vmatprep.mubr.msk.f32.mxu0 %vm112_vm0, %v8071_v29  ;;  %v8074_v35 = vld [vmem:[#allocation2 + $0x1e8] sm:$0xff] }
 0x53c   :  { %7816 = vmatprep.subr.mxu0 %v8902_v8 }
 0x53d   :  { %7817 = vmatpush3.msra.mxu0 %v8902_v8  ;;  %v8075_v8 = vld [vmem:[#allocation2 + $0x1f0] sm:$0xff] }
 0x53e   :  { %7818 = vmatprep.subr.mxu0 %v8908_v39  ;;  %7778 = vmatmul.mubr.msk.f32.gmra.mxu0 %vm112_vm0, %v8072_v46  ;;  %v4025_v46 = vld [vmem:[#allocation8 + $0x130] sm:$0xff] }
 0x53f   :  { %7819 = vmatpush3.msra.mxu0 %v8908_v39  ;;  %7780 = vmatprep.mubr.msk.f32.mxu0 %vm112_vm0, %v8073_v60  ;;  %v8076_v39 = vld [vmem:[#allocation2 + $0x1f8] sm:$0xff] }
 0x540   :  { %7820 = vmatprep.subr.mxu0 %v8914_v55 }
 0x541   :  { %7821 = vmatpush3.msra.mxu0 %v8914_v55  ;;  %v8077_v55 = vld [vmem:[#allocation2 + $0x200] sm:$0xff] }
 0x542   :  { %7822 = vmatprep.subr.mxu0 %v8920_v54  ;;  %7781 = vmatmul.mubr.msk.f32.gmra.mxu0 %vm112_vm0, %v8074_v35  ;;  %v4024_v35 = vld [vmem:[#allocation8 + $0x128] sm:$0xff] }
 0x543   :  { %7823 = vmatpush3.msra.mxu0 %v8920_v54  ;;  %7783 = vmatprep.mubr.msk.f32.mxu0 %vm112_vm0, %v8075_v8  ;;  %v8078_v54 = vld [vmem:[#allocation2 + $0x208] sm:$0xff] }
 0x544   :  { %7824 = vmatprep.subr.mxu0 %v8926_v13 }
 0x545   :  { %7825 = vmatpush3.msra.mxu0 %v8926_v13  ;;  %v8079_v13 = vld [vmem:[#allocation2 + $0x210] sm:$0xff] }
 0x546   :  { %7826 = vmatprep.subr.mxu0 %v8932_v19  ;;  %7784 = vmatmul.mubr.msk.f32.gmra.mxu0 %vm112_vm0, %v8076_v39  ;;  %v4023_v39 = vld [vmem:[#allocation8 + $0x120] sm:$0xff] }
 0x547   :  { %7827 = vmatpush3.msra.mxu0 %v8932_v19  ;;  %7830 = vmatprep.mubr.msk.f32.mxu0 %vm112_vm0, %v8077_v55  ;;  %v9147_v19 = vld [vmem:[#allocation5 + $0x30] sm:$0xff] }
 0x548   :  { %7828 = vmatprep.subr.mxu0 %v8938_v41 }
 0x549   :  { %7829 = vmatpush3.msra.mxu0 %v8938_v41  ;;  %v8083_v41 = vld [vmem:[#allocation2 + $0x220] sm:$0xff] }
 0x54a   :  { %7831 = vmatmul.mubr.msk.f32.vlgmr.msra.gmra.mxu0 %vm112_vm0, %v8078_v54  ;;  %7870 = vmatprep.subr.mxu0 %v8207_v34  ;;  %v4022_v54 = vld [vmem:[#allocation8 + $0x118] sm:$0xff] }
 0x54b   :  { %7833 = vmatprep.mubr.msk.f32.mxu0 %vm112_vm0, %v8079_v13  ;;  %7871 = vmatpush3.msra.mxu0 %v9143_v52 }
 0x54c   :  { %7872 = vmatprep.subr.mxu0 %v8207_v34 }
 0x54d   :  { %7873 = vmatpush3.msra.mxu0 %v9147_v19 }
 0x54e   :  { %7834 = vmatmul.mubr.msk.f32.gmra.mxu0 %vm112_vm0, %v8082_v48  ;;  %7874 = vmatprep.subr.mxu0 %v8207_v34  ;;  %v4021_v48 = vld [vmem:[#allocation8 + $0x110] sm:$0xff] }
 0x54f   :  { %7836 = vmatprep.mubr.msk.f32.mxu0 %vm112_vm0, %v8083_v41  ;;  %7875 = vmatpush3.msra.mxu0 %v9153_v56 }
 0x550   :  { %7876 = vmatprep.subr.mxu0 %v8207_v34 }
 0x551   :  { %7877 = vmatpush3.msra.mxu0 %v9157_v51 }
 0x552   :  { %7837 = vmatmul.mubr.msk.f32.gmra.mxu0 %vm112_vm0, %v8086_v53  ;;  %7878 = vmatprep.subr.mxu0 %v8207_v34  ;;  %v4020_v53 = vld [vmem:[#allocation8 + $0x108] sm:$0xff] }
 0x553   :  { %7839 = vmatprep.mubr.msk.f32.mxu0 %vm112_vm0, %v8087_v57  ;;  %7879 = vmatpush3.msra.mxu0 %v9163_v3 }
 0x554   :  { %7880 = vmatprep.subr.mxu0 %v8207_v34 }
 0x555   :  { %7881 = vmatpush3.msra.mxu0 %v9167_v59 }
 0x556   :  { %7840 = vmatmul.mubr.msk.f32.gmra.mxu0 %vm112_vm0, %v8090_v45  ;;  %7882 = vmatprep.subr.mxu0 %v8207_v34  ;;  %v4019_v45 = vld [vmem:[#allocation8 + $0x100] sm:$0xff] }
 0x557   :  { %7883 = vmatpush3.msra.mxu0 %v9172_v61  ;;  %7886 = vmatprep.mubr.msk.f32.mxu0 %vm8208_vm2, %v8207_v34 }
 0x558   :  { %7884 = vmatprep.subr.mxu0 %v8207_v34 }
 0x559   :  { %7885 = vmatpush3.msra.mxu0 %v9178_v47 }
 0x599   :  { %v7440_v63 = vpop.f32.mrf.mxu0  ;;  %v7468_v42 = vpop.f32.mrf.mxu1 }
 0x59a   :  { %v9181_v9 = vadd.f32 %v7468_v42, %v7440_v63  ;;  %v4277_v42 = vld [vmem:[#allocation8 + $0x178] sm:$0xff] }
 0x59b   :  { %v3243_v10 = vpop.f32.mrf.mxu0  ;;  %v3372_v15 = vpop.f32.mrf.mxu1 }
 0x59c   :  { %v9183_v27 = vadd.f32 %v3372_v15, %v3243_v10  ;;  %v4276_v15 = vld [vmem:[#allocation8 + $0x170] sm:$0xff] }
 0x59e   :  { %v7443_v28 = vpop.f32.mrf.mxu0  ;;  %v7471_v50 = vpop.f32.mrf.mxu1 }
 0x59f   :  { %v9185_v16 = vadd.f32 %v7471_v50, %v7443_v28  ;;  %v4275_v50 = vld [vmem:[#allocation8 + $0x168] sm:$0xff] }
 0x5a0   :  { %v3253_v22 = vpop.f32.mrf.mxu0  ;;  %v3382_v5 = vpop.f32.mrf.mxu1 }
 0x5a1   :  { %v9187_v23 = vadd.f32 %v3382_v5, %v3253_v22  ;;  %v4274_v5 = vld [vmem:[#allocation8 + $0x160] sm:$0xff] }
 0x5a2   :  { %v7446_v36 = vpop.f32.mrf.mxu0 }
 0x5a3   :  { %v7474_v37 = vpop.f32.mrf.mxu1 }
 0x5a4   :  { %v9189_v12 = vadd.f32 %v7474_v37, %v7446_v36  ;;  %v3263_v11 = vpop.f32.mrf.mxu0  ;;  %v4273_v37 = vld [vmem:[#allocation8 + $0x158] sm:$0xff] }
 0x5a5   :  { %v3392_v24 = vpop.f32.mrf.mxu1 }
 0x5a6   :  { %v9191_v49 = vadd.f32 %v3392_v24, %v3263_v11  ;;  %v7449_v30 = vpop.f32.mrf.mxu0  ;;  %v4272_v24 = vld [vmem:[#allocation8 + $0x150] sm:$0xff] }
 0x5a7   :  { %v7477_v31 = vpop.f32.mrf.mxu1 }
 0x5a8   :  { %v9193_v7 = vadd.f32 %v7477_v31, %v7449_v30  ;;  %v9195_v20 = vpop.f32.mrf.mxu0  ;;  %v4271_v31 = vld [vmem:[#allocation8 + $0x148] sm:$0xff] }
 0x5aa   :  { %v7496_v18 = vpop.f32.mrf.mxu0 }
 0x5ac   :  { %v3477_v17 = vpop.f32.mrf.mxu0 }
 0x5ad   :  { %7522 = vmatprep.mubr.msk.f32.mxu1 %vm112_vm0, %v3477_v17  ;;  %v4270_v17 = vld [vmem:[#allocation8 + $0x140] sm:$0xff] }
 0x5ae   :  { %v7499_v25 = vpop.f32.mrf.mxu0  ;;  %7523 = vmatmul.mubr.msk.f32.vlgmr.msra.gmra.mxu1 %vm112_vm0, %v7496_v18 }
 0x5af   :  { %7563 = vmatpush3.msra.mxu1 %v9115_v43  ;;  %v4026_v43 = vld [vmem:[#allocation8 + $0x138] sm:$0xff] }
 0x5b0   :  { %7564 = vmatprep.subr.mxu1 %v3774_v58  ;;  %v3487_v26 = vpop.f32.mrf.mxu0 }
 0x5b1   :  { %7565 = vmatpush3.msra.mxu1 %v3774_v58  ;;  %7525 = vmatprep.mubr.msk.f32.mxu1 %vm112_vm0, %v3487_v26  ;;  %v4527_v26 = vld [vmem:[#allocation8 + $0x1b0] sm:$0xff] }
 0x5b2   :  { %7566 = vmatprep.subr.mxu1 %v3773_v38  ;;  %v7502_v40 = vpop.f32.mrf.mxu0  ;;  %7526 = vmatmul.mubr.msk.f32.gmra.mxu1 %vm112_vm0, %v7499_v25  ;;  %v4528_v25 = vld [vmem:[#allocation8 + $0x1b8] sm:$0xff] }
 0x5b3   :  { %7567 = vmatpush3.msra.mxu1 %v3773_v38 }
 0x5b4   :  { %7568 = vmatprep.subr.mxu1 %v3772_v32  ;;  %v3497_v1 = vpop.f32.mrf.mxu0 }
 0x5b5   :  { %7569 = vmatpush3.msra.mxu1 %v3772_v32  ;;  %7528 = vmatprep.mubr.msk.f32.mxu1 %vm112_vm0, %v3497_v1  ;;  %v4525_v1 = vld [vmem:[#allocation8 + $0x1a0] sm:$0xff] }
 0x5b6   :  { %7570 = vmatprep.subr.mxu1 %v3771_v0  ;;  %v7505_v4 = vpop.f32.mrf.mxu0  ;;  %7529 = vmatmul.mubr.msk.f32.gmra.mxu1 %vm112_vm0, %v7502_v40  ;;  %v4526_v40 = vld [vmem:[#allocation8 + $0x1a8] sm:$0xff] }
 0x5b7   :  { %7571 = vmatpush3.msra.mxu1 %v3771_v0 }
 0x5b8   :  { %7572 = vmatprep.subr.mxu1 %v3770_v2  ;;  %v3507_v6 = vpop.f32.mrf.mxu0 }
 0x5b9   :  { %7573 = vmatpush3.msra.mxu1 %v3770_v2  ;;  %7531 = vmatprep.mubr.msk.f32.mxu1 %vm112_vm0, %v3507_v6  ;;  %v4523_v6 = vld [vmem:[#allocation8 + $0x190] sm:$0xff] }
 0x5ba   :  { %7574 = vmatprep.subr.mxu1 %v3769_v44  ;;  %7532 = vmatmul.mubr.msk.f32.gmra.mxu1 %vm112_vm0, %v7505_v4  ;;  %v7552_v33 = vpop.f32.mrf.mxu0  ;;  %v4524_v4 = vld [vmem:[#allocation8 + $0x198] sm:$0xff] }
 0x5bb   :  { %7575 = vmatpush3.msra.mxu1 %v3769_v44 }
 0x5bc   :  { %7576 = vmatprep.subr.mxu1 %v3768_v62  ;;  %v3728_v29 = vpop.f32.mrf.mxu0 }
 0x5bd   :  { %7577 = vmatpush3.msra.mxu1 %v3768_v62  ;;  %7578 = vmatprep.mubr.msk.f32.mxu1 %vm112_vm0, %v3728_v29  ;;  %v4521_v29 = vld [vmem:[#allocation8 + $0x180] sm:$0xff] }
 0x5be   :  { %7618 = vmatprep.subr.mxu1 %v4026_v43  ;;  %v7555_v60 = vpop.f32.mrf.mxu0  ;;  %7579 = vmatmul.mubr.msk.f32.vlgmr.msra.gmra.mxu1 %vm112_vm0, %v7552_v33  ;;  %v4522_v33 = vld [vmem:[#allocation8 + $0x188] sm:$0xff] }
 0x5bf   :  { %7619 = vmatpush3.msra.mxu1 %v4026_v43 }
 0x5c0   :  { %7620 = vmatprep.subr.mxu1 %v4025_v46  ;;  %v3738_v8 = vpop.f32.mrf.mxu0 }
 0x5c1   :  { %7621 = vmatpush3.msra.mxu1 %v4025_v46  ;;  %7581 = vmatprep.mubr.msk.f32.mxu1 %vm112_vm0, %v3738_v8  ;;  %v4778_v8 = vld [vmem:[#allocation8 + $0x1f0] sm:$0xff] }
 0x5c2   :  { %7622 = vmatprep.subr.mxu1 %v4024_v35  ;;  %v7558_v55 = vpop.f32.mrf.mxu0  ;;  %7582 = vmatmul.mubr.msk.f32.gmra.mxu1 %vm112_vm0, %v7555_v60  ;;  %v4779_v60 = vld [vmem:[#allocation8 + $0x1f8] sm:$0xff] }
 0x5c3   :  { %7623 = vmatpush3.msra.mxu1 %v4024_v35 }
 0x5c4   :  { %7624 = vmatprep.subr.mxu1 %v4023_v39  ;;  %v3748_v13 = vpop.f32.mrf.mxu0 }
 0x5c5   :  { %7625 = vmatpush3.msra.mxu1 %v4023_v39  ;;  %7584 = vmatprep.mubr.msk.f32.mxu1 %vm112_vm0, %v3748_v13  ;;  %v4776_v13 = vld [vmem:[#allocation8 + $0x1e0] sm:$0xff] }
 0x5c6   :  { %7626 = vmatprep.subr.mxu1 %v4022_v54  ;;  %v7561_v41 = vpop.f32.mrf.mxu0  ;;  %7585 = vmatmul.mubr.msk.f32.gmra.mxu1 %vm112_vm0, %v7558_v55  ;;  %v4777_v55 = vld [vmem:[#allocation8 + $0x1e8] sm:$0xff] }
 0x5c7   :  { %7627 = vmatpush3.msra.mxu1 %v4022_v54 }
 0x5c8   :  { %7628 = vmatprep.subr.mxu1 %v4021_v48  ;;  %v3758_v57 = vpop.f32.mrf.mxu0 }
 0x5c9   :  { %7629 = vmatpush3.msra.mxu1 %v4021_v48  ;;  %7587 = vmatprep.mubr.msk.f32.mxu1 %vm112_vm0, %v3758_v57  ;;  %v4774_v57 = vld [vmem:[#allocation8 + $0x1d0] sm:$0xff] }
 0x5ca   :  { %7630 = vmatprep.subr.mxu1 %v4020_v53  ;;  %7588 = vmatmul.mubr.msk.f32.gmra.mxu1 %vm112_vm0, %v7561_v41  ;;  %v7608_v63 = vpop.f32.mrf.mxu0  ;;  %v4775_v41 = vld [vmem:[#allocation8 + $0x1d8] sm:$0xff] }
 0x5cb   :  { %7631 = vmatpush3.msra.mxu1 %v4020_v53 }
 0x5cc   :  { %7632 = vmatprep.subr.mxu1 %v4019_v45  ;;  %v3979_v10 = vpop.f32.mrf.mxu0 }
 0x5cd   :  { %7633 = vmatpush3.msra.mxu1 %v4019_v45  ;;  %7634 = vmatprep.mubr.msk.f32.mxu1 %vm112_vm0, %v3979_v10  ;;  %v4772_v10 = vld [vmem:[#allocation8 + $0x1c0] sm:$0xff] }
 0x5ce   :  { %7674 = vmatprep.subr.mxu1 %v4277_v42  ;;  %v7611_v28 = vpop.f32.mrf.mxu0  ;;  %7635 = vmatmul.mubr.msk.f32.vlgmr.msra.gmra.mxu1 %vm112_vm0, %v7608_v63  ;;  %v4773_v63 = vld [vmem:[#allocation8 + $0x1c8] sm:$0xff] }
 0x5cf   :  { %7675 = vmatpush3.msra.mxu1 %v4277_v42 }
 0x5d0   :  { %7676 = vmatprep.subr.mxu1 %v4276_v15  ;;  %v3989_v22 = vpop.f32.mrf.mxu0 }
 0x5d1   :  { %7677 = vmatpush3.msra.mxu1 %v4276_v15  ;;  %7637 = vmatprep.mubr.msk.f32.mxu1 %vm112_vm0, %v3989_v22  ;;  %v5029_v22 = vld [vmem:[#allocation8 + $0x230] sm:$0xff] }
 0x5d2   :  { %7678 = vmatprep.subr.mxu1 %v4275_v50  ;;  %v7614_v36 = vpop.f32.mrf.mxu0  ;;  %7638 = vmatmul.mubr.msk.f32.gmra.mxu1 %vm112_vm0, %v7611_v28  ;;  %v5030_v28 = vld [vmem:[#allocation8 + $0x238] sm:$0xff] }
 0x5d3   :  { %7679 = vmatpush3.msra.mxu1 %v4275_v50 }
 0x5d4   :  { %7680 = vmatprep.subr.mxu1 %v4274_v5  ;;  %v3999_v11 = vpop.f32.mrf.mxu0 }
 0x5d5   :  { %7681 = vmatpush3.msra.mxu1 %v4274_v5  ;;  %7640 = vmatprep.mubr.msk.f32.mxu1 %vm112_vm0, %v3999_v11  ;;  %v5027_v11 = vld [vmem:[#allocation8 + $0x220] sm:$0xff] }
 0x5d6   :  { %7682 = vmatprep.subr.mxu1 %v4273_v37  ;;  %v7617_v30 = vpop.f32.mrf.mxu0  ;;  %7641 = vmatmul.mubr.msk.f32.gmra.mxu1 %vm112_vm0, %v7614_v36  ;;  %v5028_v36 = vld [vmem:[#allocation8 + $0x228] sm:$0xff] }
 0x5d7   :  { %7683 = vmatpush3.msra.mxu1 %v4273_v37 }
 0x5d8   :  { %7684 = vmatprep.subr.mxu1 %v4272_v24  ;;  %v4009_v18 = vpop.f32.mrf.mxu0 }
 0x5d9   :  { %7685 = vmatpush3.msra.mxu1 %v4272_v24  ;;  %7643 = vmatprep.mubr.msk.f32.mxu1 %vm112_vm0, %v4009_v18  ;;  %v5025_v18 = vld [vmem:[#allocation8 + $0x210] sm:$0xff] }
 0x5da   :  { %7686 = vmatprep.subr.mxu1 %v4271_v31  ;;  %7644 = vmatmul.mubr.msk.f32.gmra.mxu1 %vm112_vm0, %v7617_v30  ;;  %v7664_v58 = vpop.f32.mrf.mxu0  ;;  %v5026_v30 = vld [vmem:[#allocation8 + $0x218] sm:$0xff] }
 0x5db   :  { %7687 = vmatpush3.msra.mxu1 %v4271_v31 }
 0x5dc   :  { %7688 = vmatprep.subr.mxu1 %v4270_v17  ;;  %v4230_v38 = vpop.f32.mrf.mxu0 }
 0x5dd   :  { %7689 = vmatpush3.msra.mxu1 %v4270_v17  ;;  %7690 = vmatprep.mubr.msk.f32.mxu1 %vm112_vm0, %v4230_v38  ;;  %v5023_v38 = vld [vmem:[#allocation8 + $0x200] sm:$0xff] }
 0x5de   :  { %7730 = vmatprep.subr.mxu1 %v4528_v25  ;;  %v7667_v32 = vpop.f32.mrf.mxu0  ;;  %7691 = vmatmul.mubr.msk.f32.vlgmr.msra.gmra.mxu1 %vm112_vm0, %v7664_v58  ;;  %v5024_v58 = vld [vmem:[#allocation8 + $0x208] sm:$0xff] }
 0x5df   :  { %7731 = vmatpush3.msra.mxu1 %v4528_v25 }
 0x5e0   :  { %7732 = vmatprep.subr.mxu1 %v4527_v26  ;;  %v4240_v0 = vpop.f32.mrf.mxu0 }
 0x5e1   :  { %7733 = vmatpush3.msra.mxu1 %v4527_v26  ;;  %7693 = vmatprep.mubr.msk.f32.mxu1 %vm112_vm0, %v4240_v0 }
 0x5e2   :  { %7734 = vmatprep.subr.mxu1 %v4526_v40  ;;  %v7670_v2 = vpop.f32.mrf.mxu0  ;;  %7694 = vmatmul.mubr.msk.f32.gmra.mxu1 %vm112_vm0, %v7667_v32 }
 0x5e3   :  { %7735 = vmatpush3.msra.mxu1 %v4526_v40 }
 0x5e4   :  { %7736 = vmatprep.subr.mxu1 %v4525_v1  ;;  %v4250_v44 = vpop.f32.mrf.mxu0 }
 0x5e5   :  { %7737 = vmatpush3.msra.mxu1 %v4525_v1  ;;  %7696 = vmatprep.mubr.msk.f32.mxu1 %vm112_vm0, %v4250_v44 }
 0x5e6   :  { %7738 = vmatprep.subr.mxu1 %v4524_v4  ;;  %v7673_v62 = vpop.f32.mrf.mxu0  ;;  %7697 = vmatmul.mubr.msk.f32.gmra.mxu1 %vm112_vm0, %v7670_v2 }
 0x5e7   :  { %7739 = vmatpush3.msra.mxu1 %v4524_v4 }
 0x5e8   :  { %7740 = vmatprep.subr.mxu1 %v4523_v6  ;;  %v4260_v43 = vpop.f32.mrf.mxu0 }
 0x5e9   :  { %7741 = vmatpush3.msra.mxu1 %v4523_v6  ;;  %7699 = vmatprep.mubr.msk.f32.mxu1 %vm112_vm0, %v4260_v43 }
 0x5ea   :  { %7742 = vmatprep.subr.mxu1 %v4522_v33  ;;  %7700 = vmatmul.mubr.msk.f32.gmra.mxu1 %vm112_vm0, %v7673_v62  ;;  %v7720_v46 = vpop.f32.mrf.mxu0 }
 0x5eb   :  { %7743 = vmatpush3.msra.mxu1 %v4522_v33 }
 0x5ec   :  { %7744 = vmatprep.subr.mxu1 %v4521_v29  ;;  %v4481_v35 = vpop.f32.mrf.mxu0 }
 0x5ed   :  { %7745 = vmatpush3.msra.mxu1 %v4521_v29  ;;  %7746 = vmatprep.mubr.msk.f32.mxu1 %vm112_vm0, %v4481_v35 }
 0x5ee   :  { %7786 = vmatprep.subr.mxu1 %v4779_v60  ;;  %v7723_v39 = vpop.f32.mrf.mxu0  ;;  %7747 = vmatmul.mubr.msk.f32.vlgmr.msra.gmra.mxu1 %vm112_vm0, %v7720_v46 }
 0x5ef   :  { %7787 = vmatpush3.msra.mxu1 %v4779_v60 }
 0x5f0   :  { %7788 = vmatprep.subr.mxu1 %v4778_v8  ;;  %v4491_v54 = vpop.f32.mrf.mxu0 }
 0x5f1   :  { %7789 = vmatpush3.msra.mxu1 %v4778_v8  ;;  %7749 = vmatprep.mubr.msk.f32.mxu1 %vm112_vm0, %v4491_v54 }
 0x5f2   :  { %7790 = vmatprep.subr.mxu1 %v4777_v55  ;;  %v7726_v48 = vpop.f32.mrf.mxu0  ;;  %7750 = vmatmul.mubr.msk.f32.gmra.mxu1 %vm112_vm0, %v7723_v39 }
 0x5f3   :  { %7791 = vmatpush3.msra.mxu1 %v4777_v55 }
 0x5f4   :  { %7792 = vmatprep.subr.mxu1 %v4776_v13  ;;  %v4501_v53 = vpop.f32.mrf.mxu0 }
 0x5f5   :  { %7793 = vmatpush3.msra.mxu1 %v4776_v13  ;;  %7752 = vmatprep.mubr.msk.f32.mxu1 %vm112_vm0, %v4501_v53 }
 0x5f6   :  { %7794 = vmatprep.subr.mxu1 %v4775_v41  ;;  %v7729_v45 = vpop.f32.mrf.mxu0  ;;  %7753 = vmatmul.mubr.msk.f32.gmra.mxu1 %vm112_vm0, %v7726_v48 }
 0x5f7   :  { %7795 = vmatpush3.msra.mxu1 %v4775_v41 }
 0x5f8   :  { %7796 = vmatprep.subr.mxu1 %v4774_v57  ;;  %v4511_v42 = vpop.f32.mrf.mxu0 }
 0x5f9   :  { %7797 = vmatpush3.msra.mxu1 %v4774_v57  ;;  %7755 = vmatprep.mubr.msk.f32.mxu1 %vm112_vm0, %v4511_v42 }
 0x5fa   :  { %7798 = vmatprep.subr.mxu1 %v4773_v63  ;;  %7756 = vmatmul.mubr.msk.f32.gmra.mxu1 %vm112_vm0, %v7729_v45  ;;  %v7776_v15 = vpop.f32.mrf.mxu0 }
 0x5fb   :  { %7799 = vmatpush3.msra.mxu1 %v4773_v63 }
 0x5fc   :  { %7800 = vmatprep.subr.mxu1 %v4772_v10  ;;  %v4732_v50 = vpop.f32.mrf.mxu0 }
 0x5fd   :  { %7801 = vmatpush3.msra.mxu1 %v4772_v10  ;;  %7802 = vmatprep.mubr.msk.f32.mxu1 %vm112_vm0, %v4732_v50 }
 0x5fe   :  { %7842 = vmatprep.subr.mxu1 %v5030_v28  ;;  %v7779_v5 = vpop.f32.mrf.mxu0  ;;  %7803 = vmatmul.mubr.msk.f32.vlgmr.msra.gmra.mxu1 %vm112_vm0, %v7776_v15 }
 0x5ff   :  { %7843 = vmatpush3.msra.mxu1 %v5030_v28 }
 0x600   :  { %7844 = vmatprep.subr.mxu1 %v5029_v22  ;;  %v4742_v37 = vpop.f32.mrf.mxu0 }
 0x601   :  { %7845 = vmatpush3.msra.mxu1 %v5029_v22  ;;  %7805 = vmatprep.mubr.msk.f32.mxu1 %vm112_vm0, %v4742_v37 }
 0x602   :  { %7846 = vmatprep.subr.mxu1 %v5028_v36  ;;  %v7782_v24 = vpop.f32.mrf.mxu0  ;;  %7806 = vmatmul.mubr.msk.f32.gmra.mxu1 %vm112_vm0, %v7779_v5 }
 0x603   :  { %7847 = vmatpush3.msra.mxu1 %v5028_v36 }
 0x604   :  { %7848 = vmatprep.subr.mxu1 %v5027_v11  ;;  %v4752_v31 = vpop.f32.mrf.mxu0 }
 0x605   :  { %7849 = vmatpush3.msra.mxu1 %v5027_v11  ;;  %7808 = vmatprep.mubr.msk.f32.mxu1 %vm112_vm0, %v4752_v31 }
 0x606   :  { %7850 = vmatprep.subr.mxu1 %v5026_v30  ;;  %v7785_v17 = vpop.f32.mrf.mxu0  ;;  %7809 = vmatmul.mubr.msk.f32.gmra.mxu1 %vm112_vm0, %v7782_v24 }
 0x607   :  { %7851 = vmatpush3.msra.mxu1 %v5026_v30 }
 0x608   :  { %7852 = vmatprep.subr.mxu1 %v5025_v18  ;;  %v4762_v25 = vpop.f32.mrf.mxu0 }
 0x609   :  { %7853 = vmatpush3.msra.mxu1 %v5025_v18  ;;  %7811 = vmatprep.mubr.msk.f32.mxu1 %vm112_vm0, %v4762_v25 }
 0x60a   :  { %7854 = vmatprep.subr.mxu1 %v5024_v58  ;;  %7812 = vmatmul.mubr.msk.f32.gmra.mxu1 %vm112_vm0, %v7785_v17  ;;  %v7832_v26 = vpop.f32.mrf.mxu0 }
 0x60b   :  { %7855 = vmatpush3.msra.mxu1 %v5024_v58 }
 0x60c   :  { %7856 = vmatprep.subr.mxu1 %v5023_v38  ;;  %v4983_v32 = vpop.f32.mrf.mxu0 }
 0x60d   :  { %7857 = vmatpush3.msra.mxu1 %v5023_v38  ;;  %7858 = vmatprep.mubr.msk.f32.mxu1 %vm112_vm0, %v4983_v32 }
 0x60e   :  { %v7835_v40 = vpop.f32.mrf.mxu0  ;;  %7859 = vmatmul.mubr.msk.f32.vlgmr.msra.gmra.mxu1 %vm112_vm0, %v7832_v26  ;;  %7889 = vmatprep.subr.mxu1 %v8207_v34 }
 0x60f   :  { %7890 = vmatpush3.msra.mxu1 %v9143_v52 }
 0x610   :  { %v4993_v0 = vpop.f32.mrf.mxu0  ;;  %7891 = vmatprep.subr.mxu1 %v8207_v34 }
 0x611   :  { %7861 = vmatprep.mubr.msk.f32.mxu1 %vm112_vm0, %v4993_v0  ;;  %7892 = vmatpush3.msra.mxu1 %v9147_v19 }
 0x612   :  { %v7838_v1 = vpop.f32.mrf.mxu0  ;;  %7862 = vmatmul.mubr.msk.f32.gmra.mxu1 %vm112_vm0, %v7835_v40  ;;  %7893 = vmatprep.subr.mxu1 %v8207_v34 }
 0x613   :  { %7894 = vmatpush3.msra.mxu1 %v9153_v56  ;;  %v3402_v56 = vpop.f32.mrf.mxu1 }
 0x614   :  { %v5003_v2 = vpop.f32.mrf.mxu0  ;;  %7895 = vmatprep.subr.mxu1 %v8207_v34  ;;  %v3403_v46 = vadd.f32 %v3402_v56, %v9195_v20 }
 0x615   :  { %7864 = vmatprep.mubr.msk.f32.mxu1 %vm112_vm0, %v5003_v2  ;;  %7896 = vmatpush3.msra.mxu1 %v9157_v51 }
 0x616   :  { %v7841_v52 = vpop.f32.mrf.mxu0  ;;  %7865 = vmatmul.mubr.msk.f32.gmra.mxu1 %vm112_vm0, %v7838_v1  ;;  %7897 = vmatprep.subr.mxu1 %v8207_v34 }
 0x617   :  { %7898 = vmatpush3.msra.mxu1 %v9163_v3 }
 0x618   :  { %v5013_v19 = vpop.f32.mrf.mxu0  ;;  %7899 = vmatprep.subr.mxu1 %v8207_v34 }
 0x619   :  { %7867 = vmatprep.mubr.msk.f32.mxu1 %vm112_vm0, %v5013_v19  ;;  %7900 = vmatpush3.msra.mxu1 %v9167_v59 }
 0x61a   :  { %7868 = vmatmul.mubr.msk.f32.gmra.mxu1 %vm112_vm0, %v7841_v52  ;;  %7901 = vmatprep.subr.mxu1 %v8207_v34 }
 0x61b   :  { %7902 = vmatpush3.msra.mxu1 %v9172_v61  ;;  %7905 = vmatprep.mubr.msk.f32.mxu1 %vm8208_vm2, %v8207_v34 }
 0x61c   :  { %7903 = vmatprep.subr.mxu1 %v8207_v34 }
 0x61d   :  { %7904 = vmatpush3.msra.mxu1 %v9178_v47 }
 0x66e   :  { %v7524_v51 = vpop.f32.mrf.mxu1 }
 0x66f   :  { %v3655_v3 = vadd.f32 %v7524_v51, %v9181_v9 }
 0x670   :  { %v3615_v4 = vpop.f32.mrf.mxu1 }
 0x671   :  { %v3654_v59 = vadd.f32 %v3615_v4, %v9183_v27 }
 0x672   :  { %v7527_v44 = vpop.f32.mrf.mxu1 }
 0x673   :  { %v3657_v6 = vadd.f32 %v7527_v44, %v9185_v16 }
 0x674   :  { %v3625_v62 = vpop.f32.mrf.mxu1 }
 0x675   :  { %v3656_v61 = vadd.f32 %v3625_v62, %v9187_v23 }
 0x676   :  { %v7530_v33 = vpop.f32.mrf.mxu1 }
 0x677   :  { %v3659_v43 = vadd.f32 %v7530_v33, %v9189_v12 }
 0x678   :  { %v3635_v29 = vpop.f32.mrf.mxu1 }
 0x679   :  { %v3658_v34 = vadd.f32 %v3635_v29, %v9191_v49 }
 0x67a   :  { %v7533_v47 = vpop.f32.mrf.mxu1 }
 0x67b   :  { %v3661_v9 = vadd.f32 %v7533_v47, %v9193_v7 }
 0x67c   :  { %v3645_v60 = vpop.f32.mrf.mxu1 }
 0x67d   :  { %v3660_v35 = vadd.f32 %v3645_v60, %v3403_v46 }
 0x67e   :  { %v7580_v27 = vpop.f32.mrf.mxu1 }
 0x67f   :  { %v3906_v8 = vadd.f32 %v7580_v27, %v3655_v3 }
 0x680   :  { %v3866_v39 = vpop.f32.mrf.mxu1 }
 0x681   :  { %v3905_v16 = vadd.f32 %v3866_v39, %v3654_v59 }
 0x682   :  { %v7583_v55 = vpop.f32.mrf.mxu1 }
 0x683   :  { %v3908_v54 = vadd.f32 %v7583_v55, %v3657_v6 }
 0x684   :  { %v3876_v23 = vpop.f32.mrf.mxu1 }
 0x685   :  { %v3907_v13 = vadd.f32 %v3876_v23, %v3656_v61 }
 0x686   :  { %v7586_v48 = vpop.f32.mrf.mxu1 }
 0x687   :  { %v3910_v12 = vadd.f32 %v7586_v48, %v3659_v43 }
 0x688   :  { %v3886_v41 = vpop.f32.mrf.mxu1 }
 0x689   :  { %v3909_v53 = vadd.f32 %v3886_v41, %v3658_v34 }
 0x68a   :  { %v7589_v49 = vpop.f32.mrf.mxu1 }
 0x68b   :  { %v3912_v57 = vadd.f32 %v7589_v49, %v3661_v9 }
 0x68c   :  { %v3896_v45 = vpop.f32.mrf.mxu1 }
 0x68d   :  { %v9280_v20 = vadd.f32 %v3896_v45, %v3660_v35 }
 0x68e   :  { %v7636_v7 = vpop.f32.mrf.mxu1 }
 0x68f   :  { %v4157_v51 = vadd.f32 %v7636_v7, %v3906_v8  ;;  %v9285_v8 = vld [vmem:[%s9456_s8] ss:$0 sm:$0xff] }
 0x690   :  { %v4117_v63 = vpop.f32.mrf.mxu1 }
 0x691   :  { %v4156_v4 = vadd.f32 %v4117_v63, %v3905_v16 }
 0x692   :  { %v7639_v42 = vpop.f32.mrf.mxu1 }
 0x693   :  { %v4159_v6 = vadd.f32 %v7639_v42, %v3908_v54 }
 0x694   :  { %v4127_v10 = vpop.f32.mrf.mxu1 }
 0x695   :  { %v4158_v47 = vadd.f32 %v4127_v10, %v3907_v13 }
 0x696   :  { %v7642_v15 = vpop.f32.mrf.mxu1 }
 0x697   :  { %v4161_v9 = vadd.f32 %v7642_v15, %v3910_v12 }
 0x698   :  { %v4137_v28 = vpop.f32.mrf.mxu1 }
 0x699   :  { %v4160_v55 = vadd.f32 %v4137_v28, %v3909_v53 }
 0x69a   :  { %v7645_v50 = vpop.f32.mrf.mxu1 }
 0x69b   :  { %v4163_v41 = vadd.f32 %v7645_v50, %v3912_v57 }
 0x69c   :  { %v4147_v22 = vpop.f32.mrf.mxu1 }
 0x69d   :  { %v4162_v10 = vadd.f32 %v4147_v22, %v9280_v20 }
 0x69e   :  { %v7692_v5 = vpop.f32.mrf.mxu1 }
 0x69f   :  { %v4408_v59 = vadd.f32 %v7692_v5, %v4157_v51 }
 0x6a0   :  { %v4368_v36 = vpop.f32.mrf.mxu1 }
 0x6a1   :  { %v4407_v62 = vadd.f32 %v4368_v36, %v4156_v4 }
 0x6a2   :  { %v7695_v37 = vpop.f32.mrf.mxu1 }
 0x6a3   :  { %v4410_v43 = vadd.f32 %v7695_v37, %v4159_v6 }
 0x6a4   :  { %v4378_v11 = vpop.f32.mrf.mxu1 }
 0x6a5   :  { %v4409_v39 = vadd.f32 %v4378_v11, %v4158_v47 }
 0x6a6   :  { %v7698_v24 = vpop.f32.mrf.mxu1 }
 0x6a7   :  { %v4412_v54 = vadd.f32 %v7698_v24, %v4161_v9 }
 0x6a8   :  { %v4388_v30 = vpop.f32.mrf.mxu1 }
 0x6a9   :  { %v4411_v45 = vadd.f32 %v4388_v30, %v4160_v55 }
 0x6aa   :  { %v7701_v31 = vpop.f32.mrf.mxu1 }
 0x6ab   :  { %v4414_v15 = vadd.f32 %v7701_v31, %v4163_v41 }
 0x6ac   :  { %v4398_v18 = vpop.f32.mrf.mxu1 }
 0x6ad   :  { %v4413_v37 = vadd.f32 %v4398_v18, %v4162_v10 }
 0x6ae   :  { %v7748_v17 = vpop.f32.mrf.mxu1 }
 0x6af   :  { %v4659_v61 = vadd.f32 %v7748_v17, %v4408_v59 }
 0x6b0   :  { %v4619_v58 = vpop.f32.mrf.mxu1 }
 0x6b1   :  { %v4658_v29 = vadd.f32 %v4619_v58, %v4407_v62 }
 0x6b2   :  { %v7751_v25 = vpop.f32.mrf.mxu1 }
 0x6b3   :  { %v4661_v60 = vadd.f32 %v7751_v25, %v4410_v43 }
 0x6b4   :  { %v4629_v38 = vpop.f32.mrf.mxu1 }
 0x6b5   :  { %v4660_v49 = vadd.f32 %v4629_v38, %v4409_v39 }
 0x6b6   :  { %v7754_v26 = vpop.f32.mrf.mxu1 }
 0x6b7   :  { %v4663_v7 = vadd.f32 %v7754_v26, %v4412_v54 }
 0x6b8   :  { %v4639_v32 = vpop.f32.mrf.mxu1 }
 0x6b9   :  { %v4662_v28 = vadd.f32 %v4639_v32, %v4411_v45 }
 0x6ba   :  { %v7757_v40 = vpop.f32.mrf.mxu1 }
 0x6bb   :  { %v4665_v22 = vadd.f32 %v7757_v40, %v4414_v15 }
 0x6bc   :  { %v4649_v0 = vpop.f32.mrf.mxu1 }
 0x6bd   :  { %v4664_v58 = vadd.f32 %v4649_v0, %v4413_v37 }
 0x6be   :  { %v7804_v1 = vpop.f32.mrf.mxu1 }
 0x6bf   :  { %v4910_v34 = vadd.f32 %v7804_v1, %v4659_v61 }
 0x6c0   :  { %v4870_v2 = vpop.f32.mrf.mxu1 }
 0x6c1   :  { %v4909_v35 = vadd.f32 %v4870_v2, %v4658_v29 }
 0x6c2   :  { %v7807_v52 = vpop.f32.mrf.mxu1 }
 0x6c3   :  { %v4912_v23 = vadd.f32 %v7807_v52, %v4661_v60 }
 0x6c4   :  { %v4880_v19 = vpop.f32.mrf.mxu1 }
 0x6c5   :  { %v4911_v5 = vadd.f32 %v4880_v19, %v4660_v49 }
 0x6c6   :  { %v7810_v56 = vpop.f32.mrf.mxu1 }
 0x6c7   :  { %v4914_v36 = vadd.f32 %v7810_v56, %v4663_v7 }
 0x6c8   :  { %v4890_v3 = vpop.f32.mrf.mxu1 }
 0x6c9   :  { %v4913_v31 = vadd.f32 %v4890_v3, %v4662_v28 }
 0x6ca   :  { %v7813_v44 = vpop.f32.mrf.mxu1 }
 0x6cb   :  { %v4916_v52 = vadd.f32 %v7813_v44, %v4665_v22 }
 0x6cc   :  { %v4900_v33 = vpop.f32.mrf.mxu1 }
 0x6cd   :  { %v4915_v6 = vadd.f32 %v4900_v33, %v4664_v58 }
 0x6ce   :  { %v7860_v46 = vpop.f32.mrf.mxu1 }
 0x6cf   :  { %v5161_v27 = vadd.f32 %v7860_v46, %v4910_v34 }
 0x6d0   :  { %v5121_v16 = vpop.f32.mrf.mxu1 }
 0x6d1   :  { %v5160_v48 = vadd.f32 %v5121_v16, %v4909_v35  ;;  %v9288_v13 = vadd.f32 %v9285_v8, %v5161_v27 }
 0x6d2   :  { %v7863_v12 = vpop.f32.mrf.mxu1 }
 0x6d3   :  { %v9291_v63 = vadd.f32 %v9285_v8, %v5160_v48  ;;  %v5163_v42 = vadd.f32 %v7863_v12, %v4912_v23  ;;  %v5195_v11 = vmul.f32 %v9288_v13, %v9288_v13  ;;  %v5182_v25 = vsel %vm112_vm0, %v9288_v13, 0.0 }
 0x6d4   :  { %v5131_v53 = vpop.f32.mrf.mxu1 }
 0x6d5   :  { %v5194_v57 = vmul.f32 %v9291_v63, %v9291_v63  ;;  %v9297_v50 = vadd.f32 %v9285_v8, %v5163_v42  ;;  %v5181_v24 = vsel %vm112_vm0, %v9291_v63, 0.0  ;;  %v5162_v30 = vadd.f32 %v5131_v53, %v4911_v5 }
 0x6d6   :  { %v7866_v20 = vpop.f32.mrf.mxu1  ;;  %v5183_v32 = vadd.f32 %v5182_v25, %v5181_v24  ;;  %v5199_v0 = vsel %vm112_vm0, %v5195_v11, 0.0 }
 0x6d7   :  { %v5165_v17 = vadd.f32 %v7866_v20, %v4914_v36  ;;  %v5198_v38 = vsel %vm112_vm0, %v5194_v57, 0.0  ;;  %v9307_v26 = vadd.f32 %v9285_v8, %v5162_v30  ;;  %v5197_v1 = vmul.f32 %v9297_v50, %v9297_v50 }
 0x6d8   :  { %v5141_v18 = vpop.f32.mrf.mxu1  ;;  %v5200_v3 = vadd.f32 %v5199_v0, %v5198_v38  ;;  %v5186_v62 = vsel %vm112_vm0, %v9297_v50, 0.0 }
 0x6d9   :  { %v9312_v2 = vadd.f32 %v9285_v8, %v5165_v17  ;;  %v5164_v40 = vadd.f32 %v5141_v18, %v4913_v31  ;;  %v5184_v19 = vsel %vm112_vm0, %v9307_v26, 0.0  ;;  %v5196_v56 = vmul.f32 %v9307_v26, %v9307_v26 }
 0x6da   :  { %v7869_v51 = vpop.f32.mrf.mxu1  ;;  %v5185_v4 = vadd.f32 %v5184_v19, %v5183_v32  ;;  %v5203_v29 = vsel %vm112_vm0, %v5197_v1, 0.0 }
 0x6db   :  { %v9320_v59 = vadd.f32 %v9285_v8, %v5164_v40  ;;  %v5201_v44 = vsel %vm112_vm0, %v5196_v56, 0.0  ;;  %v5167_v61 = vadd.f32 %v7869_v51, %v4916_v52  ;;  %v5322_v46 = vmul.f32 %v9312_v2, %v9312_v2 }
 0x6dc   :  { %v5151_v43 = vpop.f32.mrf.mxu1  ;;  %v5187_v34 = vadd.f32 %v5186_v62, %v5185_v4  ;;  %v5202_v47 = vadd.f32 %v5201_v44, %v5200_v3  ;;  %v5309_v16 = vsel %vm112_vm0, %v9312_v2, 0.0  ;;  %v5587_v62 = vld [vmem:[#allocation7 + $0x20] sm:$0xff] }
 0x6dd   :  { %v5308_v9 = vsel %vm112_vm0, %v9320_v59, 0.0  ;;  %v5321_v33 = vmul.f32 %v9320_v59, %v9320_v59  ;;  %v9333_v60 = vadd.f32 %v9285_v8, %v5167_v61  ;;  %v5166_v35 = vadd.f32 %v5151_v43, %v4915_v6  ;;  %v5485_v6 = vld [vmem:[#allocation7] sm:$0xff] }
 0x6de   :  { %v5188_v27 = vrot.slane %v5187_v34, 4  ;;  %v5204_v39 = vadd.f32 %v5203_v29, %v5202_v47  ;;  %v5310_v41 = vadd.f32 %v5309_v16, %v5308_v9  ;;  %v5326_v49 = vsel %vm112_vm0, %v5322_v46, 0.0 }
 0x6df   :  { %v5325_v55 = vsel %vm112_vm0, %v5321_v33, 0.0  ;;  %v9339_v54 = vadd.f32 %v9285_v8, %v5166_v35  ;;  %v5324_v12 = vmul.f32 %v9333_v60, %v9333_v60  ;;  %v5313_v8 = vsel %vm112_vm0, %v9333_v60, 0.0 }
 0x6e0   :  { %v5189_v23 = vadd.f32 %v5188_v27, %v5187_v34  ;;  %v5205_v48 = vrot.slane %v5204_v39, 4  ;;  %v5327_v15 = vadd.f32 %v5326_v49, %v5325_v55 }
 0x6e1   :  { %v5311_v45 = vsel %vm112_vm0, %v9339_v54, 0.0  ;;  %v5323_v7 = vmul.f32 %v9339_v54, %v9339_v54  ;;  %v5330_v11 = vsel %vm112_vm0, %v5324_v12, 0.0 }
 0x6e2   :  { %v5190_v42 = vrot.slane %v5189_v23, 2  ;;  %v5206_v10 = vadd.f32 %v5205_v48, %v5204_v39  ;;  %v5312_v5 = vadd.f32 %v5311_v45, %v5310_v41 }
 0x6e3   :  { %v5328_v53 = vsel %vm112_vm0, %v5323_v7, 0.0 }
 0x6e4   :  { %v5191_v28 = vadd.f32 %v5190_v42, %v5189_v23  ;;  %v5207_v36 = vrot.slane %v5206_v10, 2  ;;  %v5314_v57 = vadd.f32 %v5313_v8, %v5312_v5  ;;  %v5329_v37 = vadd.f32 %v5328_v53, %v5327_v15 }
 0x6e6   :  { %v5192_v24 = vrot.slane %v5191_v28, 1  ;;  %v5208_v30 = vadd.f32 %v5207_v36, %v5206_v10  ;;  %v5315_v20 = vrot.slane %v5314_v57, 4  ;;  %v5331_v22 = vadd.f32 %v5330_v11, %v5329_v37 }
 0x6e8   :  { %v5209_v31 = vrot.slane %v5208_v30, 1  ;;  %v5316_v17 = vadd.f32 %v5315_v20, %v5314_v57  ;;  %v5332_v58 = vrot.slane %v5331_v22, 4  ;;  %v5193_v25 = vadd.f32 %v5192_v24, %v5191_v28 }
 0x6ea   :  { %v5317_v38 = vrot.slane %v5316_v17, 2  ;;  %v5333_v18 = vadd.f32 %v5332_v58, %v5331_v22  ;;  %v5210_v32 = vadd.f32 %v5209_v31, %v5208_v30 }
 0x6ec   :  { %v5318_v1 = vadd.f32 %v5317_v38, %v5316_v17  ;;  %v5334_v40 = vrot.slane %v5333_v18, 2  ;;  %v5211_v52 = vsel %vm2651_vm3, %v5193_v25, %v5210_v32 }
 0x6ed   :  { %7887 = vmatmul.mubr.msk.f32.vlgmr.msra.gmra.mxu0 %vm112_vm0, %v5211_v52 }
 0x6ee   :  { %v5319_v0 = vrot.slane %v5318_v1, 1  ;;  %v5335_v19 = vadd.f32 %v5334_v40, %v5333_v18  ;;  %7924 = vmatprep.mubr.msk.f32.mxu0 %vm112_vm0, %v5485_v6 }
 0x6f0   :  { %v5336_v56 = vrot.slane %v5335_v19, 1  ;;  %v5320_v51 = vadd.f32 %v5319_v0, %v5318_v1 }
 0x6f2   :  { %v5337_v3 = vadd.f32 %v5336_v56, %v5335_v19 }
 0x6f4   :  { %v5338_v4 = vsel %vm2651_vm3, %v5320_v51, %v5337_v3 }
 0x6f5   :  { %7906 = vmatmul.mubr.msk.f32.vlgmr.msra.gmra.mxu1 %vm112_vm0, %v5338_v4 }
 0x6f6   :  { %7946 = vmatprep.mubr.msk.f32.mxu1 %vm112_vm0, %v5587_v62 }
 0x7ad   :  { %v5281_v44 = vpop.f32.mrf.mxu0 }
 0x7ae   :  { %v5285_v61 = vmul.f32 %v5281_v44, %v5281_v44  ;;  %v5293_v55 = vrot.slane %v5281_v44, %v8876_v14 }
 0x7af   :  { %v7888_v43 = vpop.f32.mrf.mxu0 }
 0x7b0   :  { %v5287_v29 = vrot.slane %v5285_v61, 7  ;;  %v5297_v49 = vsub.f32 %v9297_v50, %v5293_v55  ;;  %v5296_v15 = vsub.f32 %v9307_v26, %v5293_v55  ;;  %v5295_v36 = vsub.f32 %v9288_v13, %v5293_v55  ;;  %v6246_v50 = vld [vmem:[%s9456_s8 + $0x1] ss:$0 sm:$0xff]  ;;  %v6247_v26 = vld [vmem:[%s9456_s8 + $0x2] ss:$0 sm:$0xff] }
 0x7b2   :  { %v5289_v34 = vsub.f32 %v5281_v44, %v5287_v29 }
 0x7b4   :  { %v5298_v47 = vadd.f32 1e-05, %v5289_v34  ;;  %v5486_v34 = vld [vmem:[#allocation7 + $0x8] sm:$0xff] }
 0x7b5   :  { %v5408_v46 = vpop.f32.mrf.mxu1 }
 0x7b6   :  { %v5412_v9 = vmul.f32 %v5408_v46, %v5408_v46  ;;  %8009 = vrsqrt.f32 %v5298_v47  ;;  %v5420_v23 = vrot.slane %v5408_v46, %v8876_v14  ;;  %v5588_v47 = vld [vmem:[#allocation7 + $0x28] sm:$0xff] }
 0x7b7   :  { %v7907_v33 = vpop.f32.mrf.mxu1 }
 0x7b8   :  { %v5414_v35 = vrot.slane %v5412_v9, 7  ;;  %v5421_v12 = vsub.f32 %v9320_v59, %v5420_v23  ;;  %v5422_v45 = vsub.f32 %v9312_v2, %v5420_v23  ;;  %v5423_v7 = vsub.f32 %v9339_v54, %v5420_v23  ;;  %v5589_v9 = vld [vmem:[#allocation7 + $0x30] sm:$0xff]  ;;  %v5699_v33 = vld [vmem:[%s9452_s4 + $0x38] sm:$0xff] }
 0x7b9   :  { %v5424_v42 = vsub.f32 %v9333_v60, %v5420_v23  ;;  %v5697_v23 = vld [vmem:[%s9452_s4 + $0x28] sm:$0xff] }
 0x7ba   :  { %v5416_v27 = vsub.f32 %v5408_v46, %v5414_v35  ;;  %v5487_v46 = vld [vmem:[#allocation7 + $0x10] sm:$0xff]  ;;  %v6267_v35 = vld [vmem:[%s9452_s4 + $0x78] sm:$0xff] }
 0x7bc   :  { %v5425_v39 = vadd.f32 1e-05, %v5416_v27  ;;  %v5488_v27 = vld [vmem:[#allocation7 + $0x18] sm:$0xff] }
 0x7be   :  { %8011 = vrsqrt.f32 %v5425_v39  ;;  %v5590_v39 = vld [vmem:[#allocation7 + $0x38] sm:$0xff] }
 0x7c3   :  { %v8010_v16 = vpop.eup %8009 }
 0x7c4   :  { %v5303_v48 = vrot.slane %v8010_v16, %v8878_v21  ;;  %v5698_v16 = vld [vmem:[%s9452_s4 + $0x30] sm:$0xff] }
 0x7c6   :  { %v5307_v5 = vmul.f32 %v5303_v48, %v5297_v49  ;;  %v5306_v2 = vmul.f32 %v5303_v48, %v5296_v15  ;;  %v5305_v37 = vmul.f32 %v5303_v48, %v5295_v36  ;;  %v6264_v49 = vld [vmem:[%s9452_s4 + $0x60] sm:$0xff]  ;;  %v6261_v15 = vld [vmem:[%s9452_s4 + $0x48] sm:$0xff] }
 0x7c8   :  { %v5443_v13 = vmul.f32 %v6246_v50, %v5307_v5  ;;  %v5442_v20 = vmul.f32 %v6246_v50, %v5306_v2  ;;  %v5692_v5 = vld [vmem:[%s9452_s4] sm:$0xff] }
 0x7ca   :  { %v5456_v18 = vadd.f32 %v6247_v26, %v5443_v13  ;;  %v5455_v40 = vadd.f32 %v6247_v26, %v5442_v20 }
 0x7cb   :  { %v8012_v41 = vpop.eup %8011 }
 0x7cc   :  { %v5430_v10 = vrot.slane %v8012_v41, %v8878_v21  ;;  %v5294_v21 = vsub.f32 %v9291_v63, %v5293_v55  ;;  %v5441_v63 = vmul.f32 %v6246_v50, %v5305_v37  ;;  %v5472_v19 = vmul.f32 0.01, %v5456_v18  ;;  %v6266_v55 = vld [vmem:[%s9452_s4 + $0x70] sm:$0xff]  ;;  %v5696_v41 = vld [vmem:[%s9452_s4 + $0x20] sm:$0xff] }
 0x7cd   :  { %vm5464_vm2 = vcmp.ge.f32.partialorder %v5456_v18, 0.0  ;;  %v5471_v3 = vmul.f32 0.01, %v5455_v40  ;;  %vm5463_vm3 = vcmp.ge.f32.partialorder %v5455_v40, 0.0 }
 0x7ce   :  { %v5434_v8 = vmul.f32 %v5430_v10, %v5424_v42  ;;  %v5433_v14 = vmul.f32 %v5430_v10, %v5423_v7  ;;  %v5432_v53 = vmul.f32 %v5430_v10, %v5422_v45  ;;  %v5431_v28 = vmul.f32 %v5430_v10, %v5421_v12  ;;  %v5695_v12 = vld [vmem:[%s9452_s4 + $0x18] sm:$0xff]  ;;  %v5694_v7 = vld [vmem:[%s9452_s4 + $0x10] sm:$0xff]  ;;  %v5693_v10 = vld [vmem:[%s9452_s4 + $0x8] sm:$0xff] }
 0x7cf   :  { %v5304_v22 = vmul.f32 %v5303_v48, %v5294_v21  ;;  %v5454_v56 = vadd.f32 %v6247_v26, %v5441_v63  ;;  %v5480_v6 = vsel %vm5464_vm2, %v5456_v18, %v5472_v19  ;;  %v5479_v44 = vsel %vm5463_vm3, %v5455_v40, %v5471_v3  ;;  %v6265_v48 = vld [vmem:[%s9452_s4 + $0x68] sm:$0xff]  ;;  %v6263_v45 = vld [vmem:[%s9452_s4 + $0x58] sm:$0xff]  ;;  %v6262_v42 = vld [vmem:[%s9452_s4 + $0x50] sm:$0xff] }
 0x7d0   :  { %v5447_v59 = vmul.f32 %v6246_v50, %v5434_v8  ;;  %v5446_v54 = vmul.f32 %v6246_v50, %v5433_v14  ;;  %v5445_v57 = vmul.f32 %v6246_v50, %v5432_v53  ;;  %v5444_v60 = vmul.f32 %v6246_v50, %v5431_v28  ;;  %v6260_v8 = vld [vmem:[%s9452_s4 + $0x40] sm:$0xff]  ;;  %s8209_s4 = smov [#allocation10]  }
 0x7d1   :  { %v5440_v52 = vmul.f32 %v6246_v50, %v5304_v22  ;;  %v5470_v62 = vmul.f32 0.01, %v5454_v56  ;;  %vm5462_vm4 = vcmp.ge.f32.partialorder %v5454_v56, 0.0  ;;  %s5904_s12 = sshll.u32 %s8209_s4, 4  ;;  %s5905_s12 = int_to_ptr.vmem [resolvable:$true] %s5904_s12 }
 0x7d2   :  { %v5460_v11 = vadd.f32 %v6247_v26, %v5447_v59  ;;  %v5459_v24 = vadd.f32 %v6247_v26, %v5446_v54  ;;  %v5458_v30 = vadd.f32 %v6247_v26, %v5445_v57  ;;  %v5457_v58 = vadd.f32 %v6247_v26, %v5444_v60  ;;  %s8173_s13 = scalar_lea.vmem %s5905_s12, 512  ;;  %p8178_p7 = scmp.lt.s32.totalorder %s5905_s12, %s5905_s12 }
 0x7d3   :  { %v5453_v4 = vadd.f32 %v6247_v26, %v5440_v52  ;;  %v5478_v43 = vsel %vm5462_vm4, %v5454_v56, %v5470_v62  ;;  %p8174_p6 = scmp.ne.s32.totalorder %s5905_s12, %s8173_s13  ;;  %p8179_p8 = scmp.lt.s32.totalorder %s8173_s13, %s8173_s13 }
 0x7d4   :  { %vm5468_vm12 = vcmp.ge.f32.partialorder %v5460_v11, 0.0  ;;  %v5476_v31 = vmul.f32 0.01, %v5460_v11  ;;  %v5475_v17 = vmul.f32 0.01, %v5459_v24  ;;  %vm5467_vm13 = vcmp.ge.f32.partialorder %v5459_v24, 0.0 }
 0x7d5   :  { %v5474_v38 = vmul.f32 0.01, %v5458_v30  ;;  %vm5466_vm14 = vcmp.ge.f32.partialorder %v5458_v30, 0.0  ;;  %v5473_v1 = vmul.f32 0.01, %v5457_v58  ;;  %vm5465_vm15 = vcmp.ge.f32.partialorder %v5457_v58, 0.0  ;;  %p8180_p9 = por %p8179_p8, %p8178_p7 }
 0x7d6   :  { %v5484_v25 = vsel %vm5468_vm12, %v5460_v11, %v5476_v31  ;;  %v5483_v32 = vsel %vm5467_vm13, %v5459_v24, %v5475_v17  ;;  %v5469_v61 = vmul.f32 0.01, %v5453_v4  ;;  %vm5461_vm5 = vcmp.ge.f32.partialorder %v5453_v4, 0.0 }
 0x7d7   :  { %7908 = vmatprep.subr.mxu0 %v5484_v25  ;;  %7930 = vmatprep.subr.mxu1 %v5484_v25  ;;  %v5482_v0 = vsel %vm5466_vm14, %v5458_v30, %v5474_v38  ;;  %v5481_v51 = vsel %vm5465_vm15, %v5457_v58, %v5473_v1  ;;  %p8181_p10 = pnand %p8180_p9, %p8174_p6 }
 0x7d8   :  { %7909 = vmatpush3.msra.mxu0 %v5484_v25  ;;  %7931 = vmatpush3.msra.mxu1 %v5484_v25  ;;  %v5477_v29 = vsel %vm5461_vm5, %v5453_v4, %v5469_v61 }
 0x7d9   :  { %7910 = vmatprep.subr.mxu0 %v5483_v32  ;;  %7932 = vmatprep.subr.mxu1 %v5483_v32 }
 0x7da   :  { %7911 = vmatpush3.msra.mxu0 %v5483_v32  ;;  %7933 = vmatpush3.msra.mxu1 %v5483_v32 }
 0x7db   :  { %7912 = vmatprep.subr.mxu0 %v5482_v0  ;;  %7934 = vmatprep.subr.mxu1 %v5482_v0 }
 0x7dc   :  { %7913 = vmatpush3.msra.mxu0 %v5482_v0  ;;  %7935 = vmatpush3.msra.mxu1 %v5482_v0 }
 0x7dd   :  { %7914 = vmatprep.subr.mxu0 %v5481_v51  ;;  %7936 = vmatprep.subr.mxu1 %v5481_v51 }
 0x7de   :  { %7915 = vmatpush3.msra.mxu0 %v5481_v51  ;;  %7937 = vmatpush3.msra.mxu1 %v5481_v51 }
 0x7df   :  { %7916 = vmatprep.subr.mxu0 %v5480_v6  ;;  %7938 = vmatprep.subr.mxu1 %v5480_v6 }
 0x7e0   :  { %7917 = vmatpush3.msra.mxu0 %v5480_v6  ;;  %7939 = vmatpush3.msra.mxu1 %v5480_v6 }
 0x7e1   :  { %7918 = vmatprep.subr.mxu0 %v5479_v44  ;;  %7940 = vmatprep.subr.mxu1 %v5479_v44 }
 0x7e2   :  { %7919 = vmatpush3.msra.mxu0 %v5479_v44  ;;  %7941 = vmatpush3.msra.mxu1 %v5479_v44 }
 0x7e3   :  { %7920 = vmatprep.subr.mxu0 %v5478_v43  ;;  %7942 = vmatprep.subr.mxu1 %v5478_v43 }
 0x7e4   :  { %7921 = vmatpush3.msra.mxu0 %v5478_v43  ;;  %7943 = vmatpush3.msra.mxu1 %v5478_v43 }
 0x7e5   :  { %7922 = vmatprep.subr.mxu0 %v5477_v29  ;;  %7944 = vmatprep.subr.mxu1 %v5477_v29 }
 0x7e6   :  { %7923 = vmatpush3.msra.mxu0 %v5477_v29  ;;  %7945 = vmatpush3.msra.mxu1 %v5477_v29 }
 0x7e7   :  { %7925 = vmatmul.mubr.msk.f32.vlgmr.msra.gmra.mxu0 %vm112_vm0, %v5486_v34  ;;  %7947 = vmatmul.mubr.msk.f32.vlgmr.msra.gmra.mxu1 %vm112_vm0, %v5588_v47 }
 0x7e8   :  { %7927 = vmatprep.mubr.msk.f32.mxu0 %vm112_vm0, %v5487_v46  ;;  %7949 = vmatprep.mubr.msk.f32.mxu1 %vm112_vm0, %v5589_v9 }
 0x7e9   :  { %7952 = vmatprep.subr.mxu0 %v5699_v33  ;;  %7974 = vmatprep.subr.mxu1 %v6267_v35 }
 0x7ea   :  { %7953 = vmatpush3.msra.mxu0 %v5699_v33  ;;  %7975 = vmatpush3.msra.mxu1 %v6267_v35 }
 0x7eb   :  { %7928 = vmatmul.mubr.msk.f32.gmra.mxu0 %vm112_vm0, %v5488_v27  ;;  %7950 = vmatmul.mubr.msk.f32.gmra.mxu1 %vm112_vm0, %v5590_v39 }
 0x7ec   :  { %7954 = vmatprep.subr.mxu0 %v5698_v16  ;;  %7976 = vmatprep.subr.mxu1 %v6266_v55 }
 0x7ed   :  { %7955 = vmatpush3.msra.mxu0 %v5698_v16  ;;  %7977 = vmatpush3.msra.mxu1 %v6266_v55 }
 0x7ee   :  { %7956 = vmatprep.subr.mxu0 %v5697_v23  ;;  %7978 = vmatprep.subr.mxu1 %v6265_v48 }
 0x7ef   :  { %7957 = vmatpush3.msra.mxu0 %v5697_v23  ;;  %7979 = vmatpush3.msra.mxu1 %v6265_v48 }
 0x7f0   :  { %7958 = vmatprep.subr.mxu0 %v5696_v41  ;;  %7980 = vmatprep.subr.mxu1 %v6264_v49 }
 0x7f1   :  { %7959 = vmatpush3.msra.mxu0 %v5696_v41  ;;  %7981 = vmatpush3.msra.mxu1 %v6264_v49 }
 0x7f2   :  { %7960 = vmatprep.subr.mxu0 %v5695_v12  ;;  %7982 = vmatprep.subr.mxu1 %v6263_v45 }
 0x7f3   :  { %7961 = vmatpush3.msra.mxu0 %v5695_v12  ;;  %7983 = vmatpush3.msra.mxu1 %v6263_v45 }
 0x7f4   :  { %7962 = vmatprep.subr.mxu0 %v5694_v7  ;;  %7984 = vmatprep.subr.mxu1 %v6262_v42 }
 0x7f5   :  { %7963 = vmatpush3.msra.mxu0 %v5694_v7  ;;  %7985 = vmatpush3.msra.mxu1 %v6262_v42 }
 0x7f6   :  { %7964 = vmatprep.subr.mxu0 %v5693_v10  ;;  %7986 = vmatprep.subr.mxu1 %v6261_v15 }
 0x7f7   :  { %7965 = vmatpush3.msra.mxu0 %v5693_v10  ;;  %7987 = vmatpush3.msra.mxu1 %v6261_v15 }
 0x7f8   :  { %7966 = vmatprep.subr.mxu0 %v5692_v5  ;;  %7988 = vmatprep.subr.mxu1 %v6260_v8 }
 0x7f9   :  { %7967 = vmatpush3.msra.mxu0 %v5692_v5  ;;  %7989 = vmatpush3.msra.mxu1 %v6260_v8 }
 0x8a7   :  { %v7926_v14 = vpop.f32.mrf.mxu0  ;;  %v7948_v53 = vpop.f32.mrf.mxu1 }
 0x8a8   :  { %v5689_v2 = vmax.f32 %v7926_v14, %v7948_v53 }
 0x8a9   :  { %v5567_v28 = vpop.f32.mrf.mxu0  ;;  %v5669_v36 = vpop.f32.mrf.mxu1 }
 0x8aa   :  { %v5688_v50 = vmax.f32 %v5567_v28, %v5669_v36 }
 0x8ab   :  { %v7929_v59 = vpop.f32.mrf.mxu0  ;;  %v7951_v54 = vpop.f32.mrf.mxu1 }
 0x8ac   :  { %7968 = vmatprep.mubr.msk.f32.mxu0 %vm112_vm0, %v5688_v50  ;;  %7990 = vmatprep.mubr.msk.f32.mxu1 %vm112_vm0, %v5688_v50  ;;  %v5691_v26 = vmax.f32 %v7929_v59, %v7951_v54 }
 0x8ad   :  { %v5577_v57 = vpop.f32.mrf.mxu0  ;;  %v5679_v60 = vpop.f32.mrf.mxu1  ;;  %7969 = vmatmul.mubr.msk.f32.vlgmr.msra.gmra.mxu0 %vm112_vm0, %v5689_v2  ;;  %7991 = vmatmul.mubr.msk.f32.vlgmr.msra.gmra.mxu1 %vm112_vm0, %v5689_v2 }
 0x8ae   :  { %v5690_v21 = vmax.f32 %v5577_v57, %v5679_v60 }
 0x8b0   :  { %7971 = vmatprep.mubr.msk.f32.mxu0 %vm112_vm0, %v5690_v21  ;;  %7993 = vmatprep.mubr.msk.f32.mxu1 %vm112_vm0, %v5690_v21 }
 0x8b1   :  { %7972 = vmatmul.mubr.msk.f32.gmra.mxu0 %vm112_vm0, %v5691_v26  ;;  %7994 = vmatmul.mubr.msk.f32.gmra.mxu1 %vm112_vm0, %v5691_v26 }
 0x96d   :  { %v7970_v37 = vpop.f32.mrf.mxu0  ;;  %v7992_v11 = vpop.f32.mrf.mxu1 }
 0x96e   :  { %v5892_v24 = vmax.f32 %v7970_v37, %v7992_v11 }
 0x96f   :  { %v5778_v30 = vpop.f32.mrf.mxu0  ;;  %v5872_v13 = vpop.f32.mrf.mxu1 }
 0x970   :  { %5896 = vst.msk [vmem:[#allocation10 + $0x8] sm:$0xff] %vm389_vm1, %v5892_v24  ;;  %v5891_v20 = vmax.f32 %v5778_v30, %v5872_v13 }
 0x971   :  { %v7973_v22 = vpop.f32.mrf.mxu0  ;;  %v7995_v31 = vpop.f32.mrf.mxu1 }
 0x972   :  { %5895 = vst.msk [vmem:[#allocation10] sm:$0xff] %vm389_vm1, %v5891_v20  ;;  %v5894_v17 = vmax.f32 %v7973_v22, %v7995_v31 }
 0x973   :  { %v5788_v58 = vpop.f32.mrf.mxu0  ;;  %v5882_v25 = vpop.f32.mrf.mxu1 }
 0x974   :  { %5898 = vst.msk [vmem:[#allocation10 + $0x18] sm:$0xff] %vm389_vm1, %v5894_v17  ;;  %v5893_v38 = vmax.f32 %v5788_v58, %v5882_v25 }
 0x976   :  { %5897 = vst.msk [vmem:[#allocation10 + $0x10] sm:$0xff] %vm389_vm1, %v5893_v38 }
 0x977   :  { %8184 = shalt.err (!%p8181_p10)
}
 0x978   :  { %5910 = dma.vmem_to_hbm [thread:$0]  %s5905_s12, 512, %s9457_s9, [#allocation4], %s8203_s14, %s8203_s14, %s8204_s15  }
 0x979   :  { %8199 = dma.done.wait [#allocation4], 512  }
 0x97a   :  { %8200 = vsyncadd [#allocation4], 4294966784 }
 0x97b   :  { %5914 = vsyncpa [#allocation3], 1 }
 0x97c   :  { %5915 = vsyncpa [#allocation6], 1 }
 0x97d   :  { %5916 = vsyncpa [#allocation9], 1 }
 0x97e   :  { %5917 = vsyncpa [#allocation4], 1 }

</bundles_post_ra>
